<compile_context>
chip_gen: v6e
topology: v6e:2x2x1
jax: 0.10.0
libtpu: 0.0.40
codegen_flags: <defaults>
</compile_context>

<pallas_src>
import functools

import jax
import jax.numpy as jnp
from jax import lax
from jax.experimental import pallas as pl
from jax.experimental.pallas import tpu as pltpu

ALPHA = 0.9  # module's fixed precision target (alpha)

_LANE = 128
_STAT_LP, _STAT_LN, _STAT_TS, _STAT_CC = 0, 1, 2, 3


def _mrap_fwd_kernel(xT_ref, w1T_ref, b1T_ref, w2d8_ref, b2d_ref, tgt_ref,
                     pred_ref, stats_ref, *, n_valid, needs_mask):
    """One batch tile (batch rows on LANES): 2-layer head + hinge statistics.

    xT_ref   : (D, TILE_N)       input rows, transposed & streamed (bf16/f32)
    w1T_ref  : (H_pad, D)        first-layer weight, transposed (resident)
    b1T_ref  : (H_pad, 1)  f32   first-layer bias (resident)
    w2d8_ref : (8, H_pad)  f32   row0 = W2[:,1]-W2[:,0], rows 1..7 zero (resident)
    b2d_ref  : (1, 1) SMEM f32   b2[1] - b2[0]
    tgt_ref  : (1, TILE_N) f32   targets in {0,1} (streamed)
    pred_ref : (1, TILE_N) i32   predicted class per row (lane-dense store)
    stats_ref: (1, 1, 128) f32   [Lp, Ln, sum(t), #correct] in lanes 0..3
    """
    tile_n = xT_ref.shape[1]

    # ---- layer 1 (MXU, bf16/f32 operands, f32 accumulate) ------------------
    h1 = jnp.dot(w1T_ref[...], xT_ref[...],
                 preferred_element_type=jnp.float32)            # (H_pad, TILE_N)
    h1 = jax.nn.sigmoid(h1 + b1T_ref[...])
    # TODO(synk): with_dropout=True (p=0.1) would go here; default path has none.

    # ---- collapsed 2-class head: dz = logit_1 - logit_0 ---------------------
    # (8, H_pad) @ (H_pad, TILE_N) keeps every matmul dim MXU-aligned; only
    # row 0 carries the real weight difference.
    dz = jnp.dot(w2d8_ref[...], h1,
                 preferred_element_type=jnp.float32)[0:1, :]    # (1, TILE_N)
    dz = dz + b2d_ref[0, 0]

    # softmax(z)[:,1] - softmax(z)[:,0] == tanh(dz / 2)   (exact identity)
    pred = 2.0 * jnp.tanh(0.5 * dz) - 1.0

    t = tgt_ref[...]                                            # (1, TILE_N)
    y = 2.0 * t - 1.0
    hinge = jnp.maximum(1.0 - y * pred, 0.0)

    pred_cls = (dz > 0.0).astype(jnp.int32)
    correct = (pred_cls == t.astype(jnp.int32)).astype(jnp.float32)

    # Partial sums.  Padded rows have t == 0, so Lp and sum(t) never need the
    # ragged mask; Ln / #correct only need it when batch padding exists
    # (trace-time flag), and then only as two multiplies.
    lp = jnp.sum(hinge * t, axis=1, keepdims=True)              # (1, 1)
    ts = jnp.sum(t, axis=1, keepdims=True)
    if needs_mask:
        col = pl.program_id(0) * tile_n + lax.broadcasted_iota(
            jnp.int32, (1, tile_n), 1)
        validf = (col < n_valid).astype(jnp.float32)
        ln = jnp.sum(hinge * validf, axis=1, keepdims=True) - lp
        cc = jnp.sum(correct * validf, axis=1, keepdims=True)
    else:
        ln = jnp.sum(hinge, axis=1, keepdims=True) - lp
        cc = jnp.sum(correct, axis=1, keepdims=True)

    # Lane-dense, unmasked prediction store.
    pred_ref[...] = pred_cls

    # Single merged, lane-padded statistics store (lanes 0..3 carry the sums).
    lane = lax.broadcasted_iota(jnp.int32, (1, _LANE), 1)
    stats = (jnp.where(lane == _STAT_LP, lp, 0.0)
             + jnp.where(lane == _STAT_LN, ln, 0.0)
             + jnp.where(lane == _STAT_TS, ts, 0.0)
             + jnp.where(lane == _STAT_CC, cc, 0.0))
    stats_ref[...] = stats[None]                                # (1, 1, 128)


def _vmem_capacity_bytes():
    try:
        return int(pltpu.get_tpu_info().vmem_capacity_bytes)
    except Exception:
        return 64 * 1024 * 1024     # conservative: v7x physical VMEM


def _choose_tile_n(n_rows, d, h_pad, stream_itemsize):
    """Largest lane-aligned batch tile fitting a generation-aware VMEM budget,
    clamped so the batch grid keeps >= ~4 steps (v7x dual-TC / pipelining)."""
    vmem_cap = _vmem_capacity_bytes()
    budget = min(vmem_cap // 3, 40 * 1024 * 1024)
    # Resident (constant-index) operands are still double-buffered by Pallas.
    resident = 2 * (h_pad * d * stream_itemsize    # W1^T
                    + h_pad * 4                    # b1^T
                    + 8 * h_pad * 4                # w2 diff (padded to 8 rows)
                    + _LANE * 4)                   # stats tile
    per_row = (2 * d * stream_itemsize             # X^T tile, double-buffered
               + 2 * 4 + 2 * 4                     # target f32 + pred i32 tiles
               + 3 * h_pad * 4                     # h1 + sigmoid temporaries (f32)
               + 16)                               # dz / hinge / mask slack
    tile = (budget - resident) // per_row
    tile = max(_LANE, min(8192, (tile // _LANE) * _LANE))
    # Keep at least ~4 grid steps when the batch is large enough.
    tile = min(tile, max(_LANE, ((n_rows + 4 * _LANE - 1) // (4 * _LANE)) * _LANE))
    return int(tile), vmem_cap


def max_recall_at_precision(X, target, params, lam, *, alpha=ALPHA,
                            training=True, stream_dtype=jnp.bfloat16):
    """Pallas forward of MaxRecallAtPrecision; returns (L, accu, pred_cls).

    `stream_dtype` controls the dtype X / W1 are streamed & multiplied at
    (bf16 halves HBM traffic; post-matmul math is always f32).  Pass None to
    keep the input dtype (exact path).
    """
    n, d = X.shape
    w1, b1, w2, b2 = params["w1"], params["b1"], params["w2"], params["b2"]
    h = w1.shape[1]
    h_pad = max(_LANE, ((h + _LANE - 1) // _LANE) * _LANE)

    mat_dtype = jnp.dtype(X.dtype) if stream_dtype is None else jnp.dtype(stream_dtype)

    # Resident operands, transposed (hidden units on sublanes) & zero-padded.
    # Exact: padded hidden units get zero collapsed-head weight.
    w1T = jnp.pad(w1.T, ((0, h_pad - h), (0, 0))).astype(mat_dtype)       # (H_pad, D)
    b1T = jnp.pad(b1.reshape(h, 1), ((0, h_pad - h), (0, 0))).astype(jnp.float32)
    w2d = (w2[:, 1] - w2[:, 0]).astype(jnp.float32)                       # (H,)
    w2d8 = jnp.zeros((8, h_pad), jnp.float32).at[0, :h].set(w2d)          # MXU-aligned
    b2d = (b2[:, 1:2] - b2[:, 0:1]).astype(jnp.float32)                   # (1,1) SMEM

    tile_n, vmem_cap = _choose_tile_n(n, d, h_pad, mat_dtype.itemsize)
    num_tiles = pl.cdiv(n, tile_n)
    n_pad = num_tiles * tile_n

    # One-time wrapper transpose/cast: batch rows land on LANES in the kernel.
    xT = X.T.astype(mat_dtype)                                            # (D, N)
    tgt = target.reshape(1, n).astype(jnp.float32)
    if n_pad != n:
        xT = jnp.pad(xT, ((0, 0), (0, n_pad - n)))
        tgt = jnp.pad(tgt, ((0, 0), (0, n_pad - n)))

    cost = pl.CostEstimate(
        flops=int(2 * n_pad * d * h_pad + 2 * n_pad * 8 * h_pad + 12 * n_pad),
        transcendentals=int(n_pad * (h_pad + 1)),
        bytes_accessed=int(n_pad * d * mat_dtype.itemsize     # X^T stream
                           + 2 * n_pad * 4                    # target + pred
                           + h_pad * d * mat_dtype.itemsize   # W1^T
                           + 9 * h_pad * 4                    # b1^T + w2d8
                           + num_tiles * _LANE * 4),          # stats
    )

    pred_pad, stats_p = pl.pallas_call(
        functools.partial(_mrap_fwd_kernel, n_valid=n, needs_mask=(n_pad != n)),
        grid=(num_tiles,),
        in_specs=[
            pl.BlockSpec((d, tile_n), lambda i: (0, i)),        # X^T tile (streamed)
            pl.BlockSpec((h_pad, d), lambda i: (0, 0)),         # W1^T     (resident)
            pl.BlockSpec((h_pad, 1), lambda i: (0, 0)),         # b1^T     (resident)
            pl.BlockSpec((8, h_pad), lambda i: (0, 0)),         # w2 diff  (resident)
            pl.BlockSpec(memory_space=pltpu.MemorySpace.SMEM),  # b2 diff scalar
            pl.BlockSpec((1, tile_n), lambda i: (0, i)),        # target tile
        ],
        out_specs=(
            pl.BlockSpec((1, tile_n), lambda i: (0, i)),        # pred_cls (lane-dense)
            pl.BlockSpec((1, 1, _LANE), lambda i: (i, 0, 0)),   # merged stats
        ),
        out_shape=(
            jax.ShapeDtypeStruct((1, n_pad), jnp.int32),
            jax.ShapeDtypeStruct((num_tiles, 1, _LANE), jnp.float32),
        ),
        compiler_params=pltpu.CompilerParams(
            dimension_semantics=("parallel",),
            vmem_limit_bytes=int(min(vmem_cap * 3 // 4, 100 * 1024 * 1024)),
        ),
        cost_estimate=cost,
    )(xT, w1T, b1T, w2d8, b2d, tgt)

    # Tiny finalize in plain JAX (keeps the batch grid axis fully parallel).
    stats = jnp.sum(stats_p, axis=(0, 1))                       # (128,)
    lp, ln = stats[_STAT_LP], stats[_STAT_LN]
    t_sum, n_correct = stats[_STAT_TS], stats[_STAT_CC]

    alpha_term = alpha / (1.0 - alpha)
    lam = jnp.asarray(lam, jnp.float32).reshape(-1)             # (1,) Parameter
    loss = lp + lam * (alpha_term * ln + lp - t_sum)
    if training:   # module default: training=True and lam.requires_grad=True
        loss = -loss
    accu = n_correct / jnp.float32(n)
    return loss, accu, pred_pad[0, :n]


def _reference_forward(X, target, params, lam, *, alpha=ALPHA, training=True):
    """Plain-JAX transcription of the PyTorch forward (ground truth)."""
    hp = lax.Precision.HIGHEST
    h1 = jax.nn.sigmoid(
        jnp.dot(X.astype(jnp.float32), params["w1"], precision=hp) + params["b1"])
    logits = jax.nn.softmax(
        jnp.dot(h1, params["w2"], precision=hp) + params["b2"], axis=1)
    t = target.astype(jnp.float32)
    y = 2.0 * t - 1.0
    pred = (logits[:, 1] - logits[:, 0]) * 2.0 - 1.0
    hinge = jnp.maximum(1.0 - y * pred, 0.0)
    lp = jnp.sum(hinge * t)
    ln = jnp.sum(hinge * (1.0 - t))
    alpha_term = alpha / (1.0 - alpha)
    loss = lp + jnp.asarray(lam, jnp.float32).reshape(-1) * (
        alpha_term * ln + lp - jnp.sum(t))
    if training:
        loss = -loss
    pred_cls = (logits[:, 1] > logits[:, 0]).astype(jnp.int32)
    accu = jnp.mean((pred_cls == target.astype(jnp.int32)).astype(jnp.float32))
    return loss, accu, pred_cls


def init_params(key, input_size, hidden_size):
    k1, k2, k3, k4 = jax.random.split(key, 4)
    # deterministic synthetic init (stand-in for weights_init)
    w1 = 0.1 * jax.random.normal(k1, (input_size, hidden_size), jnp.float32)
    b1 = 0.1 * jax.random.normal(k2, (1, hidden_size), jnp.float32)
    w2 = 0.1 * jax.random.normal(k3, (hidden_size, 2), jnp.float32)
    b2 = 0.1 * jax.random.normal(k4, (1, 2), jnp.float32)
    return {"w1": w1, "b1": b1, "w2": w2, "b2": b2}


if __name__ == "__main__":
    # N not a multiple of the tile exercises the ragged-batch mask path.
    N, INPUT_SIZE, HIDDEN = 4100, 32, 32

    key = jax.random.PRNGKey(0)
    kx, kt, kp = jax.random.split(key, 3)

    X = jax.random.normal(kx, (N, INPUT_SIZE), jnp.float32)
    target = jax.random.bernoulli(kt, 0.5, (N,)).astype(jnp.int32)
    params = init_params(kp, INPUT_SIZE, HIDDEN)
    lam = jnp.array([2.0], jnp.float32)

    # Default fast path: bf16-streamed X / W1.
    L, accu, pred_cls = max_recall_at_precision(X, target, params, lam)
    jax.block_until_ready((L, accu, pred_cls))

    L_ref, accu_ref, pred_ref = _reference_forward(X, target, params, lam)

    # Exact-stream (f32) path: tight check of the kernel logic itself.
    L32, accu32, pred32 = max_recall_at_precision(
        X, target, params, lam, stream_dtype=None)
    jax.block_until_ready((L32, accu32, pred32))
    assert jnp.allclose(L32, L_ref, rtol=2e-3, atol=1e-2), (L32, L_ref)
    assert abs(float(accu32) - float(accu_ref)) <= 3.0 / N, (accu32, accu_ref)
    assert float(jnp.mean((pred32 != pred_ref).astype(jnp.float32))) < 2e-3

    # bf16-streamed path: slightly looser (bf16 only perturbs rows whose logit
    # difference sits within ~1e-3 of the decision boundary).
    assert jnp.allclose(L, L_ref, rtol=5e-3, atol=5e-2), (L, L_ref)
    assert abs(float(accu) - float(accu_ref)) <= 5e-3, (accu, accu_ref)
    assert float(jnp.mean((pred_cls != pred_ref).astype(jnp.float32))) < 0.01

    print("KERNEL_OK")
</pallas_src>

<mosaic_0001>
module attributes {stable_mosaic.version = 11 : i64} {
  func.func @_mrap_fwd_kernel(%arg0: i32, %arg1: memref<32x1152xbf16, #tpu.memory_space<vmem>>, %arg2: memref<128x32xbf16, #tpu.memory_space<vmem>>, %arg3: memref<128x1xf32, #tpu.memory_space<vmem>>, %arg4: memref<8x128xf32, #tpu.memory_space<vmem>>, %arg5: memref<1x1xf32, #tpu.memory_space<smem>>, %arg6: memref<1x1152xf32, #tpu.memory_space<vmem>>, %arg7: memref<1x1152xi32, #tpu.memory_space<vmem>>, %arg8: memref<1x1x128xf32, #tpu.memory_space<vmem>>) attributes {dimension_semantics = [#tpu.dimension_semantics<parallel>], iteration_bounds = array<i64: 4>, scalar_prefetch = 0 : i64, scratch_operands = 0 : i64, tpu.core_type = #tpu.core_type<tc>, window_params = [{transform_indices = @transform_0, window_bounds = array<i64: 32, 1152>}, {pipeline_mode = #tpu.pipeline_mode<synchronous>, transform_indices = @transform_1, window_bounds = array<i64: 128, 32>}, {pipeline_mode = #tpu.pipeline_mode<synchronous>, transform_indices = @transform_2, window_bounds = array<i64: 128, 1>}, {pipeline_mode = #tpu.pipeline_mode<synchronous>, transform_indices = @transform_3, window_bounds = array<i64: 8, 128>}, {transform_indices = @transform_4, window_bounds = array<i64: 1, 1>}, {transform_indices = @transform_5, window_bounds = array<i64: 1, 1152>}, {transform_indices = @transform_6, window_bounds = array<i64: 1, 1152>}, {transform_indices = @transform_7, window_bounds = array<i64: 1, 1, 128>}]} {
    %c0 = arith.constant 0 : index
    %c0_0 = arith.constant 0 : index
    %0 = vector.load %arg2[%c0, %c0_0] : memref<128x32xbf16, #tpu.memory_space<vmem>>, vector<128x32xbf16>
    %c0_1 = arith.constant 0 : index
    %c0_2 = arith.constant 0 : index
    %1 = vector.load %arg1[%c0_1, %c0_2] : memref<32x1152xbf16, #tpu.memory_space<vmem>>, vector<32x1152xbf16>
    %cst = arith.constant dense<0.000000e+00> : vector<128x1152xf32>
    %2 = tpu.matmul %0, %1, %cst {dimension_numbers = #tpu.dot_dimension_numbers<[1], [0], [0], [1], [0, 0, 1, 1], [], []>} : vector<128x32xbf16>, vector<32x1152xbf16>, vector<128x1152xf32> -> vector<128x1152xf32>
    %c0_3 = arith.constant 0 : index
    %c0_4 = arith.constant 0 : index
    %3 = vector.load %arg3[%c0_3, %c0_4] : memref<128x1xf32, #tpu.memory_space<vmem>>, vector<128x1xf32>
    %4 = vector.broadcast %3 : vector<128x1xf32> to vector<128x1152xf32>
    %5 = arith.addf %2, %4 : vector<128x1152xf32>
    %6 = arith.negf %5 : vector<128x1152xf32>
    %7 = math.exp %6 : vector<128x1152xf32>
    %cst_5 = arith.constant 1.000000e+00 : f32
    %8 = vector.broadcast %cst_5 : f32 to vector<128x1152xf32>
    %9 = arith.addf %8, %7 : vector<128x1152xf32>
    %10 = arith.divf %8, %9 : vector<128x1152xf32>
    %c0_6 = arith.constant 0 : index
    %c0_7 = arith.constant 0 : index
    %11 = vector.load %arg4[%c0_6, %c0_7] : memref<8x128xf32, #tpu.memory_space<vmem>>, vector<8x128xf32>
    %cst_8 = arith.constant dense<0.000000e+00> : vector<8x1152xf32>
    %12 = tpu.matmul %11, %10, %cst_8 {dimension_numbers = #tpu.dot_dimension_numbers<[1], [0], [0], [1], [0, 0, 1, 1], [], []>} : vector<8x128xf32>, vector<128x1152xf32>, vector<8x1152xf32> -> vector<8x1152xf32>
    %13 = vector.extract_strided_slice %12 {offsets = [0, 0], sizes = [1, 1152], strides = [1, 1]} : vector<8x1152xf32> to vector<1x1152xf32>
    %c0_9 = arith.constant 0 : index
    %c0_10 = arith.constant 0 : index
    %14 = memref.load %arg5[%c0_9, %c0_10] : memref<1x1xf32, #tpu.memory_space<smem>>
    %15 = vector.broadcast %14 : f32 to vector<1x1152xf32>
    %16 = arith.addf %13, %15 : vector<1x1152xf32>
    %cst_11 = arith.constant 5.000000e-01 : f32
    %17 = vector.broadcast %cst_11 : f32 to vector<1x1152xf32>
    %18 = arith.mulf %17, %16 : vector<1x1152xf32>
    %19 = math.tanh %18 : vector<1x1152xf32>
    %cst_12 = arith.constant 2.000000e+00 : f32
    %20 = vector.broadcast %cst_12 : f32 to vector<1x1152xf32>
    %21 = arith.mulf %20, %19 : vector<1x1152xf32>
    %cst_13 = arith.constant 1.000000e+00 : f32
    %22 = vector.broadcast %cst_13 : f32 to vector<1x1152xf32>
    %23 = arith.subf %21, %22 : vector<1x1152xf32>
    %c0_14 = arith.constant 0 : index
    %c0_15 = arith.constant 0 : index
    %24 = vector.load %arg6[%c0_14, %c0_15] : memref<1x1152xf32, #tpu.memory_space<vmem>>, vector<1x1152xf32>
    %cst_16 = arith.constant 2.000000e+00 : f32
    %25 = vector.broadcast %cst_16 : f32 to vector<1x1152xf32>
    %26 = arith.mulf %25, %24 : vector<1x1152xf32>
    %cst_17 = arith.constant 1.000000e+00 : f32
    %27 = vector.broadcast %cst_17 : f32 to vector<1x1152xf32>
    %28 = arith.subf %26, %27 : vector<1x1152xf32>
    %29 = arith.mulf %28, %23 : vector<1x1152xf32>
    %cst_18 = arith.constant 1.000000e+00 : f32
    %30 = vector.broadcast %cst_18 : f32 to vector<1x1152xf32>
    %31 = arith.subf %30, %29 : vector<1x1152xf32>
    %cst_19 = arith.constant 0.000000e+00 : f32
    %32 = vector.broadcast %cst_19 : f32 to vector<1x1152xf32>
    %33 = arith.maximumf %31, %32 : vector<1x1152xf32>
    %cst_20 = arith.constant 0.000000e+00 : f32
    %34 = vector.broadcast %cst_20 : f32 to vector<1x1152xf32>
    %35 = arith.cmpf ogt, %16, %34 : vector<1x1152xf32>
    %36 = arith.extui %35 : vector<1x1152xi1> to vector<1x1152xi32>
    %37 = arith.fptosi %24 : vector<1x1152xf32> to vector<1x1152xi32>
    %38 = arith.cmpi eq, %36, %37 : vector<1x1152xi32>
    %39 = arith.extui %38 : vector<1x1152xi1> to vector<1x1152xi32>
    %40 = arith.sitofp %39 : vector<1x1152xi32> to vector<1x1152xf32>
    %41 = arith.mulf %33, %24 : vector<1x1152xf32>
    %cst_21 = arith.constant dense<0.000000e+00> : vector<1xf32>
    %42 = vector.multi_reduction <add>, %41, %cst_21 [1] : vector<1x1152xf32> to vector<1xf32>
    %43 = vector.shape_cast %42 : vector<1xf32> to vector<1x1xf32>
    %cst_22 = arith.constant dense<0.000000e+00> : vector<1xf32>
    %44 = vector.multi_reduction <add>, %24, %cst_22 [1] : vector<1x1152xf32> to vector<1xf32>
    %45 = vector.shape_cast %44 : vector<1xf32> to vector<1x1xf32>
    %c1152_i32 = arith.constant 1152 : i32
    %46 = arith.muli %arg0, %c1152_i32 : i32
    %47 = tpu.iota {dimensions = array<i32: 1>} : vector<1x1152xi32>
    %48 = vector.broadcast %46 : i32 to vector<1x1152xi32>
    %49 = arith.addi %48, %47 : vector<1x1152xi32>
    %c4100_i32 = arith.constant 4100 : i32
    %50 = vector.broadcast %c4100_i32 : i32 to vector<1x1152xi32>
    %51 = arith.cmpi slt, %49, %50 : vector<1x1152xi32>
    %52 = arith.extui %51 : vector<1x1152xi1> to vector<1x1152xi32>
    %53 = arith.sitofp %52 : vector<1x1152xi32> to vector<1x1152xf32>
    %54 = arith.mulf %33, %53 : vector<1x1152xf32>
    %cst_23 = arith.constant dense<0.000000e+00> : vector<1xf32>
    %55 = vector.multi_reduction <add>, %54, %cst_23 [1] : vector<1x1152xf32> to vector<1xf32>
    %56 = vector.shape_cast %55 : vector<1xf32> to vector<1x1xf32>
    %57 = arith.subf %56, %43 : vector<1x1xf32>
    %58 = arith.mulf %40, %53 : vector<1x1152xf32>
    %cst_24 = arith.constant dense<0.000000e+00> : vector<1xf32>
    %59 = vector.multi_reduction <add>, %58, %cst_24 [1] : vector<1x1152xf32> to vector<1xf32>
    %60 = vector.shape_cast %59 : vector<1xf32> to vector<1x1xf32>
    %c0_25 = arith.constant 0 : index
    %c0_26 = arith.constant 0 : index
    %61 = vector.load %arg7[%c0_25, %c0_26] : memref<1x1152xi32, #tpu.memory_space<vmem>>, vector<1x1152xi32>
    tpu.vector_store %arg7[%c0_25, %c0_26], %36 {strides = array<i32>} : memref<1x1152xi32, #tpu.memory_space<vmem>>, vector<1x1152xi32>,
    %62 = tpu.iota {dimensions = array<i32: 1>} : vector<1x128xi32>
    %c0_i32 = arith.constant 0 : i32
    %63 = vector.broadcast %c0_i32 : i32 to vector<1x128xi32>
    %64 = arith.cmpi eq, %62, %63 : vector<1x128xi32>
    %cst_27 = arith.constant 0.000000e+00 : f32
    %65 = vector.shape_cast %43 : vector<1x1xf32> to vector<1x1xf32>
    %66 = vector.broadcast %65 : vector<1x1xf32> to vector<1x128xf32>
    %67 = vector.broadcast %cst_27 : f32 to vector<1x128xf32>
    %68 = arith.select %64, %66, %67 : vector<1x128xi1>, vector<1x128xf32>
    %c1_i32 = arith.constant 1 : i32
    %69 = vector.broadcast %c1_i32 : i32 to vector<1x128xi32>
    %70 = arith.cmpi eq, %62, %69 : vector<1x128xi32>
    %cst_28 = arith.constant 0.000000e+00 : f32
    %71 = vector.shape_cast %57 : vector<1x1xf32> to vector<1x1xf32>
    %72 = vector.broadcast %71 : vector<1x1xf32> to vector<1x128xf32>
    %73 = vector.broadcast %cst_28 : f32 to vector<1x128xf32>
    %74 = arith.select %70, %72, %73 : vector<1x128xi1>, vector<1x128xf32>
    %75 = arith.addf %68, %74 : vector<1x128xf32>
    %c2_i32 = arith.constant 2 : i32
    %76 = vector.broadcast %c2_i32 : i32 to vector<1x128xi32>
    %77 = arith.cmpi eq, %62, %76 : vector<1x128xi32>
    %cst_29 = arith.constant 0.000000e+00 : f32
    %78 = vector.shape_cast %45 : vector<1x1xf32> to vector<1x1xf32>
    %79 = vector.broadcast %78 : vector<1x1xf32> to vector<1x128xf32>
    %80 = vector.broadcast %cst_29 : f32 to vector<1x128xf32>
    %81 = arith.select %77, %79, %80 : vector<1x128xi1>, vector<1x128xf32>
    %82 = arith.addf %75, %81 : vector<1x128xf32>
    %c3_i32 = arith.constant 3 : i32
    %83 = vector.broadcast %c3_i32 : i32 to vector<1x128xi32>
    %84 = arith.cmpi eq, %62, %83 : vector<1x128xi32>
    %cst_30 = arith.constant 0.000000e+00 : f32
    %85 = vector.shape_cast %60 : vector<1x1xf32> to vector<1x1xf32>
    %86 = vector.broadcast %85 : vector<1x1xf32> to vector<1x128xf32>
    %87 = vector.broadcast %cst_30 : f32 to vector<1x128xf32>
    %88 = arith.select %84, %86, %87 : vector<1x128xi1>, vector<1x128xf32>
    %89 = arith.addf %82, %88 : vector<1x128xf32>
    %90 = vector.shape_cast %89 : vector<1x128xf32> to vector<1x1x128xf32>
    %c0_31 = arith.constant 0 : index
    %c0_32 = arith.constant 0 : index
    %c0_33 = arith.constant 0 : index
    %91 = vector.load %arg8[%c0_31, %c0_32, %c0_33] : memref<1x1x128xf32, #tpu.memory_space<vmem>>, vector<1x1x128xf32>
    tpu.vector_store %arg8[%c0_31, %c0_32, %c0_33], %90 {strides = array<i32>} : memref<1x1x128xf32, #tpu.memory_space<vmem>>, vector<1x1x128xf32>,
    return
  }
  func.func @transform_0(%arg0: i32) -> (i32, i32) {
    %c0_i32 = arith.constant 0 : i32
    %c0_i32_0 = arith.constant 0 : i32
    return %c0_i32, %arg0 : i32, i32
  }
  func.func @transform_1(%arg0: i32) -> (i32, i32) {
    %c0_i32 = arith.constant 0 : i32
    %c0_i32_0 = arith.constant 0 : i32
    %c0_i32_1 = arith.constant 0 : i32
    return %c0_i32, %c0_i32_0 : i32, i32
  }
  func.func @transform_2(%arg0: i32) -> (i32, i32) {
    %c0_i32 = arith.constant 0 : i32
    %c0_i32_0 = arith.constant 0 : i32
    %c0_i32_1 = arith.constant 0 : i32
    return %c0_i32, %c0_i32_0 : i32, i32
  }
  func.func @transform_3(%arg0: i32) -> (i32, i32) {
    %c0_i32 = arith.constant 0 : i32
    %c0_i32_0 = arith.constant 0 : i32
    %c0_i32_1 = arith.constant 0 : i32
    return %c0_i32, %c0_i32_0 : i32, i32
  }
  func.func @transform_4(%arg0: i32) -> (i32, i32) {
    %c0_i32 = arith.constant 0 : i32
    %c0_i32_0 = arith.constant 0 : i32
    %c0_i32_1 = arith.constant 0 : i32
    return %c0_i32, %c0_i32_0 : i32, i32
  }
  func.func @transform_5(%arg0: i32) -> (i32, i32) {
    %c0_i32 = arith.constant 0 : i32
    %c0_i32_0 = arith.constant 0 : i32
    return %c0_i32, %arg0 : i32, i32
  }
  func.func @transform_6(%arg0: i32) -> (i32, i32) {
    %c0_i32 = arith.constant 0 : i32
    %c0_i32_0 = arith.constant 0 : i32
    return %c0_i32, %arg0 : i32, i32
  }
  func.func @transform_7(%arg0: i32) -> (i32, i32, i32) {
    %c0_i32 = arith.constant 0 : i32
    %c0_i32_0 = arith.constant 0 : i32
    %c0_i32_1 = arith.constant 0 : i32
    return %arg0, %c0_i32, %c0_i32_0 : i32, i32, i32
  }
}

</mosaic_0001>

<bundles_post_ra>
// kernel: tpu_custom_call.1
= control target key start
LH: loop header
LB: loop body
LE: loop exit
PB: predicated region body
PF: predicated region fallthrough
CT: control target
= control target key end

     0   :  { %s5966_s0 = inlined_call_operand.hbm [shape: bf16[32,4608], index: 0, kind: input, shape index: {}]   ;;  %s5967_s1 = inlined_call_operand.vmem [shape: bf16[128,32], index: 1, kind: input, shape index: {}]   ;;  %s5968_s2 = inlined_call_operand.vmem [shape: f32[128,1], index: 2, kind: input, shape index: {}]   ;;  %s5969_s3 = inlined_call_operand.vmem [shape: f32[8,128], index: 3, kind: input, shape index: {}]   ;;  %s5970_s4 = inlined_call_operand.<no memory space> [shape: f32[1,1], index: 4, kind: input, shape index: {}]   ;;  %s5971_s5 = inlined_call_operand.vmem [shape: f32[1,4608], index: 5, kind: input, shape index: {}]   ;;  %s5972_s6 = inlined_call_operand.hbm [shape: s32[1,4608], index: 6, kind: output, shape index: {0}]   ;;  %s5973_s7 = inlined_call_operand.hbm [shape: f32[4,1,128], index: 7, kind: output, shape index: {1}]  }
   0x1   :  { %13 = sst [smem:[#allocation2]] %s5970_s4 }
   0x2   :  { %14 = vsyncpa [#allocation4], 0 }
   0x3   :  { %16 = vsyncpa [#allocation4 + $0x1], 0 }
   0x4   :  { %17 = vsyncpa [#allocation5], 0 }
   0x5   :  { %19 = vsyncpa [#allocation5 + $0x1], 0 }
   0x6   :  { %20 = vsyncpa [#allocation8], 0 }
   0x7   :  { %22 = vsyncpa [#allocation8 + $0x1], 0  ;;  %s4382_s26 = smov 0   ;;  %s4384_s27 = smov 0  }
   0x8   :  { %s4386_s28 = smov 0   ;;  %s4388_s29 = smov 0  }
   0x9 LB: > { %s4403_s4 = sadd.s32 4294967295, %s4327_s29   ;;  %s3177_s30 = sadd.s32 4294967294, %s4327_s29   ;;  %s4327_s29 = sphi %s4388_s29, %s6170_s29   ;;  %s4323_s28 = sphi %s4386_s28, %s6169_s28   ;;  %s4319_s27 = sphi %s4384_s27, %s6168_s27   ;;  %s4315_s26 = sphi %s4382_s26, %s6167_s26  }
   0xa   : > { %s4407_s8 = sadd.s32 1, %s4327_s29   ;;  %s35_s9 = sadd.s32 1, %s4323_s28 }
   0xb   : > { %s32_s10 = ssub.s32 %s4327_s29, %s4407_s8  ;;  %p42_p0 = scmp.ne.s32.totalorder %s4323_s28, %s4319_s27 }
   0xc   : > { %p33_p1 = scmp.eq.s32.totalorder %s32_s10, 0  ;;  %p43_p2 = scmp.eq.s32.totalorder %s4327_s29, 0 }
   0xd   : > { %p48_p3 = scmp.ne.s32.totalorder %s4319_s27, %s4315_s26  ;;  %p49_p4 = scmp.eq.s32.totalorder %s4403_s4, 0 }
   0xe   : > { %s4419_s11 = scalar_select %p33_p1, %s4323_s28, %s35_s9  }
   0xf   : > { %p44_p5 = por %p43_p2, %p42_p0  ;;  %p4421_p6 = por %p49_p4, %p48_p3 }
  0x10   : > { %p182_p7 = scmp.eq.s32.totalorder %s4403_s4, 3  ;;  %p188_p8 = scmp.eq.s32.totalorder %s3177_s30, 3 }
  0x11   : > { %s6007_s12 = scalar_select %p4421_p6, 1, 0 }
  0x12   : > { %p3533_p9 = scmp.lt.s32.totalorder %s4327_s29, 4  ;;  %p4427_p10 = por %p182_p7, %p42_p0 }
  0x13   : > { %p4431_p11 = por %p188_p8, %p48_p3  ;;  %s246_s15 = sand.u32 1, %s4323_s28  }
  0x14   : > { %s6008_s13 = scalar_select %p4427_p10, 1, 0 }
  0x15   : > { %s6009_s14 = scalar_select %p4431_p11, 1, 0 }
  0x16   : > { %s3425_s16 = smul.u32 576, %s4327_s29  ;;  %p4442_p12 = pnand %p3533_p9, %p44_p5 }
  0x17   : > { %s3509_s17 = smul.u32 144, %s246_s15  ;;  %s4449_s24 = scalar_lea.sflag [#allocation4], %s246_s15 }
  0x18   : > { %s4440_s20 = scalar_lea.hbm %s5966_s0, %s3425_s16  ;;  %p4207_p1 = pneg %p4442_p12 }
  0x19   : > { %s250_s22 = scalar_lea.vmem [#allocation3], %s3509_s17  ;;  %s4205_s25 = scalar_lea.hbm %s4440_s20, 2304 }
  0x1a   : > { %s257_s23 = sshll.u32 %s250_s22, 4  ;;  %p4206_p0 = scmp.ne.s32.totalorder %s4440_s20, %s4205_s25  ;;  %s4446_s23 = int_to_ptr.vmem [resolvable:$true] %s257_s23 }
  0x1b   : > { %s4210_s10 = scalar_lea.hbm %s5966_s0, 9216  ;;  %p4211_p4 = scmp.lt.s32.totalorder %s4440_s20, %s5966_s0 }
  0x1c   : > { %p4208_p2 = pnand %p4207_p1, %p4206_p0  ;;  %p4212_p5 = scmp.lt.s32.totalorder %s4210_s10, %s4205_s25 }
  0x1e   : > { %p4209_p3 = pneg %p4208_p2  ;;  %p4213_p7 = por %p4212_p5, %p4211_p4 }
  0x20   : > { %p4214_p8 = pnand %p4213_p7, %p4209_p3 }
  0x22   : > { %4217 = shalt.err (!%p4214_p8)
}
  0x23   : > { %s4218_s15 = scalar_lea.vmem %s4446_s23, 2304  ;;  %s4329_s17 = smov [#allocation3]  }
  0x24   : > { %p4219_p9 = scmp.ne.s32.totalorder %s4446_s23, %s4218_s15  ;;  %s4223_s19 = sshll.u32 %s4329_s17, 4  ;;  %s4224_s19 = int_to_ptr.vmem [resolvable:$false] %s4223_s19 }
  0x25   : > { %s4225_s22 = scalar_lea.vmem %s4224_s19, 4608  ;;  %p4226_p2 = scmp.lt.s32.totalorder %s4446_s23, %s4224_s19 }
  0x26   : > { %p4221_p13 = pnand %p4219_p9, %p4207_p1  ;;  %p4227_p11 = scmp.lt.s32.totalorder %s4225_s22, %s4218_s15 }
  0x28   : > { %p4222_p0 = pneg %p4221_p13  ;;  %p4228_p10 = por %p4227_p11, %p4226_p2 }
  0x2a   : > { %p4229_p6 = pnand %p4228_p10, %p4222_p0 }
  0x2c   : > { %4232 = shalt.err (!%p4229_p6)
}
  0x2d   : > { %s4330_s25 = smov 2304   ;;  %s4331_s30 = smov 576  }
  0x2e   : > { %s4332_s9 = smov 36   ;;  %p273_p13 = scmp.lt.s32.totalorder %s4327_s29, 5 }
  0x2f   : > { %3525 = dma.hbm_to_vmem [thread:$0]  (!%p4442_p12), %s4440_s20, 2304, %s4446_s23, %s4449_s24, %s4330_s25, %s4331_s30, %s4332_s9  }
  0x30   : > { %p6011_p1 = scmp.ge.s32.totalorder %s4327_s29, 1 }
  0x32   : > { %p274_p3 = pnand %p6011_p1, %p273_p13 }
  0x34   : > { %277 = sbr.rel (%p274_p3) target bundleno = 982 (0x3d6), region = 44 }
  0x39   : > { %s4474_s10 = sand.u32 1, %s4319_s27   ;;  %p6012_p6 = scmp.ne.s32.totalorder %s6007_s12, 0 }
  0x3a   : > { %s3510_s16 = smul.u32 144, %s4474_s10  ;;  %s280_s18 = scalar_lea.sflag [#allocation4], %s4474_s10 }
  0x3c   : > { %s4478_s15 = scalar_lea.vmem [#allocation3], %s3510_s16 }
  0x3d   : > { %4302 = dma.done.wait (%p6012_p6), %s280_s18, 2304  }
  0x3e   : > { %4304 = vsyncadd (%p6012_p6), %s280_s18, 4294964992  ;;  %v5976_v0 = vmov 0   ;;  %v3576_v1 = vld [vmem:[%s4478_s15 + $0x4c] ss:$36 sps:$4 sm:$0xff]   ;;  %v3578_v2 = vld [vmem:[%s4478_s15 + $0x54] ss:$36 sps:$4 sm:$0xff]  }
  0x3f   : > { %651 = vmatprep.mubr.bf16.mxu0 %v5976_v0  ;;  %764 = vmatprep.mubr.bf16.mxu1 %v5976_v0  ;;  %v3580_v3 = vld [vmem:[%s4478_s15 + $0x48] ss:$36 sps:$4 sm:$0xff]   ;;  %v3581_v4 = vld [vmem:[%s4478_s15 + $0x50] ss:$36 sps:$4 sm:$0xff]   ;;  %v3586_v7 = vld [vmem:[%s4478_s15] ss:$36 sps:$4 sm:$0xff]  }
  0x40   : > { %3575 = vset.pattern.permute.xlu1 %v5976_v0  ;;  %3574 = vset.pattern.permute.xlu0 %v5976_v0  ;;  %v3582_v5 = vld [vmem:[%s4478_s15 + $0x4] ss:$36 sps:$4 sm:$0xff]   ;;  %v3584_v6 = vld [vmem:[%s4478_s15 + $0xc] ss:$36 sps:$4 sm:$0xff]   ;;  %v3591_v10 = vld [vmem:[%s4478_s15 + $0x5c] ss:$36 sps:$4 sm:$0xff]  }
  0x41   : > { %631 = vmatprep.subr.bf16.mxu0 %v3576_v1  ;;  %744 = vmatprep.subr.bf16.mxu1 %v3578_v2  ;;  %v3587_v8 = vld [vmem:[%s4478_s15 + $0x8] ss:$36 sps:$4 sm:$0xff]   ;;  %v4499_v9 = vld [vmem:[%s5967_s1] sm:$0xff]   ;;  %vm594_vm0 = vcmask 261120   ;;  %v3589_v11 = vld [vmem:[%s4478_s15 + $0x58] ss:$36 sps:$4 sm:$0xff]  }
  0x42   : > { %632 = vmatpush1.bf16.msra.mxu0 %v3580_v3  ;;  %745 = vmatpush1.bf16.msra.mxu1 %v3581_v4  ;;  %v3595_v12 = vld [vmem:[%s4478_s15 + $0x64] ss:$36 sps:$4 sm:$0xff]   ;;  %v3599_v14 = vld [vmem:[%s4478_s15 + $0x10] ss:$36 sps:$4 sm:$0xff]   ;;  %v3605_v18 = vld [vmem:[%s4478_s15 + $0x1c] ss:$36 sps:$4 sm:$0xff]  }
  0x43   : > { %633 = vmatprep.subr.bf16.mxu0 %v3582_v5  ;;  %746 = vmatprep.subr.bf16.mxu1 %v3584_v6  ;;  %v3593_v13 = vld [vmem:[%s4478_s15 + $0x60] ss:$36 sps:$4 sm:$0xff]   ;;  %v3601_v15 = vld [vmem:[%s4478_s15 + $0x14] ss:$36 sps:$4 sm:$0xff]   ;;  %v3608_v26 = vld [vmem:[%s4478_s15 + $0x68] ss:$36 sps:$4 sm:$0xff]  }
  0x44   : > { %v4516_v16 = vld [vmem:[%s5967_s1 + $0x8] sm:$0xff]   ;;  %v381_v20 = vld [vmem:[%s5968_s2 + $0x78] sm:$0xff]  ;;  %v378_v21 = vld [vmem:[%s5968_s2 + $0x60] sm:$0xff]  ;;  %vm4335_vm1 = vmmov 0   ;;  %s323_s18 = smul.u32 9, %s4403_s4  ;;  %s2387_s12 = sld [smem:[#allocation2]] }
  0x45   : > { %v379_v17 = vld [vmem:[%s5968_s2 + $0x68] sm:$0xff]  ;;  %459 = vperm.xlu0 %3574, %v381_v20   ;;  %v380_v22 = vld [vmem:[%s5968_s2 + $0x70] sm:$0xff]  ;;  %v377_v25 = vld [vmem:[%s5968_s2 + $0x58] sm:$0xff]  ;;  %s2738_s24 = smul.u32 1152, %s4403_s4  ;;  %s3039_s16 = scalar_lea.sflag [#allocation5], %s4474_s10 }
  0x46   : > { %634 = vmatpush1.bf16.msra.mxu0 %v3586_v7  ;;  %747 = vmatpush1.bf16.msra.mxu1 %v3587_v8  ;;  %v3603_v19 = vld [vmem:[%s4478_s15 + $0x18] ss:$36 sps:$4 sm:$0xff]   ;;  %v4541_v23 = vld [vmem:[%s5967_s1 + $0x10] sm:$0xff]   ;;  %v374_v27 = vld [vmem:[%s5968_s2 + $0x40] sm:$0xff]  ;;  %p324_p10 = scmp.lt.s32.totalorder %s323_s18, 35  ;;  %s3511_s17 = smul.u32 9, %s4474_s10 }
  0x47   : > { %857 = vmatprep.subr.bf16.mxu0 %v3591_v10  ;;  %970 = vmatprep.subr.bf16.mxu1 %v3595_v12  ;;  %v376_v24 = vld [vmem:[%s5968_s2 + $0x50] sm:$0xff]  ;;  %v375_v28 = vld [vmem:[%s5968_s2 + $0x48] sm:$0xff]  ;;  %v4568_v30 = vld [vmem:[%s5967_s1 + $0x18] sm:$0xff]   ;;  %s3426_s22 = smul.u32 144, %s4403_s4  ;;  %p6165_p12 = scmp.ne.s32.totalorder %s6008_s13, 0 }
  0x48   : > { %449 = vperm.xlu1 %3575, %v379_v17   ;;  %v372_v29 = vld [vmem:[%s5968_s2 + $0x30] sm:$0xff]  ;;  %v373_v31 = vld [vmem:[%s5968_s2 + $0x38] sm:$0xff]  ;;  %v370_v32 = vld [vmem:[%s5968_s2 + $0x20] sm:$0xff]  ;;  %s6172_s18 = smov (!%p324_p10, %s323_s18), 35  ;;  %s5681_s19 = scalar_lea.vmem [#allocation6], %s3511_s17 }
  0x49   : > { %3208 = vmatmul.mubr.msk.bf16.vlgmr.msra.gmra.mxu0 %vm594_vm0, %v4499_v9  ;;  %3216 = vmatmul.mubr.msk.bf16.vlgmr.msra.gmra.mxu1 %vm594_vm0, %v4499_v9  ;;  %v371_v33 = vld [vmem:[%s5968_s2 + $0x28] sm:$0xff]  ;;  %v368_v34 = vld [vmem:[%s5968_s2 + $0x10] sm:$0xff]  ;;  %v4591_v35 = vld [vmem:[%s5967_s1 + $0x20] sm:$0xff]   ;;  %s5536_s23 = scalar_lea.vmem %s5971_s5, %s6172_s18  ;;  %s3057_s25 = sshll.u32 %s5681_s19, 4  ;;  %s3058_s25 = int_to_ptr.vmem [resolvable:$true] %s3057_s25 }
  0x4a   : > { %858 = vmatpush1.bf16.msra.mxu0 %v3589_v11  ;;  %661 = vmatprep.mubr.bf16.mxu0 %v5976_v0  ;;  %v369_v36 = vld [vmem:[%s5968_s2 + $0x18] sm:$0xff]  ;;  %v366_v37 = vld [vmem:[%s5968_s2] sm:$0xff]  ;;  %v367_v38 = vld [vmem:[%s5968_s2 + $0x8] sm:$0xff]  ;;  %s3055_s9 = scalar_lea.hbm %s5972_s6, %s3426_s22  ;;  %s4233_s18 = scalar_lea.vmem %s3058_s25, 144 }
  0x4b   : > { %774 = vmatprep.mubr.bf16.mxu1 %v5976_v0  ;;  %971 = vmatpush1.bf16.msra.mxu1 %v3593_v13  ;;  %v3602_v39 = vld [vmem:[%s5967_s1 + $0x28] sm:$0xff]   ;;  %v3606_v40 = vld [vmem:[%s5967_s1 + $0x30] sm:$0xff]   ;;  %v3607_v41 = vld [vmem:[%s5967_s1 + $0x38] sm:$0xff]   ;;  %p4234_p11 = scmp.ne.s32.totalorder %s3058_s25, %s4233_s18 }
  0x4c   : > { %859 = vmatprep.subr.bf16.mxu0 %v3601_v15  ;;  %972 = vmatprep.subr.bf16.mxu1 %v3605_v18  ;;  %v3609_v42 = vld [vmem:[%s4478_s15 + $0x20] ss:$36 sps:$4 sm:$0xff]  }
  0x4d   : > { %444 = vperm.xlu1 %3575, %v378_v21   ;;  %454 = vperm.xlu0 %3574, %v380_v22   ;;  %p4235_p4 = pnand %p4234_p11, %p6165_p12 }
  0x4e   : > { %860 = vmatpush1.bf16.msra.mxu0 %v3599_v14 }
  0x4f   : > { %973 = vmatpush1.bf16.msra.mxu1 %v3603_v19  ;;  %3454 = vmatprep.subr.bf16.mxu0 %v3608_v26  ;;  %p4236_p5 = pneg %p4235_p4 }
  0x51   : > { %3209 = vmatmul.mubr.msk.bf16.gmra.mxu0 %vm594_vm0, %v4516_v16  ;;  %3217 = vmatmul.mubr.msk.bf16.gmra.mxu1 %vm594_vm0, %v4516_v16 }
  0x52   : > { %671 = vmatprep.mubr.bf16.mxu0 %v5976_v0  ;;  %784 = vmatprep.mubr.bf16.mxu1 %v5976_v0 }
  0x53   : > { %434 = vperm.xlu1 %3575, %v376_v24   ;;  %439 = vperm.xlu0 %3574, %v377_v25  }
  0x57   : > { %424 = vperm.xlu1 %3575, %v374_v27   ;;  %429 = vperm.xlu0 %3574, %v375_v28  }
  0x59   : > { %3210 = vmatmul.mubr.msk.bf16.gmra.mxu0 %vm594_vm0, %v4541_v23  ;;  %3218 = vmatmul.mubr.msk.bf16.gmra.mxu1 %vm594_vm0, %v4541_v23 }
  0x5a   : > { %681 = vmatprep.mubr.bf16.mxu0 %v5976_v0  ;;  %794 = vmatprep.mubr.bf16.mxu1 %v5976_v0 }
  0x5b   : > { %414 = vperm.xlu1 %3575, %v372_v29   ;;  %419 = vperm.xlu0 %3574, %v373_v31  }
  0x5f   : > { %404 = vperm.xlu1 %3575, %v370_v32   ;;  %409 = vperm.xlu0 %3574, %v371_v33  }
  0x61   : > { %3211 = vmatmul.mubr.msk.bf16.gmra.mxu0 %vm594_vm0, %v4568_v30  ;;  %3219 = vmatmul.mubr.msk.bf16.gmra.mxu1 %vm594_vm0, %v4568_v30 }
  0x62   : > { %691 = vmatprep.mubr.bf16.mxu0 %v5976_v0  ;;  %804 = vmatprep.mubr.bf16.mxu1 %v5976_v0 }
  0x63   : > { %394 = vperm.xlu1 %3575, %v368_v34   ;;  %399 = vperm.xlu0 %3574, %v369_v36  }
  0x67   : > { %384 = vperm.xlu1 %3575, %v366_v37   ;;  %389 = vperm.xlu0 %3574, %v367_v38  }
  0x69   : > { %3212 = vmatmul.mubr.msk.bf16.gmra.mxu0 %vm594_vm0, %v4591_v35  ;;  %3220 = vmatmul.mubr.msk.bf16.gmra.mxu1 %vm594_vm0, %v4591_v35 }
  0x6a   : > { %701 = vmatprep.mubr.bf16.mxu0 %v5976_v0  ;;  %814 = vmatprep.mubr.bf16.mxu1 %v5976_v0 }
  0x71   : > { %3213 = vmatmul.mubr.msk.bf16.gmra.mxu0 %vm594_vm0, %v3602_v39  ;;  %3221 = vmatmul.mubr.msk.bf16.gmra.mxu1 %vm594_vm0, %v3602_v39 }
  0x72   : > { %711 = vmatprep.mubr.bf16.mxu0 %v5976_v0  ;;  %824 = vmatprep.mubr.bf16.mxu1 %v5976_v0 }
  0x79   : > { %3214 = vmatmul.mubr.msk.bf16.gmra.mxu0 %vm594_vm0, %v3606_v40  ;;  %3222 = vmatmul.mubr.msk.bf16.gmra.mxu1 %vm594_vm0, %v3606_v40 }
  0x7a   : > { %721 = vmatprep.mubr.bf16.mxu0 %v5976_v0  ;;  %834 = vmatprep.mubr.bf16.mxu1 %v5976_v0 }
  0x81   : > { %3215 = vmatmul.mubr.msk.bf16.gmra.mxu0 %vm594_vm0, %v3607_v41  ;;  %3223 = vmatmul.mubr.msk.bf16.gmra.mxu1 %vm594_vm0, %v3607_v41 }
  0x82   : > { %877 = vmatprep.mubr.bf16.mxu0 %v5976_v0  ;;  %990 = vmatprep.mubr.bf16.mxu1 %v5976_v0 }
  0x89   : > { %3224 = vmatmul.mubr.msk.bf16.vlgmr.msra.gmra.mxu0 %vm594_vm0, %v4499_v9  ;;  %3232 = vmatmul.mubr.msk.bf16.vlgmr.msra.gmra.mxu1 %vm594_vm0, %v4499_v9 }
  0x8a   : > { %3455 = vmatpush3.bf16.msra.mxu0 %v3608_v26  ;;  %887 = vmatprep.mubr.bf16.mxu0 %v5976_v0 }
  0x8b   : > { %1000 = vmatprep.mubr.bf16.mxu1 %v5976_v0  ;;  %3456 = vmatprep.subr.bf16.mxu0 %v3609_v42 }
  0x8e   : > { %3457 = vmatpush3.bf16.msra.mxu0 %v3609_v42 }
  0x91   : > { %3225 = vmatmul.mubr.msk.bf16.gmra.mxu0 %vm594_vm0, %v4516_v16  ;;  %3233 = vmatmul.mubr.msk.bf16.gmra.mxu1 %vm594_vm0, %v4516_v16 }
  0x92   : > { %897 = vmatprep.mubr.bf16.mxu0 %v5976_v0  ;;  %1010 = vmatprep.mubr.bf16.mxu1 %v5976_v0 }
  0x99   : > { %3226 = vmatmul.mubr.msk.bf16.gmra.mxu0 %vm594_vm0, %v4541_v23  ;;  %3234 = vmatmul.mubr.msk.bf16.gmra.mxu1 %vm594_vm0, %v4541_v23 }
  0x9a   : > { %907 = vmatprep.mubr.bf16.mxu0 %v5976_v0  ;;  %1020 = vmatprep.mubr.bf16.mxu1 %v5976_v0 }
  0xa1   : > { %3227 = vmatmul.mubr.msk.bf16.gmra.mxu0 %vm594_vm0, %v4568_v30  ;;  %3235 = vmatmul.mubr.msk.bf16.gmra.mxu1 %vm594_vm0, %v4568_v30 }
  0xa2   : > { %917 = vmatprep.mubr.bf16.mxu0 %v5976_v0  ;;  %1030 = vmatprep.mubr.bf16.mxu1 %v5976_v0 }
  0xa9   : > { %3228 = vmatmul.mubr.msk.bf16.gmra.mxu0 %vm594_vm0, %v4591_v35  ;;  %3236 = vmatmul.mubr.msk.bf16.gmra.mxu1 %vm594_vm0, %v4591_v35 }
  0xaa   : > { %927 = vmatprep.mubr.bf16.mxu0 %v5976_v0  ;;  %1040 = vmatprep.mubr.bf16.mxu1 %v5976_v0 }
  0xb1   : > { %3229 = vmatmul.mubr.msk.bf16.gmra.mxu0 %vm594_vm0, %v3602_v39  ;;  %3237 = vmatmul.mubr.msk.bf16.gmra.mxu1 %vm594_vm0, %v3602_v39 }
  0xb2   : > { %937 = vmatprep.mubr.bf16.mxu0 %v5976_v0  ;;  %1050 = vmatprep.mubr.bf16.mxu1 %v5976_v0 }
  0xb9   : > { %3230 = vmatmul.mubr.msk.bf16.gmra.mxu0 %vm594_vm0, %v3606_v40  ;;  %3238 = vmatmul.mubr.msk.bf16.gmra.mxu1 %vm594_vm0, %v3606_v40 }
  0xba   : > { %947 = vmatprep.mubr.bf16.mxu0 %v5976_v0  ;;  %1060 = vmatprep.mubr.bf16.mxu1 %v5976_v0 }
  0xc0   : > { %v4685_v44 = vpop.permute.xlu0 %459 }
  0xc1   : > { %3231 = vmatmul.mubr.msk.bf16.gmra.mxu0 %vm594_vm0, %v3607_v41  ;;  %3239 = vmatmul.mubr.msk.bf16.gmra.mxu1 %vm594_vm0, %v3607_v41  ;;  %6014 = vst [vmem:[#allocation13_spill] sm:$0xff] %v4685_v44 }
  0xc2   : > { %3458 = vmatprep.mubr.msk.bf16.mxu0 %vm594_vm0, %v4499_v9 }
  0xc3   : > { %v4683_v43 = vpop.permute.xlu1 %449 }
  0xc4   : > { %6013 = vst [vmem:[#allocation12_spill] sm:$0xff] %v4683_v43 }
  0xc8   : > { %v4687_v45 = vpop.permute.xlu1 %444  ;;  %v4689_v46 = vpop.permute.xlu0 %454 }
  0xc9   : > { %3459 = vmatmul.mubr.msk.bf16.vlgmr.msra.gmra.mxu0 %vm594_vm0, %v4516_v16  ;;  %6015 = vst [vmem:[#allocation14_spill] sm:$0xff] %v4687_v45  ;;  %6016 = vst [vmem:[#allocation15_spill] sm:$0xff] %v4689_v46 }
  0xca   : > { %3462 = vmatprep.mubr.msk.bf16.mxu0 %vm594_vm0, %v4541_v23 }
  0xce   : > { %v4691_v47 = vpop.permute.xlu1 %434  ;;  %v4693_v48 = vpop.permute.xlu0 %439 }
  0xcf   : > { %6017 = vst [vmem:[#allocation16_spill] sm:$0xff] %v4691_v47  ;;  %6018 = vst [vmem:[#allocation17_spill] sm:$0xff] %v4693_v48 }
  0xd1   : > { %3463 = vmatmul.mubr.msk.bf16.gmra.mxu0 %vm594_vm0, %v4568_v30 }
  0xd2   : > { %3466 = vmatprep.mubr.msk.bf16.mxu0 %vm594_vm0, %v4591_v35  ;;  %v4695_v49 = vpop.permute.xlu1 %424  ;;  %v4697_v50 = vpop.permute.xlu0 %429 }
  0xd3   : > { %6019 = vst [vmem:[#allocation18_spill] sm:$0xff] %v4695_v49  ;;  %6020 = vst [vmem:[#allocation19_spill] sm:$0xff] %v4697_v50 }
  0xd6   : > { %v4699_v51 = vpop.permute.xlu1 %414  ;;  %v4701_v52 = vpop.permute.xlu0 %419 }
  0xd7   : > { %6021 = vst [vmem:[#allocation20_spill] sm:$0xff] %v4699_v51  ;;  %6022 = vst [vmem:[#allocation21_spill] sm:$0xff] %v4701_v52 }
  0xd9   : > { %3467 = vmatmul.mubr.msk.bf16.gmra.mxu0 %vm594_vm0, %v3602_v39 }
  0xda   : > { %3470 = vmatprep.mubr.msk.bf16.mxu0 %vm594_vm0, %v3606_v40  ;;  %v4703_v53 = vpop.permute.xlu1 %404  ;;  %v4705_v58 = vpop.permute.xlu0 %409 }
  0xdb   : > { %6023 = vst [vmem:[#allocation22_spill] sm:$0xff] %v4703_v53  ;;  %6024 = vst [vmem:[#allocation23_spill] sm:$0xff] %v4705_v58 }
  0xde   : > { %v4707_v61 = vpop.permute.xlu1 %394  ;;  %v4709_v3 = vpop.permute.xlu0 %399 }
  0xdf   : > { %6025 = vst [vmem:[#allocation24_spill] sm:$0xff] %v4707_v61 }
  0xe1   : > { %3471 = vmatmul.mubr.msk.bf16.gmra.mxu0 %vm594_vm0, %v3607_v41 }
  0xe2   : > { %v4711_v6 = vpop.permute.xlu1 %384  ;;  %v4715_v13 = vpop.permute.xlu0 %389 }
  0xe3   : > { %6026 = vst [vmem:[#allocation25_spill] sm:$0xff] %v4711_v6  ;;  %6027 = vst [vmem:[#allocation26_spill] sm:$0xff] %v4715_v13 }
 0x109   : > { %v653_v54 = vpop.f32.mrf.mxu0  ;;  %v766_v55 = vpop.f32.mrf.mxu1 }
 0x10a   : > { %v654_v9 = vadd.f32 %v653_v54, %v4711_v6  ;;  %v767_v12 = vadd.f32 %v766_v55, %v4711_v6 }
 0x10b   : > { %v655_v56 = vpop.f32.mrf.mxu0  ;;  %v768_v57 = vpop.f32.mrf.mxu1 }
 0x10c   : > { %v656_v14 = vadd.f32 %v655_v56, %v4711_v6  ;;  %v769_v17 = vadd.f32 %v768_v57, %v4711_v6  ;;  %v3248_v18 = vmul.f32 -1.442695, %v654_v9  ;;  %v3250_v22 = vmul.f32 -1.442695, %v767_v12 }
 0x10d   : > { %v657_v59 = vpop.f32.mrf.mxu0  ;;  %v770_v60 = vpop.f32.mrf.mxu1 }
 0x10e   : > { %v658_v19 = vadd.f32 %v657_v59, %v4715_v13  ;;  %v3249_v24 = vmul.f32 -1.442695, %v656_v14  ;;  %v3251_v27 = vmul.f32 -1.442695, %v769_v17  ;;  %3610 = vpow2.f32 %v3248_v18 }
 0x10f   : > { %v659_v62 = vpop.f32.mrf.mxu0  ;;  %v772_v63 = vpop.f32.mrf.mxu1  ;;  %3612 = vpow2.f32 %v3250_v22  ;;  %v771_v37 = vadd.f32 %v770_v60, %v4715_v13 }
 0x110   : > { %v660_v23 = vadd.f32 %v659_v62, %v4715_v13  ;;  %v3257_v30 = vmul.f32 -1.442695, %v658_v19  ;;  %3614 = vpow2.f32 %v3249_v24  ;;  %v773_v39 = vadd.f32 %v772_v63, %v4715_v13 }
 0x111   : > { %v663_v1 = vpop.f32.mrf.mxu0  ;;  %v776_v2 = vpop.f32.mrf.mxu1  ;;  %3616 = vpow2.f32 %v3251_v27  ;;  %v3259_v55 = vmul.f32 -1.442695, %v771_v37 }
 0x112   : > { %v664_v25 = vadd.f32 %v663_v1, %v4707_v61  ;;  %v3258_v32 = vmul.f32 -1.442695, %v660_v23  ;;  %3618 = vpow2.f32 %v3257_v30  ;;  %v777_v40 = vadd.f32 %v776_v2, %v4707_v61 }
 0x113   : > { %v665_v4 = vpop.f32.mrf.mxu0  ;;  %v778_v5 = vpop.f32.mrf.mxu1  ;;  %v3260_v59 = vmul.f32 -1.442695, %v773_v39 }
 0x114   : > { %v666_v28 = vadd.f32 %v665_v4, %v4707_v61  ;;  %v3266_v33 = vmul.f32 -1.442695, %v664_v25  ;;  %3620 = vpow2.f32 %v3258_v32  ;;  %v779_v42 = vadd.f32 %v778_v5, %v4707_v61 }
 0x115   : > { %v667_v7 = vpop.f32.mrf.mxu0  ;;  %v780_v8 = vpop.f32.mrf.mxu1  ;;  %v3268_v62 = vmul.f32 -1.442695, %v777_v40 }
 0x116   : > { %v3267_v35 = vmul.f32 -1.442695, %v666_v28  ;;  %3622 = vpow2.f32 %v3266_v33  ;;  %v668_v56 = vadd.f32 %v667_v7, %v4709_v3  ;;  %v781_v60 = vadd.f32 %v780_v8, %v4709_v3 }
 0x117   : > { %v669_v10 = vpop.f32.mrf.mxu0  ;;  %v782_v11 = vpop.f32.mrf.mxu1  ;;  %v3269_v2 = vmul.f32 -1.442695, %v779_v42 }
 0x118   : > { %3624 = vpow2.f32 %v3267_v35  ;;  %v670_v63 = vadd.f32 %v669_v10, %v4709_v3  ;;  %v783_v4 = vadd.f32 %v782_v11, %v4709_v3  ;;  %v3275_v5 = vmul.f32 -1.442695, %v668_v56 }
 0x119   : > { %v4718_v15 = vpop.f32.mrf.mxu0  ;;  %v4720_v16 = vpop.f32.mrf.mxu1  ;;  %3626 = vpow2.f32 %v3259_v55  ;;  %v3277_v14 = vmul.f32 -1.442695, %v781_v60 }
 0x11a   : > { %3628 = vpow2.f32 %v3260_v59  ;;  %v3276_v8 = vmul.f32 -1.442695, %v670_v63  ;;  %v3278_v19 = vmul.f32 -1.442695, %v783_v4  ;;  %v674_v42 = vadd.f32 %v4718_v15, %v4703_v53 }
 0x11b   : > { %v4724_v20 = vpop.f32.mrf.mxu0  ;;  %v4726_v21 = vpop.f32.mrf.mxu1  ;;  %3630 = vpow2.f32 %v3268_v62  ;;  %v787_v59 = vadd.f32 %v4720_v16, %v4703_v53 }
 0x11c   : > { %v3611_v7 = vpop.eup %3610  ;;  %3632 = vpow2.f32 %v3269_v2  ;;  %v676_v62 = vadd.f32 %v4724_v20, %v4703_v53  ;;  %v789_v4 = vadd.f32 %v4726_v21, %v4703_v53 }
 0x11d   : > { %v4730_v26 = vpop.f32.mrf.mxu0  ;;  %v4733_v29 = vpop.f32.mrf.mxu1  ;;  %v1600_v23 = vadd.f32 1.0, %v3611_v7  ;;  %3634 = vpow2.f32 %v3275_v5  ;;  %v3284_v5 = vmul.f32 -1.442695, %v674_v42  ;;  %v3286_v20 = vmul.f32 -1.442695, %v787_v59 }
 0x11e   : > { %v3613_v17 = vpop.eup %3612  ;;  %3636 = vpow2.f32 %v3277_v14  ;;  %v678_v7 = vadd.f32 %v4730_v26, %v4705_v58  ;;  %v3285_v21 = vmul.f32 -1.442695, %v676_v62  ;;  %v3287_v26 = vmul.f32 -1.442695, %v789_v4 }
 0x11f   : > { %v4735_v31 = vpop.f32.mrf.mxu0  ;;  %v4739_v36 = vpop.f32.mrf.mxu1  ;;  %v1602_v27 = vadd.f32 1.0, %v3613_v17  ;;  %3638 = vpow2.f32 %v3276_v8  ;;  %v791_v17 = vadd.f32 %v4733_v29, %v4705_v58 }
 0x120   : > { %v3615_v10 = vpop.eup %3614  ;;  %3640 = vpow2.f32 %v3278_v19  ;;  %v3293_v29 = vmul.f32 -1.442695, %v678_v7 }
 0x121   : > { %v4737_v34 = vpop.f32.mrf.mxu0  ;;  %v4749_v54 = vpop.f32.mrf.mxu1  ;;  %v1601_v30 = vadd.f32 1.0, %v3615_v10  ;;  %3642 = vrcp.f32 %v1600_v23  ;;  %v680_v10 = vadd.f32 %v4735_v31, %v4705_v58  ;;  %v793_v23 = vadd.f32 %v4739_v36, %v4705_v58 }
 0x122   : > { %v3617_v11 = vpop.eup %3616  ;;  %3644 = vrcp.f32 %v1602_v27 }
 0x123   : > { %v4742_v38 = vpop.f32.mrf.mxu0  ;;  %v4759_v9 = vpop.f32.mrf.mxu1  ;;  %v1603_v35 = vadd.f32 1.0, %v3617_v11  ;;  %3646 = vrcp.f32 %v1601_v30  ;;  %v3294_v36 = vmul.f32 -1.442695, %v680_v10  ;;  %v3296_v42 = vmul.f32 -1.442695, %v793_v23 }
 0x124   : > { %v3619_v25 = vpop.eup %3618 }
 0x125   : > { %v4746_v41 = vpop.f32.mrf.mxu0  ;;  %v4765_v22 = vpop.f32.mrf.mxu1  ;;  %v1609_v40 = vadd.f32 1.0, %v3619_v25  ;;  %3648 = vrcp.f32 %v1603_v35  ;;  %v797_v35 = vadd.f32 %v4749_v54, %v4699_v51 }
 0x126   : > { %v3621_v28 = vpop.eup %3620  ;;  %v688_v23 = vadd.f32 %v4746_v41, %v4701_v52 }
 0x127   : > { %v4752_v57 = vpop.f32.mrf.mxu0  ;;  %v3623_v33 = vpop.eup %3622  ;;  %v1610_v56 = vadd.f32 1.0, %v3621_v28  ;;  %3650 = vrcp.f32 %v1609_v40  ;;  %v684_v28 = vadd.f32 %v4737_v34, %v4699_v51 }
 0x128   : > { %v4771_v37 = vpop.f32.mrf.mxu1  ;;  %v3625_v39 = vpop.eup %3624  ;;  %v1618_v60 = vadd.f32 1.0, %v3623_v33  ;;  %v3295_v33 = vmul.f32 -1.442695, %v791_v17  ;;  %v799_v17 = vadd.f32 %v4759_v9, %v4699_v51 }
 0x129   : > { %v4756_v1 = vpop.f32.mrf.mxu0  ;;  %v1619_v2 = vadd.f32 1.0, %v3625_v39  ;;  %v4791_v14 = vpop.eup %3626  ;;  %3652 = vrcp.f32 %v1610_v56 }
 0x12a   : > { %v4785_v15 = vpop.f32.mrf.mxu1  ;;  %v4795_v8 = vpop.eup %3628  ;;  %3654 = vrcp.f32 %v1618_v60  ;;  %v3302_v60 = vmul.f32 -1.442695, %v684_v28  ;;  %v3305_v41 = vmul.f32 -1.442695, %v799_v17 }
 0x12b   : > { %v4761_v12 = vpop.f32.mrf.mxu0  ;;  %v4801_v11 = vpop.eup %3630  ;;  %3656 = vrcp.f32 %v1619_v2  ;;  %v3304_v2 = vmul.f32 -1.442695, %v797_v35  ;;  %v801_v35 = vadd.f32 %v4765_v22, %v4701_v52 }
 0x12c   : > { %v4805_v25 = vpop.f32.mrf.mxu1  ;;  %v4807_v27 = vpop.eup %3632  ;;  %3658 = vpow2.f32 %v3284_v5  ;;  %v686_v5 = vadd.f32 %v4742_v38, %v4699_v51 }
 0x12d   : > { %v4763_v18 = vpop.f32.mrf.mxu0  ;;  %v3635_v31 = vpop.eup %3634  ;;  %3660 = vpow2.f32 %v3286_v20  ;;  %v3313_v22 = vmul.f32 -1.442695, %v801_v35 }
 0x12e   : > { %v3637_v39 = vpop.eup %3636  ;;  %3662 = vpow2.f32 %v3285_v21  ;;  %v4815_v56 = vpop.f32.mrf.mxu1  ;;  %v1627_v54 = vadd.f32 1.0, %v3635_v31  ;;  %v690_v31 = vadd.f32 %v4752_v57, %v4701_v52  ;;  %v3303_v9 = vmul.f32 -1.442695, %v686_v5 }
 0x12f   : > { %v4767_v24 = vpop.f32.mrf.mxu0  ;;  %v3639_v40 = vpop.eup %3638  ;;  %3664 = vpow2.f32 %v3287_v26  ;;  %v1629_v20 = vadd.f32 1.0, %v3637_v39  ;;  %v3311_v57 = vmul.f32 -1.442695, %v688_v23 }
 0x130   : > { %v3641_v59 = vpop.eup %3640  ;;  %3666 = vpow2.f32 %v3293_v29  ;;  %v4829_v21 = vpop.f32.mrf.mxu1  ;;  %v1628_v26 = vadd.f32 1.0, %v3639_v40 }
 0x131   : > { %v4769_v32 = vpop.f32.mrf.mxu0  ;;  %v4819_v62 = vpop.eup %3642  ;;  %3668 = vpow2.f32 %v3295_v33  ;;  %v1630_v38 = vadd.f32 1.0, %v3641_v59 }
 0x132   : > { %6028 = vst [vmem:[#allocation27_spill] sm:$0xff] %v4819_v62  ;;  %v4821_v4 = vpop.eup %3644  ;;  %3670 = vpow2.f32 %v3294_v36  ;;  %v803_v36 = vadd.f32 %v4771_v37, %v4701_v52  ;;  %v4849_v40 = vpop.f32.mrf.mxu1 }
 0x133   : > { %v4775_v55 = vpop.f32.mrf.mxu0  ;;  %6029 = vst [vmem:[#allocation28_spill] sm:$0xff] %v4821_v4  ;;  %v4825_v7 = vpop.eup %3646  ;;  %3672 = vpow2.f32 %v3296_v42 }
 0x134   : > { %6030 = vst [vmem:[#allocation29_spill] sm:$0xff] %v4825_v7  ;;  %v4831_v10 = vpop.eup %3648  ;;  %3674 = vpow2.f32 %v3302_v60  ;;  %v4855_v17 = vpop.f32.mrf.mxu1 }
 0x135   : > { %v4781_v63 = vpop.f32.mrf.mxu0  ;;  %6031 = vst [vmem:[#allocation30_spill] sm:$0xff] %v4831_v10  ;;  %v4837_v28 = vpop.eup %3650  ;;  %3676 = vpow2.f32 %v3304_v2  ;;  %v3312_v2 = vmul.f32 -1.442695, %v690_v31 }
 0x136   : > { %6032 = vst [vmem:[#allocation31_spill] sm:$0xff] %v4837_v28  ;;  %v4841_v33 = vpop.eup %3652  ;;  %3678 = vrcp.f32 %v1627_v54 }
 0x137   : > { %v4789_v16 = vpop.f32.mrf.mxu0  ;;  %6033 = vst [vmem:[#allocation32_spill] sm:$0xff] %v4841_v33  ;;  %v4845_v39 = vpop.eup %3654  ;;  %3680 = vrcp.f32 %v1629_v20  ;;  %v3314_v20 = vmul.f32 -1.442695, %v803_v36 }
 0x138   : > { %6034 = vst [vmem:[#allocation33_spill] sm:$0xff] %v4845_v39  ;;  %v4851_v42 = vpop.eup %3656  ;;  %3682 = vrcp.f32 %v1628_v26 }
 0x139   : > { %v4799_v19 = vpop.f32.mrf.mxu0  ;;  %6035 = vst [vmem:[#allocation34_spill] sm:$0xff] %v4851_v42  ;;  %v3659_v60 = vpop.eup %3658  ;;  %3684 = vrcp.f32 %v1630_v38 }
 0x13a   : > { %v3661_v54 = vpop.eup %3660  ;;  %3686 = vpow2.f32 %v3303_v9  ;;  %v1636_v0 = vadd.f32 1.0, %v3659_v60  ;;  %v4859_v9 = vpop.f32.mrf.mxu1 }
 0x13b   : > { %v4811_v30 = vpop.f32.mrf.mxu0  ;;  %v3663_v5 = vpop.eup %3662  ;;  %3688 = vpow2.f32 %v3305_v41  ;;  %v1638_v23 = vadd.f32 1.0, %v3661_v54 }
 0x13c   : > { %v3665_v37 = vpop.eup %3664  ;;  %3690 = vpow2.f32 %v3311_v57  ;;  %v1637_v62 = vadd.f32 1.0, %v3663_v5 }
 0x13d   : > { %v4817_v34 = vpop.f32.mrf.mxu0  ;;  %v3667_v26 = vpop.eup %3666  ;;  %3692 = vpow2.f32 %v3312_v2  ;;  %v1639_v31 = vadd.f32 1.0, %v3665_v37  ;;  %v694_v2 = vadd.f32 %v4756_v1, %v4695_v49 }
 0x13e   : > { %v3669_v4 = vpop.eup %3668  ;;  %3694 = vpow2.f32 %v3313_v22  ;;  %v1645_v41 = vadd.f32 1.0, %v3667_v26 }
 0x13f   : > { %v4835_v29 = vpop.f32.mrf.mxu0  ;;  %v3671_v38 = vpop.eup %3670  ;;  %3696 = vpow2.f32 %v3314_v20  ;;  %v1647_v57 = vadd.f32 1.0, %v3669_v4  ;;  %v696_v20 = vadd.f32 %v4761_v12, %v4695_v49  ;;  %v3320_v12 = vmul.f32 -1.442695, %v694_v2 }
 0x140   : > { %v3673_v35 = vpop.eup %3672  ;;  %3698 = vrcp.f32 %v1636_v0  ;;  %v1646_v54 = vadd.f32 1.0, %v3671_v38  ;;  %v4869_v0 = vpop.f32.mrf.mxu1  ;;  %v700_v38 = vadd.f32 %v4767_v24, %v4697_v50  ;;  %v807_v24 = vadd.f32 %v4785_v15, %v4695_v49 }
 0x141   : > { %v4853_v59 = vpop.f32.mrf.mxu0  ;;  %v3675_v60 = vpop.eup %3674  ;;  %3700 = vrcp.f32 %v1638_v23  ;;  %v1648_v5 = vadd.f32 1.0, %v3673_v35 }
 0x142   : > { %v3677_v10 = vpop.eup %3676  ;;  %3702 = vrcp.f32 %v1637_v62  ;;  %v1654_v26 = vadd.f32 1.0, %v3675_v60  ;;  %v698_v62 = vadd.f32 %v4763_v18, %v4697_v50  ;;  %v4883_v60 = vpop.f32.mrf.mxu1 }
 0x143   : > { %v4857_v52 = vpop.f32.mrf.mxu0  ;;  %v4865_v22 = vpop.eup %3678  ;;  %3704 = vrcp.f32 %v1639_v31  ;;  %v1656_v1 = vadd.f32 1.0, %v3677_v10  ;;  %v3330_v10 = vmul.f32 -1.442695, %v700_v38 }
 0x144   : > { %6036 = vst [vmem:[#allocation35_spill] sm:$0xff] %v4865_v22  ;;  %v4871_v37 = vpop.eup %3680  ;;  %3706 = vrcp.f32 %v1645_v41  ;;  %v3321_v41 = vmul.f32 -1.442695, %v696_v20  ;;  %v3329_v18 = vmul.f32 -1.442695, %v698_v62  ;;  %v4893_v20 = vpop.f32.mrf.mxu1 }
 0x145   : > { %v4861_v36 = vpop.f32.mrf.mxu0  ;;  %6037 = vst [vmem:[#allocation36_spill] sm:$0xff] %v4871_v37  ;;  %v4877_v23 = vpop.eup %3682  ;;  %3708 = vrcp.f32 %v1647_v57 }
 0x146   : > { %6038 = vst [vmem:[#allocation37_spill] sm:$0xff] %v4877_v23  ;;  %v4881_v31 = vpop.eup %3684  ;;  %3710 = vrcp.f32 %v1646_v54 }
 0x147   : > { %v4875_v4 = vpop.f32.mrf.mxu0  ;;  %6039 = vst [vmem:[#allocation38_spill] sm:$0xff] %v4881_v31  ;;  %v3687_v35 = vpop.eup %3686  ;;  %3712 = vrcp.f32 %v1648_v5  ;;  %v809_v5 = vadd.f32 %v4805_v25, %v4695_v49  ;;  %v3322_v25 = vmul.f32 -1.442695, %v807_v24 }
 0x148   : > { %v3689_v51 = vpop.eup %3688  ;;  %3714 = vrcp.f32 %v1654_v26  ;;  %v1655_v33 = vadd.f32 1.0, %v3687_v35  ;;  %v4913_v49 = vpop.f32.mrf.mxu1 }
 0x149   : > { %v4885_v7 = vpop.f32.mrf.mxu0  ;;  %v3691_v28 = vpop.eup %3690  ;;  %3716 = vrcp.f32 %v1656_v1  ;;  %v1657_v2 = vadd.f32 1.0, %v3689_v51  ;;  %v811_v1 = vadd.f32 %v4815_v56, %v4697_v50  ;;  %v813_v51 = vadd.f32 %v4829_v21, %v4697_v50 }
 0x14a   : > { %v3693_v57 = vpop.eup %3692  ;;  %3718 = vpow2.f32 %v3320_v12  ;;  %v1663_v62 = vadd.f32 1.0, %v3691_v28  ;;  %v704_v28 = vadd.f32 %v4769_v32, %v4691_v47  ;;  %v3323_v56 = vmul.f32 -1.442695, %v809_v5  ;;  %v832_v58 = vpop.f32.mrf.mxu1 }
 0x14b   : > { %v4889_v54 = vpop.eup %3694  ;;  %3720 = vpow2.f32 %v3321_v41  ;;  %v4899_v38 = vpop.f32.mrf.mxu0  ;;  %v1664_v15 = vadd.f32 1.0, %v3693_v57  ;;  %v3331_v21 = vmul.f32 -1.442695, %v811_v1  ;;  %v3332_v32 = vmul.f32 -1.442695, %v813_v51 }
 0x14c   : > { %v4895_v26 = vpop.eup %3696  ;;  %3722 = vpow2.f32 %v3329_v18  ;;  %v817_v18 = vadd.f32 %v4849_v40, %v4691_v47  ;;  %v3338_v40 = vmul.f32 -1.442695, %v704_v28  ;;  %v821_v50 = vadd.f32 %v4859_v9, %v4693_v48 }
 0x14d   : > { %v4901_v12 = vpop.eup %3698  ;;  %3724 = vpow2.f32 %v3330_v10  ;;  %v4919_v57 = vpop.f32.mrf.mxu0 }
 0x14e   : > { %6040 = vst [vmem:[#allocation39_spill] sm:$0xff] %v4901_v12  ;;  %v4905_v35 = vpop.eup %3700  ;;  %3726 = vrcp.f32 %v1655_v33  ;;  %v706_v33 = vadd.f32 %v4775_v55, %v4691_v47  ;;  %v3340_v55 = vmul.f32 -1.442695, %v817_v18 }
 0x14f   : > { %6041 = vst [vmem:[#allocation40_spill] sm:$0xff] %v4905_v35  ;;  %v4909_v41 = vpop.eup %3702  ;;  %3728 = vrcp.f32 %v1657_v2  ;;  %v819_v2 = vadd.f32 %v4855_v17, %v4691_v47  ;;  %v710_v17 = vadd.f32 %v4789_v16, %v4693_v48 }
 0x150   : > { %6042 = vst [vmem:[#allocation41_spill] sm:$0xff] %v4909_v41  ;;  %v4915_v10 = vpop.eup %3704  ;;  %3730 = vrcp.f32 %v1663_v62  ;;  %v708_v62 = vadd.f32 %v4781_v63, %v4693_v48  ;;  %v3339_v51 = vmul.f32 -1.442695, %v706_v33  ;;  %v836_v33 = vpop.f32.mrf.mxu1 }
 0x151   : > { %6043 = vst [vmem:[#allocation42_spill] sm:$0xff] %v4915_v10  ;;  %v4921_v24 = vpop.eup %3706  ;;  %3732 = vrcp.f32 %v1664_v15  ;;  %v3341_v63 = vmul.f32 -1.442695, %v819_v2  ;;  %v3348_v16 = vmul.f32 -1.442695, %v710_v17 }
 0x152   : > { %6044 = vst [vmem:[#allocation43_spill] sm:$0xff] %v4921_v24  ;;  %v4925_v5 = vpop.eup %3708  ;;  %3734 = vpow2.f32 %v3322_v25  ;;  %v4937_v25 = vpop.f32.mrf.mxu0  ;;  %v3347_v9 = vmul.f32 -1.442695, %v708_v62 }
 0x153   : > { %6045 = vst [vmem:[#allocation44_spill] sm:$0xff] %v4925_v5  ;;  %v4929_v1 = vpop.eup %3710  ;;  %3736 = vpow2.f32 %v3323_v56  ;;  %v823_v56 = vadd.f32 %v4869_v0, %v4693_v48  ;;  %v714_v0 = vadd.f32 %v4799_v19, %v4687_v45 }
 0x154   : > { %v4933_v15 = vpop.eup %3712  ;;  %3738 = vpow2.f32 %v3331_v21  ;;  %v3349_v21 = vmul.f32 -1.442695, %v821_v50  ;;  %v4945_v42 = vpop.f32.mrf.mxu0  ;;  %v716_v50 = vadd.f32 %v4811_v30, %v4687_v45 }
 0x155   : > { %v4939_v28 = vpop.eup %3714  ;;  %3740 = vpow2.f32 %v3332_v32  ;;  %v3350_v32 = vmul.f32 -1.442695, %v823_v56  ;;  %v3356_v30 = vmul.f32 -1.442695, %v714_v0  ;;  %v726_v0 = vadd.f32 %v4857_v52, %v4689_v46 }
 0x156   : > { %v4943_v18 = vpop.eup %3716  ;;  %3742 = vpow2.f32 %v3338_v40 }
 0x157   : > { %v3719_v47 = vpop.eup %3718  ;;  %3744 = vpow2.f32 %v3340_v55  ;;  %v838_v55 = vpop.f32.mrf.mxu1 }
 0x158   : > { %v3721_v39 = vpop.eup %3720  ;;  %3746 = vpow2.f32 %v3339_v51  ;;  %v1672_v22 = vadd.f32 1.0, %v3719_v47  ;;  %v4957_v47 = vpop.f32.mrf.mxu0 }
 0x159   : > { %v3723_v37 = vpop.eup %3722  ;;  %3748 = vpow2.f32 %v3341_v63  ;;  %v1673_v62 = vadd.f32 1.0, %v3721_v39  ;;  %v718_v63 = vadd.f32 %v4817_v34, %v4683_v43  ;;  %v720_v39 = vadd.f32 %v4835_v29, %v4683_v43  ;;  %v840_v48 = vpop.f32.mrf.mxu1 }
 0x15a   : > { %v3725_v2 = vpop.eup %3724  ;;  %3750 = vpow2.f32 %v3347_v9  ;;  %v1681_v17 = vadd.f32 1.0, %v3723_v37  ;;  %v724_v34 = vadd.f32 %v4853_v59, %v4689_v46  ;;  %v837_v29 = vadd.f32 %v836_v33, %v4689_v46 }
 0x15b   : > { %v4949_v40 = vpop.eup %3726  ;;  %3752 = vpow2.f32 %v3349_v21  ;;  %v1682_v19 = vadd.f32 1.0, %v3725_v2  ;;  %v833_v21 = vadd.f32 %v832_v58, %v4683_v43  ;;  %v4973_v2 = vpop.f32.mrf.mxu0  ;;  %v3366_v58 = vmul.f32 -1.442695, %v720_v39 }
 0x15c   : > { %v4953_v51 = vpop.eup %3728  ;;  %3754 = vpow2.f32 %v3348_v16  ;;  %v3357_v16 = vmul.f32 -1.442695, %v716_v50  ;;  %v839_v50 = vadd.f32 %v838_v55, %v4689_v46  ;;  %v728_v33 = vadd.f32 %v4861_v36, %v4685_v44 }
 0x15d   : > { %v4959_v56 = vpop.eup %3730  ;;  %3756 = vpow2.f32 %v3350_v32  ;;  %v3365_v32 = vmul.f32 -1.442695, %v718_v63  ;;  %v3368_v59 = vmul.f32 -1.442695, %v833_v21  ;;  %v842_v63 = vpop.f32.mrf.mxu1  ;;  %v841_v39 = vadd.f32 %v840_v48, %v4685_v44 }
 0x15e   : > { %v4963_v9 = vpop.eup %3732  ;;  %3758 = vrcp.f32 %v1672_v22  ;;  %v4987_v52 = vpop.f32.mrf.mxu0  ;;  %v730_v55 = vadd.f32 %v4875_v4, %v4685_v44  ;;  %v843_v36 = vadd.f32 %v842_v63, %v4685_v44  ;;  %v3383_v48 = vmul.f32 -1.442695, %v728_v33 }
 0x15f   : > { %v4966_v37 = vpop.eup %3734  ;;  %3760 = vrcp.f32 %v1673_v62  ;;  %v3385_v4 = vmul.f32 -1.442695, %v841_v39 }
 0x160   : > { %v4970_v31 = vpop.eup %3736  ;;  %3762 = vrcp.f32 %v1681_v17  ;;  %v3374_v17 = vmul.f32 -1.442695, %v724_v34  ;;  %v3384_v63 = vmul.f32 -1.442695, %v730_v55 }
 0x161   : > { %v4975_v22 = vpop.eup %3738  ;;  %3764 = vrcp.f32 %v1682_v19  ;;  %v3376_v19 = vmul.f32 -1.442695, %v837_v29  ;;  %v4996_v29 = vpop.f32.mrf.mxu1 }
 0x162   : > { %v4979_v62 = vpop.eup %3740  ;;  %3766 = vpow2.f32 %v3356_v30  ;;  %v3375_v30 = vmul.f32 -1.442695, %v726_v0  ;;  %v5002_v0 = vpop.f32.mrf.mxu0 }
 0x163   : > { %v3743_v53 = vpop.eup %3742  ;;  %3768 = vpow2.f32 %v3357_v16  ;;  %v3377_v16 = vmul.f32 -1.442695, %v839_v50  ;;  %6046 = vst [vmem:[#allocation45_spill] sm:$0xff] %v5002_v0  ;;  %v827_v50 = vadd.f32 %v4883_v60, %v4687_v45 }
 0x164   : > { %v4984_v23 = vpop.eup %3744  ;;  %3770 = vpow2.f32 %v3365_v32  ;;  %v831_v32 = vadd.f32 %v4913_v49, %v4683_v43  ;;  %v5010_v43 = vpop.f32.mrf.mxu1  ;;  %v1690_v55 = vadd.f32 1.0, %v3743_v53 }
 0x165   : > { %v3747_v35 = vpop.eup %3746  ;;  %3772 = vpow2.f32 %v3366_v58  ;;  %v829_v58 = vadd.f32 %v4893_v20, %v4687_v45  ;;  %v5014_v39 = vpop.f32.mrf.mxu0  ;;  %v3358_v60 = vmul.f32 -1.442695, %v827_v50 }
 0x166   : > { %v4991_v21 = vpop.eup %3748  ;;  %3774 = vpow2.f32 %v3368_v59  ;;  %v3367_v44 = vmul.f32 -1.442695, %v831_v32  ;;  %6047 = vst [vmem:[#allocation46_spill] sm:$0xff] %v5014_v39  ;;  %v5020_v32 = vpop.f32.mrf.mxu1 }
 0x167   : > { %v3751_v34 = vpop.eup %3750  ;;  %3776 = vpow2.f32 %v3374_v17  ;;  %v3386_v17 = vmul.f32 -1.442695, %v843_v36  ;;  %v1691_v36 = vadd.f32 1.0, %v3747_v35 }
 0x168   : > { %v4998_v46 = vpop.eup %3752  ;;  %3778 = vpow2.f32 %v3376_v19  ;;  %v3359_v19 = vmul.f32 -1.442695, %v829_v58  ;;  %v1699_v45 = vadd.f32 1.0, %v3751_v34  ;;  %v5022_v58 = vpop.f32.mrf.mxu0 }
 0x169   : > { %v3755_v59 = vpop.eup %3754  ;;  %3780 = vpow2.f32 %v3375_v30  ;;  %6048 = vst [vmem:[#allocation47_spill] sm:$0xff] %v5022_v58 }
 0x16a   : > { %v5006_v49 = vpop.eup %3756  ;;  %3782 = vpow2.f32 %v3377_v16  ;;  %v1700_v39 = vadd.f32 1.0, %v3755_v59  ;;  %v5026_v10 = vpop.f32.mrf.mxu0 }
 0x16b   : > { %v5008_v33 = vpop.eup %3758  ;;  %3784 = vpow2.f32 %v3383_v48  ;;  %6049 = vst [vmem:[#allocation48_spill] sm:$0xff] %v5026_v10 }
 0x16c   : > { %v5012_v20 = vpop.eup %3760  ;;  %3786 = vpow2.f32 %v3385_v4 }
 0x16d   : > { %v5016_v0 = vpop.eup %3762  ;;  %3788 = vpow2.f32 %v3384_v63 }
 0x16e   : > { %v5018_v30 = vpop.eup %3764  ;;  %3790 = vpow2.f32 %v3386_v17  ;;  %v5024_v17 = vpop.f32.mrf.mxu1 }
 0x16f   : > { %v3767_v16 = vpop.eup %3766  ;;  %3792 = vpow2.f32 %v3367_v44 }
 0x170   : > { %v3769_v48 = vpop.eup %3768  ;;  %3794 = vpow2.f32 %v3359_v19  ;;  %v1708_v50 = vadd.f32 1.0, %v3767_v16 }
 0x171   : > { %v3771_v4 = vpop.eup %3770  ;;  %3796 = vpow2.f32 %v3358_v60  ;;  %v1709_v53 = vadd.f32 1.0, %v3769_v48  ;;  %v5028_v60 = vpop.f32.mrf.mxu1 }
 0x172   : > { %v3773_v12 = vpop.eup %3772  ;;  %3798 = vrcp.f32 %v1690_v55  ;;  %v1717_v44 = vadd.f32 1.0, %v3771_v4 }
 0x173   : > { %v3775_v63 = vpop.eup %3774  ;;  %3800 = vrcp.f32 %v1691_v36  ;;  %v5030_v36 = vpop.f32.mrf.mxu0 }
 0x174   : > { %v3777_v35 = vpop.eup %3776  ;;  %3802 = vrcp.f32 %v1699_v45  ;;  %6050 = vst [vmem:[#allocation49_spill] sm:$0xff] %v5030_v36  ;;  %v1718_v36 = vadd.f32 1.0, %v3773_v12 }
 0x175   : > { %v3779_v34 = vpop.eup %3778  ;;  %3804 = vrcp.f32 %v1700_v39  ;;  %v1726_v5 = vadd.f32 1.0, %v3777_v35 }
 0x176   : > { %v3781_v19 = vpop.eup %3780  ;;  %3806 = vrcp.f32 %v1708_v50  ;;  %v1728_v58 = vadd.f32 1.0, %v3779_v34  ;;  %v5032_v34 = vpop.f32.mrf.mxu1 }
 0x177   : > { %v3783_v59 = vpop.eup %3782  ;;  %3808 = vrcp.f32 %v1709_v53  ;;  %v1727_v39 = vadd.f32 1.0, %v3781_v19 }
 0x178   : > { %v3785_v55 = vpop.eup %3784  ;;  %3810 = vrcp.f32 %v1717_v44  ;;  %v1729_v16 = vadd.f32 1.0, %v3783_v59  ;;  %v5034_v44 = vpop.f32.mrf.mxu0 }
 0x179   : > { %v3787_v48 = vpop.eup %3786  ;;  %3812 = vrcp.f32 %v1728_v58  ;;  %v1735_v45 = vadd.f32 1.0, %v3785_v55  ;;  %6051 = vst [vmem:[#allocation50_spill] sm:$0xff] %v5034_v44  ;;  %v1720_v55 = vadd.f32 1.0, %v3775_v63  ;;  %v5038_v19 = vpop.f32.mrf.mxu1 }
 0x17a   : > { %v3789_v4 = vpop.eup %3788  ;;  %3814 = vrcp.f32 %v1729_v16  ;;  %v1737_v10 = vadd.f32 1.0, %v3787_v48 }
 0x17b   : > { %v3791_v41 = vpop.eup %3790  ;;  %3816 = vrcp.f32 %v1735_v45  ;;  %v1736_v50 = vadd.f32 1.0, %v3789_v4 }
 0x17c   : > { %v3793_v53 = vpop.eup %3792  ;;  %3818 = vrcp.f32 %v1737_v10  ;;  %v1738_v24 = vadd.f32 1.0, %v3791_v41  ;;  %v5042_v10 = vpop.f32.mrf.mxu0 }
 0x17d   : > { %v3795_v59 = vpop.eup %3794  ;;  %3820 = vrcp.f32 %v1736_v50  ;;  %v1719_v48 = vadd.f32 1.0, %v3793_v53  ;;  %6052 = vst [vmem:[#allocation51_spill] sm:$0xff] %v5042_v10  ;;  %v5052_v50 = vpop.f32.mrf.mxu1 }
 0x17e   : > { %v3797_v58 = vpop.eup %3796  ;;  %3822 = vrcp.f32 %v1738_v24  ;;  %v1711_v4 = vadd.f32 1.0, %v3795_v59  ;;  %v1702_v24 = vadd.f32 1.0, %v5006_v49  ;;  %v5057_v59 = vpop.f32.mrf.mxu0 }
 0x17f   : > { %v5036_v16 = vpop.eup %3798  ;;  %3824 = vrcp.f32 %v1727_v39  ;;  %v1710_v35 = vadd.f32 1.0, %v3797_v58  ;;  %v1701_v39 = vadd.f32 1.0, %v4998_v46  ;;  %6053 = vst [vmem:[#allocation52_spill] sm:$0xff] %v5057_v59  ;;  %v1692_v58 = vadd.f32 1.0, %v4984_v23 }
 0x180   : > { %v5040_v45 = vpop.eup %3800  ;;  %3826 = vrcp.f32 %v1726_v5  ;;  %v1693_v5 = vadd.f32 1.0, %v4991_v21  ;;  %v1683_v46 = vadd.f32 1.0, %v4975_v22  ;;  %v1675_v21 = vadd.f32 1.0, %v4970_v31  ;;  %v5067_v59 = vpop.f32.mrf.mxu0 }
 0x181   : > { %v5044_v41 = vpop.eup %3802  ;;  %3828 = vrcp.f32 %v1718_v36  ;;  %6054 = vst [vmem:[#allocation53_spill] sm:$0xff] %v5067_v59  ;;  %v882_v31 = vadd.f32 %v4899_v38, %v4711_v6 }
 0x182   : > { %v5046_v12 = vpop.eup %3804  ;;  %3830 = vrcp.f32 %v1720_v55  ;;  %v1684_v55 = vadd.f32 1.0, %v4979_v62  ;;  %v993_v62 = vadd.f32 %v4996_v29, %v4711_v6 }
 0x183   : > { %v5049_v63 = vpop.eup %3806  ;;  %3832 = vrcp.f32 %v1719_v48  ;;  %v5062_v48 = vpop.f32.mrf.mxu1 }
 0x184   : > { %v5054_v53 = vpop.eup %3808  ;;  %3834 = vrcp.f32 %v1711_v4  ;;  %v880_v4 = vadd.f32 %v4885_v7, %v4711_v6  ;;  %v884_v7 = vadd.f32 %v4919_v57, %v4715_v13 }
 0x185   : > { %v3811_v36 = vpop.eup %3810  ;;  %3836 = vrcp.f32 %v1710_v35  ;;  %v1674_v35 = vadd.f32 1.0, %v4966_v37  ;;  %v5078_v59 = vpop.f32.mrf.mxu1 }
 0x186   : > { %v3813_v49 = vpop.eup %3812  ;;  %3838 = vrcp.f32 %v1702_v24  ;;  %v1666_v24 = vadd.f32 1.0, %v4895_v26  ;;  %v3252_v29 = vmul.f32 -1.442695, %v880_v4  ;;  %v997_v26 = vadd.f32 %v5020_v32, %v4715_v13 }
 0x187   : > { %v3815_v10 = vpop.eup %3814  ;;  %3840 = vrcp.f32 %v1701_v39  ;;  %v3261_v4 = vmul.f32 -1.442695, %v884_v7  ;;  %v1620_v7 = vadd.f32 1.0, %v4801_v11  ;;  %v1611_v11 = vadd.f32 1.0, %v4791_v14 }
 0x188   : > { %v3817_v44 = vpop.eup %3816  ;;  %3842 = vrcp.f32 %v1693_v5  ;;  %v1665_v5 = vadd.f32 1.0, %v4889_v54  ;;  %v3254_v54 = vmul.f32 -1.442695, %v993_v62 }
 0x189   : > { %v3819_v23 = vpop.eup %3818  ;;  %3844 = vrcp.f32 %v1692_v58  ;;  %v5082_v58 = vpop.f32.mrf.mxu0 }
 0x18a   : > { %v3821_v22 = vpop.eup %3820  ;;  %3846 = vrcp.f32 %v1684_v55  ;;  %v886_v55 = vadd.f32 %v4937_v25, %v4715_v13 }
 0x18b   : > { %v3823_v39 = vpop.eup %3822  ;;  %3848 = vrcp.f32 %v1683_v46  ;;  %2033 = vmatprep.subr.mxu1 %v3821_v22  ;;  %v3253_v46 = vmul.f32 -1.442695, %v882_v31  ;;  %v5092_v62 = vpop.f32.mrf.mxu0 }
 0x18c   : > { %v3825_v37 = vpop.eup %3824  ;;  %3850 = vrcp.f32 %v1675_v21  ;;  %2104 = vmatprep.subr.mxu0 %v3823_v39  ;;  %2034 = vmatpush1.msra.mxu1 %v3817_v44  ;;  %v890_v21 = vadd.f32 %v4945_v42, %v4707_v61  ;;  %v1003_v44 = vadd.f32 %v5028_v60, %v4707_v61  ;;  %v1621_v39 = vadd.f32 1.0, %v4807_v27 }
 0x18d   : > { %v3827_v38 = vpop.eup %3826  ;;  %3852 = vrcp.f32 %v1674_v35  ;;  %2105 = vmatpush1.msra.mxu0 %v3819_v23  ;;  %2035 = vmatprep.subr.mxu1 %v3825_v37  ;;  %v5090_v35 = vpop.f32.mrf.mxu1  ;;  %v3263_v23 = vmul.f32 -1.442695, %v997_v26  ;;  %v999_v37 = vadd.f32 %v5024_v17, %v4715_v13  ;;  %v1005_v17 = vadd.f32 %v5032_v34, %v4707_v61 }
 0x18e   : > { %v3829_v57 = vpop.eup %3828  ;;  %3854 = vrcp.f32 %v1666_v24  ;;  %2106 = vmatprep.subr.mxu0 %v3815_v10  ;;  %2036 = vmatpush1.msra.mxu1 %v3827_v38  ;;  %v3262_v10 = vmul.f32 -1.442695, %v886_v55  ;;  %v3270_v60 = vmul.f32 -1.442695, %v890_v21  ;;  %v3272_v24 = vmul.f32 -1.442695, %v1003_v44 }
 0x18f   : > { %v3831_v32 = vpop.eup %3830  ;;  %3856 = vrcp.f32 %v1665_v5  ;;  %2107 = vmatpush1.msra.mxu0 %v3813_v49  ;;  %2037 = vmatprep.subr.mxu1 %v3829_v57  ;;  %v5096_v31 = vpop.f32.mrf.mxu1  ;;  %v1007_v34 = vadd.f32 %v5038_v19, %v4709_v3  ;;  %v1009_v55 = vadd.f32 %v5052_v50, %v4709_v3 }
 0x190   : > { %v3833_v25 = vpop.eup %3832  ;;  %3858 = vpow2.f32 %v3252_v29  ;;  %2108 = vmatprep.subr.mxu0 %v3831_v32  ;;  %2038 = vmatpush1.msra.mxu1 %v3811_v36  ;;  %v5102_v5 = vpop.f32.mrf.mxu0 }
 0x191   : > { %v3835_v42 = vpop.eup %3834  ;;  %3860 = vpow2.f32 %v3254_v54  ;;  %2109 = vmatpush1.msra.mxu0 %v3833_v25  ;;  %2039 = vmatprep.subr.mxu1 %v5054_v53  ;;  %v995_v53 = vadd.f32 %v5010_v43, %v4711_v6  ;;  %v892_v43 = vadd.f32 %v4957_v47, %v4707_v61  ;;  %v5116_v29 = vpop.f32.mrf.mxu1  ;;  %v894_v47 = vadd.f32 %v4973_v2, %v4709_v3  ;;  %v6055_v25 = vld [vmem:[#allocation43_spill] sm:$0xff] }
 0x192   : > { %v3837_v22 = vpop.eup %3836  ;;  %3862 = vpow2.f32 %v3253_v46  ;;  %2110 = vmatprep.subr.mxu0 %v3835_v42  ;;  %2040 = vmatpush1.msra.mxu1 %v5049_v63  ;;  %v5121_v26 = vpop.f32.mrf.mxu0  ;;  %v896_v2 = vadd.f32 %v4987_v52, %v4709_v3  ;;  %v3282_v32 = vmul.f32 -1.442695, %v1009_v55  ;;  %v6057_v42 = vld [vmem:[#allocation41_spill] sm:$0xff] }
 0x193   : > { %v3839_v49 = vpop.eup %3838  ;;  %3864 = vpow2.f32 %v3261_v4  ;;  %2111 = vmatpush1.msra.mxu0 %v3837_v22  ;;  %2041 = vmatprep.subr.mxu1 %v5046_v12  ;;  %v1612_v12 = vadd.f32 1.0, %v4795_v8  ;;  %v3271_v38 = vmul.f32 -1.442695, %v892_v43  ;;  %v5132_v57 = vpop.f32.mrf.mxu1  ;;  %v3279_v19 = vmul.f32 -1.442695, %v894_v47  ;;  %v6059_v22 = vld [vmem:[#allocation39_spill] sm:$0xff] }
 0x194   : > { %v3841_v36 = vpop.eup %3840  ;;  %3866 = vpow2.f32 %v3263_v23  ;;  %2112 = vmatprep.subr.mxu0 %v3839_v49  ;;  %2042 = vmatpush1.msra.mxu1 %v5044_v41  ;;  %v5135_v46 = vpop.f32.mrf.mxu0  ;;  %v3280_v21 = vmul.f32 -1.442695, %v896_v2  ;;  %v6056_v23 = vld [vmem:[#allocation44_spill] sm:$0xff]  ;;  %v6065_v43 = vld [vmem:[#allocation35_spill] sm:$0xff] }
 0x195   : > { %v3843_v63 = vpop.eup %3842  ;;  %3868 = vpow2.f32 %v3262_v10  ;;  %2113 = vmatpush1.msra.mxu0 %v3841_v36  ;;  %2043 = vmatprep.subr.mxu1 %v5040_v45  ;;  %v3255_v45 = vmul.f32 -1.442695, %v995_v53  ;;  %v5141_v4 = vpop.f32.mrf.mxu1  ;;  %v6061_v36 = vld [vmem:[#allocation37_spill] sm:$0xff] }
 0x196   : > { %v3845_v27 = vpop.eup %3844  ;;  %3870 = vpow2.f32 %v3270_v60  ;;  %2114 = vmatprep.subr.mxu0 %v3843_v63  ;;  %2044 = vmatpush1.msra.mxu1 %v5036_v16  ;;  %v3264_v16 = vmul.f32 -1.442695, %v999_v37  ;;  %v6062_v63 = vld [vmem:[#allocation22_spill] sm:$0xff] }
 0x197   : > { %v3847_v41 = vpop.eup %3846  ;;  %3872 = vpow2.f32 %v3272_v24  ;;  %2115 = vmatpush1.msra.mxu0 %v3845_v27  ;;  %2045 = vmatprep.subr.mxu1 %v5018_v30  ;;  %v6060_v24 = vld [vmem:[#allocation40_spill] sm:$0xff] }
 0x198   : > { %v3849_v8 = vpop.eup %3848  ;;  %3874 = vrcp.f32 %v1621_v39  ;;  %2116 = vmatprep.subr.mxu0 %v3847_v41  ;;  %2046 = vmatpush1.msra.mxu1 %v5016_v0  ;;  %v3273_v0 = vmul.f32 -1.442695, %v1005_v17  ;;  %v1013_v17 = vadd.f32 %v5062_v48, %v6062_v63 }
 0x199   : > { %v3851_v14 = vpop.eup %3850  ;;  %3876 = vrcp.f32 %v1620_v7  ;;  %2117 = vmatpush1.msra.mxu0 %v3849_v8  ;;  %2047 = vmatprep.subr.mxu1 %v5012_v20  ;;  %v6063_v7 = vld [vmem:[#allocation45_spill] sm:$0xff]  ;;  %v6066_v8 = vld [vmem:[#allocation36_spill] sm:$0xff] }
 0x19a   : > { %v3853_v30 = vpop.eup %3852  ;;  %3878 = vrcp.f32 %v1612_v12  ;;  %2118 = vmatprep.subr.mxu0 %v3851_v14  ;;  %2048 = vmatpush1.msra.mxu1 %v5008_v33  ;;  %v3281_v33 = vmul.f32 -1.442695, %v1007_v34  ;;  %v900_v37 = vadd.f32 %v6063_v7, %v6062_v63  ;;  %v6064_v12 = vld [vmem:[#allocation38_spill] sm:$0xff] }
 0x19b   : > { %v3855_v54 = vpop.eup %3854  ;;  %3880 = vrcp.f32 %v1611_v11  ;;  %2119 = vmatpush1.msra.mxu0 %v3853_v30  ;;  %2049 = vmatprep.subr.mxu1 %v4963_v9  ;;  %v6069_v30 = vld [vmem:[#allocation33_spill] sm:$0xff] }
 0x19c   : > { %v3857_v20 = vpop.eup %3856  ;;  %3882 = vpow2.f32 %v3255_v45  ;;  %2120 = vmatprep.subr.mxu0 %v3855_v54  ;;  %2050 = vmatpush1.msra.mxu1 %v4959_v56  ;;  %v6067_v45 = vld [vmem:[#allocation34_spill] sm:$0xff]  ;;  %v6070_v54 = vld [vmem:[#allocation23_spill] sm:$0xff] }
 0x19d   : > { %v3859_v52 = vpop.eup %3858  ;;  %3884 = vpow2.f32 %v3264_v16  ;;  %2121 = vmatpush1.msra.mxu0 %v3857_v20  ;;  %2051 = vmatprep.subr.mxu1 %v4949_v40  ;;  %v5145_v40 = vpop.f32.mrf.mxu0  ;;  %v6068_v16 = vld [vmem:[#allocation46_spill] sm:$0xff]  ;;  %v6072_v20 = vld [vmem:[#allocation32_spill] sm:$0xff] }
 0x19e   : > { %v3861_v50 = vpop.eup %3860  ;;  %3886 = vpow2.f32 %v3271_v38  ;;  %2122 = vmatprep.subr.mxu0 %v4953_v51  ;;  %2052 = vmatpush1.msra.mxu1 %v4939_v28  ;;  %v1604_v44 = vadd.f32 1.0, %v3859_v52  ;;  %v902_v34 = vadd.f32 %v6068_v16, %v6062_v63  ;;  %v3288_v52 = vmul.f32 -1.442695, %v900_v37 }
 0x19f   : > { %v3863_v9 = vpop.eup %3862  ;;  %3888 = vpow2.f32 %v3273_v0  ;;  %2123 = vmatpush1.msra.mxu0 %v4943_v18  ;;  %2053 = vmatprep.subr.mxu1 %v4929_v1  ;;  %v1606_v28 = vadd.f32 1.0, %v3861_v50  ;;  %v6058_v1 = vld [vmem:[#allocation42_spill] sm:$0xff]  ;;  %v5159_v27 = vpop.f32.mrf.mxu0  ;;  %v6071_v0 = vld [vmem:[#allocation47_spill] sm:$0xff] }
 0x1a0   : > { %v3865_v56 = vpop.eup %3864  ;;  %3890 = vpow2.f32 %v3279_v19  ;;  %2124 = vmatprep.subr.mxu0 %v4933_v15  ;;  %2054 = vmatpush1.msra.mxu1 %v6055_v25  ;;  %v1605_v18 = vadd.f32 1.0, %v3863_v9  ;;  %v5153_v15 = vpop.f32.mrf.mxu1  ;;  %v904_v55 = vadd.f32 %v6071_v0, %v6070_v54  ;;  %v6075_v25 = vld [vmem:[#allocation29_spill] sm:$0xff] }
 0x1a1   : > { %v3867_v51 = vpop.eup %3866  ;;  %3892 = vpow2.f32 %v3281_v33  ;;  %2125 = vmatpush1.msra.mxu0 %v6056_v23  ;;  %2055 = vmatprep.subr.mxu1 %v6057_v42  ;;  %v1613_v49 = vadd.f32 1.0, %v3865_v56  ;;  %v1017_v33 = vadd.f32 %v5090_v35, %v6070_v54  ;;  %v5177_v50 = vpop.f32.mrf.mxu0  ;;  %v6074_v56 = vld [vmem:[#allocation48_spill] sm:$0xff]  ;;  %v6077_v42 = vld [vmem:[#allocation49_spill] sm:$0xff] }
 0x1a2   : > { %v3869_v10 = vpop.eup %3868  ;;  %3894 = vpow2.f32 %v3280_v21  ;;  %2126 = vmatprep.subr.mxu0 %v6058_v1  ;;  %2056 = vmatpush1.msra.mxu1 %v6059_v22  ;;  %v1615_v53 = vadd.f32 1.0, %v3867_v51  ;;  %v5172_v48 = vpop.f32.mrf.mxu1  ;;  %v6073_v21 = vld [vmem:[#allocation31_spill] sm:$0xff]  ;;  %v2032_v51 = vld [vmem:[%s5969_s3] sm:$0xff]  ;;  %v6076_v23 = vld [vmem:[#allocation20_spill] sm:$0xff] }
 0x1a3   : > { %v3871_v60 = vpop.eup %3870  ;;  %3896 = vpow2.f32 %v3282_v32  ;;  %2127 = vmatpush1.msra.mxu0 %v6060_v24  ;;  %2057 = vmatprep.subr.mxu1 %v6061_v36  ;;  %v1614_v11 = vadd.f32 1.0, %v3869_v10  ;;  %v3290_v32 = vmul.f32 -1.442695, %v1013_v17  ;;  %v910_v10 = vadd.f32 %v6077_v42, %v6076_v23  ;;  %v6079_v1 = vld [vmem:[#allocation27_spill] sm:$0xff]  ;;  %v6080_v36 = vld [vmem:[#allocation28_spill] sm:$0xff]  ;;  %v5202_v37 = vpop.f32.mrf.mxu0 }
 0x1a4   : > { %v3873_v39 = vpop.eup %3872  ;;  %3898 = vrcp.f32 %v1604_v44  ;;  %2128 = vmatprep.subr.mxu0 %v6064_v12  ;;  %2058 = vmatpush1.msra.mxu1 %v6065_v43  ;;  %v1622_v14 = vadd.f32 1.0, %v3871_v60  ;;  %v906_v44 = vadd.f32 %v6074_v56, %v6070_v54  ;;  %v3297_v60 = vmul.f32 -1.442695, %v904_v55  ;;  %v5196_v24 = vpop.f32.mrf.mxu1  ;;  %v6083_v55 = vld [vmem:[#allocation50_spill] sm:$0xff]  ;;  %v6089_v42 = vld [vmem:[#allocation52_spill] sm:$0xff] }
 0x1a5   : > { %v3875_v41 = vpop.eup %3874  ;;  %3900 = vrcp.f32 %v1606_v28  ;;  %2129 = vmatpush1.msra.mxu0 %v6066_v8  ;;  %2059 = vmatprep.subr.mxu1 %v6067_v45  ;;  %v1624_v2 = vadd.f32 1.0, %v3873_v39  ;;  %v3289_v28 = vmul.f32 -1.442695, %v902_v34  ;;  %v6002_v39 = vmov 0.0   ;;  %v5213_v16 = vpop.f32.mrf.mxu0 }
 0x1a6   : > { %v3877_v47 = vpop.eup %3876  ;;  %3902 = vrcp.f32 %v1605_v18  ;;  %2130 = vmatprep.subr.mxu0 %v3875_v41  ;;  %2060 = vmatpush1.msra.mxu1 %v6069_v30  ;;  %v6078_v18 = vld [vmem:[#allocation30_spill] sm:$0xff]  ;;  %v3299_v7 = vmul.f32 -1.442695, %v1017_v33  ;;  %v3298_v43 = vmul.f32 -1.442695, %v906_v44  ;;  %v5207_v8 = vpop.f32.mrf.mxu1  ;;  %v6086_v33 = vld [vmem:[#allocation51_spill] sm:$0xff] }
 0x1a7   : > { %v3879_v38 = vpop.eup %3878  ;;  %3904 = vrcp.f32 %v1613_v49  ;;  %2131 = vmatpush1.msra.mxu0 %v3877_v47  ;;  %2061 = vmatprep.subr.mxu1 %v6072_v20  ;;  %v1023_v49 = vadd.f32 %v5116_v29, %v6076_v23  ;;  %v3306_v41 = vmul.f32 -1.442695, %v910_v10  ;;  %v912_v20 = vadd.f32 %v6083_v55, %v6076_v23 }
 0x1a8   : > { %v3881_v19 = vpop.eup %3880  ;;  %3906 = vrcp.f32 %v1615_v53  ;;  %2132 = vmatprep.subr.mxu0 %v3879_v38  ;;  %2062 = vmatpush1.msra.mxu1 %v6073_v21  ;;  %v1019_v38 = vadd.f32 %v5096_v31, %v6070_v54 }
 0x1a9   : > { %v5180_v9 = vpop.eup %3882  ;;  %3908 = vrcp.f32 %v1614_v11  ;;  %2133 = vmatpush1.msra.mxu0 %v3881_v19  ;;  %2063 = vmatprep.subr.mxu1 %v6075_v25  ;;  %v3308_v17 = vmul.f32 -1.442695, %v1023_v49  ;;  %v5233_v25 = vpop.f32.mrf.mxu0 }
 0x1aa   : > { %v5188_v35 = vpop.eup %3884  ;;  %3910 = vrcp.f32 %v1622_v14  ;;  %2134 = vmatprep.subr.mxu0 %v6078_v18  ;;  %2064 = vmatpush1.msra.mxu1 %v6079_v1  ;;  %v1015_v14 = vadd.f32 %v5078_v59, %v6062_v63  ;;  %v3307_v1 = vmul.f32 -1.442695, %v912_v20 }
 0x1ab   : > { %v3887_v22 = vpop.eup %3886  ;;  %3912 = vrcp.f32 %v1624_v2  ;;  %2135 = vmatpush1.msra.mxu0 %v6080_v36  ;;  %2097 = vmatprep.mubr.f32.mxu1 %v6002_v39 }
 0x1ac   : > { %v5200_v53 = vpop.eup %3888  ;;  %3914 = vpow2.f32 %v3288_v52  ;;  %2168 = vmatprep.mubr.f32.mxu0 %v6002_v39  ;;  %2098 = vmatmul.mubr.f32.vlgmr.msra.gmra.mxu1 %v2032_v51  ;;  %v1623_v47 = vadd.f32 1.0, %v3887_v22  ;;  %v6085_v52 = vld [vmem:[#allocation21_spill] sm:$0xff]  ;;  %v3291_v31 = vmul.f32 -1.442695, %v1015_v14  ;;  %v1025_v22 = vadd.f32 %v5132_v57, %v6076_v23 }
 0x1ad   : > { %v3891_v12 = vpop.eup %3890  ;;  %3916 = vpow2.f32 %v3290_v32  ;;  %2169 = vmatmul.mubr.f32.vlgmr.msra.gmra.mxu0 %v2032_v51  ;;  %2239 = vmatprep.mubr.f32.mxu1 %v6002_v39  ;;  %v914_v21 = vadd.f32 %v6086_v33, %v6085_v52  ;;  %v5227_v32 = vpop.f32.mrf.mxu1  ;;  %v1027_v44 = vadd.f32 %v5141_v4, %v6085_v52  ;;  %v916_v10 = vadd.f32 %v6089_v42, %v6085_v52  ;;  %v6093_v42 = vld [vmem:[#allocation18_spill] sm:$0xff] }
 0x1ae   : > { %v3893_v29 = vpop.eup %3892  ;;  %3918 = vpow2.f32 %v3289_v28  ;;  %2310 = vmatprep.mubr.f32.mxu0 %v6002_v39  ;;  %v1631_v30 = vadd.f32 1.0, %v3891_v12  ;;  %v3300_v28 = vmul.f32 -1.442695, %v1019_v38  ;;  %v1029_v49 = vadd.f32 %v5153_v15, %v6085_v52 }
 0x1af   : > { %v3895_v11 = vpop.eup %3894  ;;  %3920 = vpow2.f32 %v3297_v60  ;;  %v1633_v0 = vadd.f32 1.0, %v3893_v29  ;;  %v3315_v4 = vmul.f32 -1.442695, %v914_v21  ;;  %v5247_v36 = vpop.f32.mrf.mxu1  ;;  %v3317_v12 = vmul.f32 -1.442695, %v1027_v44 }
 0x1b0   : > { %v5209_v45 = vpop.eup %3896  ;;  %3922 = vpow2.f32 %v3299_v7  ;;  %v1632_v59 = vadd.f32 1.0, %v3895_v11  ;;  %v3309_v57 = vmul.f32 -1.442695, %v1025_v22 }
 0x1b1   : > { %v5215_v34 = vpop.eup %3898  ;;  %3924 = vpow2.f32 %v3298_v43  ;;  %v5251_v43 = vpop.f32.mrf.mxu0 }
 0x1b2   : > { %6081 = vst [vmem:[#allocation43_spill] sm:$0xff] %v5215_v34  ;;  %v5219_v2 = vpop.eup %3900  ;;  %3926 = vpow2.f32 %v3306_v41  ;;  %v3316_v41 = vmul.f32 -1.442695, %v916_v10  ;;  %v5253_v14 = vpop.f32.mrf.mxu1  ;;  %v6094_v10 = vld [vmem:[#allocation53_spill] sm:$0xff] }
 0x1b3   : > { %6082 = vst [vmem:[#allocation44_spill] sm:$0xff] %v5219_v2  ;;  %v5223_v19 = vpop.eup %3902  ;;  %3928 = vpow2.f32 %v3308_v17  ;;  %v5255_v38 = vpop.f32.mrf.mxu0 }
 0x1b4   : > { %6084 = vst [vmem:[#allocation41_spill] sm:$0xff] %v5223_v19  ;;  %v5229_v56 = vpop.eup %3904  ;;  %3930 = vrcp.f32 %v1623_v47  ;;  %v3318_v47 = vmul.f32 -1.442695, %v1029_v49 }
 0x1b5   : > { %6087 = vst [vmem:[#allocation42_spill] sm:$0xff] %v5229_v56  ;;  %v5235_v51 = vpop.eup %3906  ;;  %3932 = vrcp.f32 %v1631_v30  ;;  %v5261_v22 = vpop.f32.mrf.mxu0 }
 0x1b6   : > { %6088 = vst [vmem:[#allocation39_spill] sm:$0xff] %v5235_v51  ;;  %v5239_v18 = vpop.eup %3908  ;;  %3934 = vrcp.f32 %v1633_v0 }
 0x1b7   : > { %6090 = vst [vmem:[#allocation40_spill] sm:$0xff] %v5239_v18  ;;  %v5243_v60 = vpop.eup %3910  ;;  %3936 = vrcp.f32 %v1632_v59 }
 0x1b8   : > { %6091 = vst [vmem:[#allocation37_spill] sm:$0xff] %v5243_v60  ;;  %v5249_v7 = vpop.eup %3912  ;;  %3938 = vpow2.f32 %v3291_v31  ;;  %v5257_v31 = vpop.f32.mrf.mxu1 }
 0x1b9   : > { %6092 = vst [vmem:[#allocation22_spill] sm:$0xff] %v5249_v7  ;;  %v3915_v29 = vpop.eup %3914  ;;  %3940 = vpow2.f32 %v3300_v28 }
 0x1ba   : > { %v3917_v11 = vpop.eup %3916  ;;  %3942 = vpow2.f32 %v3307_v1  ;;  %v1640_v30 = vadd.f32 1.0, %v3915_v29  ;;  %v920_v1 = vadd.f32 %v6094_v10, %v6093_v42 }
 0x1bb   : > { %v3919_v17 = vpop.eup %3918  ;;  %3944 = vpow2.f32 %v3315_v4  ;;  %v1642_v55 = vadd.f32 1.0, %v3917_v11  ;;  %v922_v11 = vadd.f32 %v5082_v58, %v6093_v42 }
 0x1bc   : > { %v3921_v15 = vpop.eup %3920  ;;  %3946 = vpow2.f32 %v3317_v12  ;;  %v1641_v59 = vadd.f32 1.0, %v3919_v17  ;;  %v1033_v12 = vadd.f32 %v5172_v48, %v6093_v42  ;;  %v3324_v48 = vmul.f32 -1.442695, %v920_v1 }
 0x1bd   : > { %v3923_v0 = vpop.eup %3922  ;;  %3948 = vpow2.f32 %v3316_v41  ;;  %v1649_v21 = vadd.f32 1.0, %v3921_v15  ;;  %v5275_v15 = vpop.f32.mrf.mxu1 }
 0x1be   : > { %v3925_v20 = vpop.eup %3924  ;;  %3950 = vpow2.f32 %v3309_v57  ;;  %v1651_v28 = vadd.f32 1.0, %v3923_v0  ;;  %v6099_v0 = vld [vmem:[#allocation19_spill] sm:$0xff]  ;;  %v3326_v58 = vmul.f32 -1.442695, %v1033_v12 }
 0x1bf   : > { %v3927_v33 = vpop.eup %3926  ;;  %3952 = vpow2.f32 %v3318_v47  ;;  %v1650_v49 = vadd.f32 1.0, %v3925_v20  ;;  %v1035_v47 = vadd.f32 %v5196_v24, %v6093_v42  ;;  %v5281_v20 = vpop.f32.mrf.mxu0  ;;  %v3325_v24 = vmul.f32 -1.442695, %v922_v11 }
 0x1c0   : > { %v3929_v44 = vpop.eup %3928  ;;  %3954 = vrcp.f32 %v1640_v30  ;;  %v1658_v41 = vadd.f32 1.0, %v3927_v33  ;;  %v926_v33 = vadd.f32 %v5102_v5, %v6099_v0  ;;  %v5289_v10 = vpop.f32.mrf.mxu1  ;;  %v1037_v5 = vadd.f32 %v5207_v8, %v6099_v0 }
 0x1c1   : > { %v5263_v4 = vpop.eup %3930  ;;  %3956 = vrcp.f32 %v1642_v55  ;;  %v1660_v17 = vadd.f32 1.0, %v3929_v44  ;;  %v924_v55 = vadd.f32 %v5092_v62, %v6099_v0  ;;  %v5291_v39 = vpop.f32.mrf.mxu0 }
 0x1c2   : > { %6095 = vst [vmem:[#allocation45_spill] sm:$0xff] %v5263_v4  ;;  %v5267_v29 = vpop.eup %3932  ;;  %3958 = vrcp.f32 %v1641_v59  ;;  %6100 = vst [vmem:[#allocation34_spill] sm:$0xff] %v5291_v39 }
 0x1c3   : > { %6096 = vst [vmem:[#allocation38_spill] sm:$0xff] %v5267_v29  ;;  %v5271_v57 = vpop.eup %3934  ;;  %3960 = vrcp.f32 %v1649_v21  ;;  %v3333_v62 = vmul.f32 -1.442695, %v924_v55 }
 0x1c4   : > { %6097 = vst [vmem:[#allocation35_spill] sm:$0xff] %v5271_v57  ;;  %v5277_v30 = vpop.eup %3936  ;;  %3962 = vrcp.f32 %v1651_v28  ;;  %v3327_v28 = vmul.f32 -1.442695, %v1035_v47  ;;  %v5299_v47 = vpop.f32.mrf.mxu1 }
 0x1c5   : > { %6098 = vst [vmem:[#allocation36_spill] sm:$0xff] %v5277_v30  ;;  %v5283_v59 = vpop.eup %3938  ;;  %3964 = vrcp.f32 %v1650_v49  ;;  %v3334_v49 = vmul.f32 -1.442695, %v926_v33 }
 0x1c6   : > { %v5287_v21 = vpop.eup %3940  ;;  %3966 = vrcp.f32 %v1658_v41  ;;  %v5319_v51 = vpop.f32.mrf.mxu1 }
 0x1c7   : > { %v3943_v44 = vpop.eup %3942  ;;  %3968 = vrcp.f32 %v1660_v17  ;;  %v1039_v17 = vadd.f32 %v5227_v32, %v6099_v0  ;;  %v3335_v32 = vmul.f32 -1.442695, %v1037_v5 }
 0x1c8   : > { %v3945_v1 = vpop.eup %3944  ;;  %3970 = vpow2.f32 %v3324_v48  ;;  %v1659_v34 = vadd.f32 1.0, %v3943_v44  ;;  %v1058_v7 = vpop.f32.mrf.mxu1 }
 0x1c9   : > { %v3947_v2 = vpop.eup %3946  ;;  %3972 = vpow2.f32 %v3326_v58  ;;  %v1667_v11 = vadd.f32 1.0, %v3945_v1  ;;  %v6101_v58 = vld [vmem:[#allocation16_spill] sm:$0xff] }
 0x1ca   : > { %v3949_v12 = vpop.eup %3948  ;;  %3974 = vpow2.f32 %v3325_v24  ;;  %v1669_v55 = vadd.f32 1.0, %v3947_v2  ;;  %v930_v33 = vadd.f32 %v5121_v26, %v6101_v58  ;;  %v5305_v24 = vpop.f32.mrf.mxu0  ;;  %v932_v2 = vadd.f32 %v5135_v46, %v6101_v58 }
 0x1cb   : > { %v5295_v41 = vpop.eup %3950  ;;  %3976 = vpow2.f32 %v3327_v28  ;;  %6102 = vst [vmem:[#allocation46_spill] sm:$0xff] %v5305_v24  ;;  %v1668_v8 = vadd.f32 1.0, %v3949_v12  ;;  %v1043_v28 = vadd.f32 %v5247_v36, %v6101_v58  ;;  %v3336_v26 = vmul.f32 -1.442695, %v1039_v17  ;;  %v6107_v12 = vld [vmem:[#allocation17_spill] sm:$0xff] }
 0x1cc   : > { %v5301_v48 = vpop.eup %3952  ;;  %3978 = vpow2.f32 %v3333_v62  ;;  %v1045_v19 = vadd.f32 %v5253_v14, %v6101_v58  ;;  %v3342_v36 = vmul.f32 -1.442695, %v930_v33  ;;  %v5325_v5 = vpop.f32.mrf.mxu0  ;;  %v3343_v14 = vmul.f32 -1.442695, %v932_v2 }
 0x1cd   : > { %v5307_v44 = vpop.eup %3954  ;;  %3980 = vpow2.f32 %v3334_v49  ;;  %v3344_v46 = vmul.f32 -1.442695, %v1043_v28  ;;  %v1049_v18 = vadd.f32 %v5275_v15, %v6107_v12 }
 0x1ce   : > { %6103 = vst [vmem:[#allocation33_spill] sm:$0xff] %v5307_v44  ;;  %v5311_v1 = vpop.eup %3956  ;;  %3982 = vrcp.f32 %v1659_v34  ;;  %v934_v34 = vadd.f32 %v5145_v40, %v6107_v12  ;;  %v3345_v40 = vmul.f32 -1.442695, %v1045_v19  ;;  %v1062_v19 = vpop.f32.mrf.mxu1 }
 0x1cf   : > { %6104 = vst [vmem:[#allocation23_spill] sm:$0xff] %v5311_v1  ;;  %v5315_v62 = vpop.eup %3958  ;;  %3984 = vrcp.f32 %v1667_v11  ;;  %v1047_v11 = vadd.f32 %v5257_v31, %v6107_v12  ;;  %v5341_v31 = vpop.f32.mrf.mxu0 }
 0x1d0   : > { %6105 = vst [vmem:[#allocation47_spill] sm:$0xff] %v5315_v62  ;;  %v5321_v49 = vpop.eup %3960  ;;  %3986 = vrcp.f32 %v1669_v55  ;;  %v936_v55 = vadd.f32 %v5159_v27, %v6107_v12  ;;  %v3351_v28 = vmul.f32 -1.442695, %v934_v34  ;;  %6112 = vst [vmem:[#allocation49_spill] sm:$0xff] %v5341_v31 }
 0x1d1   : > { %6106 = vst [vmem:[#allocation32_spill] sm:$0xff] %v5321_v49  ;;  %v5327_v56 = vpop.eup %3962  ;;  %3988 = vrcp.f32 %v1668_v8  ;;  %v5343_v15 = vpop.f32.mrf.mxu0 }
 0x1d2   : > { %6108 = vst [vmem:[#allocation31_spill] sm:$0xff] %v5327_v56  ;;  %v5331_v17 = vpop.eup %3964  ;;  %3990 = vpow2.f32 %v3335_v32  ;;  %v3353_v32 = vmul.f32 -1.442695, %v1047_v11  ;;  %v3352_v27 = vmul.f32 -1.442695, %v936_v55 }
 0x1d3   : > { %6109 = vst [vmem:[#allocation48_spill] sm:$0xff] %v5331_v17  ;;  %v5335_v33 = vpop.eup %3966  ;;  %3992 = vpow2.f32 %v3336_v26  ;;  %v3354_v26 = vmul.f32 -1.442695, %v1049_v18 }
 0x1d4   : > { %6110 = vst [vmem:[#allocation29_spill] sm:$0xff] %v5335_v33  ;;  %v5339_v8 = vpop.eup %3968  ;;  %3994 = vpow2.f32 %v3342_v36 }
 0x1d5   : > { %6111 = vst [vmem:[#allocation20_spill] sm:$0xff] %v5339_v8  ;;  %v3971_v60 = vpop.eup %3970  ;;  %3996 = vpow2.f32 %v3344_v46  ;;  %v6113_v46 = vld [vmem:[#allocation14_spill] sm:$0xff] }
 0x1d6   : > { %v3973_v2 = vpop.eup %3972  ;;  %3998 = vpow2.f32 %v3343_v14  ;;  %v1676_v29 = vadd.f32 1.0, %v3971_v60  ;;  %v940_v11 = vadd.f32 %v5177_v50, %v6113_v46  ;;  %v942_v18 = vadd.f32 %v5202_v37, %v6113_v46  ;;  %v1064_v60 = vpop.f32.mrf.mxu1 }
 0x1d7   : > { %v3975_v4 = vpop.eup %3974  ;;  %4000 = vpow2.f32 %v3345_v40  ;;  %v1678_v36 = vadd.f32 1.0, %v3973_v2  ;;  %v6116_v2 = vld [vmem:[#allocation12_spill] sm:$0xff] }
 0x1d8   : > { %v3977_v57 = vpop.eup %3976  ;;  %4002 = vpow2.f32 %v3351_v28  ;;  %v1677_v1 = vadd.f32 1.0, %v3975_v4  ;;  %v5355_v4 = vpop.f32.mrf.mxu0  ;;  %v3360_v37 = vmul.f32 -1.442695, %v940_v11  ;;  %v1059_v44 = vadd.f32 %v1058_v7, %v6116_v2 }
 0x1d9   : > { %v3979_v30 = vpop.eup %3978  ;;  %4004 = vpow2.f32 %v3353_v32  ;;  %v1679_v55 = vadd.f32 1.0, %v3977_v57  ;;  %v944_v32 = vadd.f32 %v5213_v16, %v6116_v2  ;;  %v946_v57 = vadd.f32 %v5233_v25, %v6116_v2  ;;  %v6119_v16 = vld [vmem:[#allocation15_spill] sm:$0xff]  ;;  %v1066_v56 = vpop.f32.mrf.mxu1 }
 0x1da   : > { %v3981_v34 = vpop.eup %3980  ;;  %4006 = vpow2.f32 %v3352_v27  ;;  %v1685_v28 = vadd.f32 1.0, %v3979_v30  ;;  %v3361_v30 = vmul.f32 -1.442695, %v942_v18  ;;  %v950_v62 = vadd.f32 %v5251_v43, %v6119_v16 }
 0x1db   : > { %v5347_v14 = vpop.eup %3982  ;;  %4008 = vpow2.f32 %v3354_v26  ;;  %v1686_v50 = vadd.f32 1.0, %v3981_v34  ;;  %v1063_v25 = vadd.f32 %v1062_v19, %v6119_v16  ;;  %v5371_v34 = vpop.f32.mrf.mxu0  ;;  %v3370_v11 = vmul.f32 -1.442695, %v946_v57 }
 0x1dc   : > { %6114 = vst [vmem:[#allocation30_spill] sm:$0xff] %v5347_v14  ;;  %v5351_v40 = vpop.eup %3984  ;;  %4010 = vrcp.f32 %v1676_v29  ;;  %v952_v7 = vadd.f32 %v5255_v38, %v6119_v16  ;;  %v3372_v18 = vmul.f32 -1.442695, %v1059_v44  ;;  %v1065_v43 = vadd.f32 %v1064_v60, %v6119_v16  ;;  %v1068_v6 = vpop.f32.mrf.mxu1 }
 0x1dd   : > { %6115 = vst [vmem:[#allocation27_spill] sm:$0xff] %v5351_v40  ;;  %v5357_v27 = vpop.eup %3986  ;;  %4012 = vrcp.f32 %v1678_v36  ;;  %v3369_v36 = vmul.f32 -1.442695, %v944_v32  ;;  %v6120_v32 = vld [vmem:[#allocation13_spill] sm:$0xff]  ;;  %v5383_v38 = vpop.f32.mrf.mxu0 }
 0x1de   : > { %6117 = vst [vmem:[#allocation28_spill] sm:$0xff] %v5357_v27  ;;  %v5361_v26 = vpop.eup %3988  ;;  %4014 = vrcp.f32 %v1677_v1  ;;  %v954_v19 = vadd.f32 %v5261_v22, %v6120_v32  ;;  %v1067_v57 = vadd.f32 %v1066_v56, %v6120_v32  ;;  %v3379_v44 = vmul.f32 -1.442695, %v952_v7 }
 0x1df   : > { %6118 = vst [vmem:[#allocation50_spill] sm:$0xff] %v5361_v26  ;;  %v5364_v29 = vpop.eup %3990  ;;  %4016 = vrcp.f32 %v1679_v55  ;;  %v956_v60 = vadd.f32 %v5281_v20, %v6120_v32  ;;  %v1069_v22 = vadd.f32 %v1068_v6, %v6120_v32  ;;  %v5396_v20 = vpop.f32.mrf.mxu0  ;;  %v1053_v6 = vadd.f32 %v5289_v10, %v6113_v46 }
 0x1e0   : > { %v5368_v49 = vpop.eup %3992  ;;  %4018 = vrcp.f32 %v1685_v28  ;;  %v3378_v28 = vmul.f32 -1.442695, %v950_v62  ;;  %v3381_v62 = vmul.f32 -1.442695, %v1065_v43  ;;  %v3387_v56 = vmul.f32 -1.442695, %v954_v19 }
 0x1e1   : > { %v3995_v1 = vpop.eup %3994  ;;  %4020 = vrcp.f32 %v1686_v50  ;;  %v3380_v50 = vmul.f32 -1.442695, %v1063_v25  ;;  %v3389_v7 = vmul.f32 -1.442695, %v1067_v57  ;;  %v5408_v57 = vpop.f32.mrf.mxu0  ;;  %v3362_v13 = vmul.f32 -1.442695, %v1053_v6 }
 0x1e2   : > { %v5375_v55 = vpop.eup %3996  ;;  %4022 = vpow2.f32 %v3360_v37 }
 0x1e3   : > { %v3999_v24 = vpop.eup %3998  ;;  %4024 = vpow2.f32 %v3361_v30 }
 0x1e4   : > { %v5380_v17 = vpop.eup %4000  ;;  %4026 = vpow2.f32 %v3369_v36  ;;  %v1057_v36 = vadd.f32 %v5319_v51, %v6116_v2  ;;  %v3390_v51 = vmul.f32 -1.442695, %v1069_v22 }
 0x1e5   : > { %v4003_v8 = vpop.eup %4002  ;;  %4028 = vpow2.f32 %v3370_v11  ;;  %v1055_v11 = vadd.f32 %v5299_v47, %v6113_v46 }
 0x1e6   : > { %v5387_v37 = vpop.eup %4004  ;;  %4030 = vpow2.f32 %v3372_v18  ;;  %v3388_v18 = vmul.f32 -1.442695, %v956_v60  ;;  %v3371_v19 = vmul.f32 -1.442695, %v1057_v36  ;;  %v1703_v36 = vadd.f32 1.0, %v4003_v8 }
 0x1e7   : > { %v4007_v30 = vpop.eup %4006  ;;  %4032 = vpow2.f32 %v3378_v28 }
 0x1e8   : > { %v5392_v25 = vpop.eup %4008  ;;  %4034 = vpow2.f32 %v3380_v50  ;;  %v3363_v50 = vmul.f32 -1.442695, %v1055_v11 }
 0x1e9   : > { %v5398_v33 = vpop.eup %4010  ;;  %4036 = vpow2.f32 %v3379_v44  ;;  %v1694_v44 = vadd.f32 1.0, %v3995_v1 }
 0x1ea   : > { %v5402_v43 = vpop.eup %4012  ;;  %4038 = vpow2.f32 %v3381_v62  ;;  %v1695_v62 = vadd.f32 1.0, %v3999_v24 }
 0x1eb   : > { %6121 = vst [vmem:[#allocation21_spill] sm:$0xff] %v5402_v43  ;;  %v5404_v28 = vpop.eup %4014  ;;  %4040 = vpow2.f32 %v3387_v56  ;;  %v5414_v56 = vpop.f32.mrf.mxu0 }
 0x1ec   : > { %v5406_v47 = vpop.eup %4016  ;;  %4042 = vpow2.f32 %v3389_v7  ;;  %v1704_v7 = vadd.f32 1.0, %v4007_v30 }
 0x1ed   : > { %v5410_v31 = vpop.eup %4018  ;;  %4044 = vpow2.f32 %v3388_v18 }
 0x1ee   : > { %v5412_v10 = vpop.eup %4020  ;;  %4046 = vpow2.f32 %v3390_v51  ;;  %v5416_v51 = vpop.f32.mrf.mxu0 }
 0x1ef   : > { %v4023_v60 = vpop.eup %4022  ;;  %4048 = vpow2.f32 %v3371_v19 }
 0x1f0   : > { %v4025_v22 = vpop.eup %4024  ;;  %4050 = vpow2.f32 %v3363_v50  ;;  %v1712_v27 = vadd.f32 1.0, %v4023_v60 }
 0x1f1   : > { %v4027_v11 = vpop.eup %4026  ;;  %4052 = vpow2.f32 %v3362_v13  ;;  %v1713_v18 = vadd.f32 1.0, %v4025_v22 }
 0x1f2   : > { %v4029_v14 = vpop.eup %4028  ;;  %4054 = vrcp.f32 %v1694_v44  ;;  %v1721_v1 = vadd.f32 1.0, %v4027_v11  ;;  %v3472_v44 = vpop.f32.mrf.mxu0 }
 0x1f3   : > { %v4031_v6 = vpop.eup %4030  ;;  %4056 = vrcp.f32 %v1695_v62  ;;  %v1722_v8 = vadd.f32 1.0, %v4029_v14 }
 0x1f4   : > { %v4033_v40 = vpop.eup %4032  ;;  %4058 = vrcp.f32 %v1703_v36 }
 0x1f5   : > { %v4035_v24 = vpop.eup %4034  ;;  %4060 = vrcp.f32 %v1704_v7  ;;  %v1730_v50 = vadd.f32 1.0, %v4033_v40  ;;  %v1153_v40 = vpop.f32.mrf.mxu0 }
 0x1f6   : > { %v4037_v19 = vpop.eup %4036  ;;  %4062 = vrcp.f32 %v1712_v27 }
 0x1f7   : > { %v4039_v39 = vpop.eup %4038  ;;  %4064 = vrcp.f32 %v1713_v18  ;;  %v1731_v13 = vadd.f32 1.0, %v4037_v19  ;;  %v1732_v18 = vadd.f32 1.0, %v4035_v24  ;;  %v1705_v24 = vadd.f32 1.0, %v5387_v37 }
 0x1f8   : > { %v4041_v30 = vpop.eup %4040  ;;  %4066 = vrcp.f32 %v1721_v1  ;;  %v1733_v14 = vadd.f32 1.0, %v4039_v39  ;;  %v1724_v1 = vadd.f32 1.0, %v4031_v6  ;;  %v1687_v37 = vadd.f32 1.0, %v5364_v29 }
 0x1f9   : > { %v4043_v60 = vpop.eup %4042  ;;  %4068 = vrcp.f32 %v1722_v8  ;;  %v1739_v62 = vadd.f32 1.0, %v4041_v30  ;;  %v3473_v30 = vpop.f32.mrf.mxu0  ;;  %v1149_v29 = vadd.f32 %v5414_v56, %v6107_v12 }
 0x1fa   : > { %v4045_v22 = vpop.eup %4044  ;;  %4070 = vrcp.f32 %v1730_v50  ;;  %v1741_v11 = vadd.f32 1.0, %v4043_v60 }
 0x1fb   : > { %v4047_v36 = vpop.eup %4046  ;;  %4072 = vrcp.f32 %v1731_v13  ;;  %v1740_v61 = vadd.f32 1.0, %v4045_v22  ;;  %v3355_v56 = vmul.f32 -1.442695, %v1149_v29 }
 0x1fc   : > { %v4049_v7 = vpop.eup %4048  ;;  %4074 = vrcp.f32 %v1739_v62  ;;  %v1742_v27 = vadd.f32 1.0, %v4047_v36  ;;  %v1697_v36 = vadd.f32 1.0, %v5380_v17 }
 0x1fd   : > { %v4051_v26 = vpop.eup %4050  ;;  %4076 = vrcp.f32 %v1740_v61  ;;  %v1723_v8 = vadd.f32 1.0, %v4049_v7  ;;  %v1706_v61 = vadd.f32 1.0, %v5392_v25 }
 0x1fe   : > { %v4053_v19 = vpop.eup %4052  ;;  %4078 = vrcp.f32 %v1742_v27  ;;  %v1715_v13 = vadd.f32 1.0, %v4051_v26  ;;  %v1162_v26 = vadd.f32 %v3472_v44, %v6119_v16  ;;  %v1165_v27 = vadd.f32 %v3473_v30, %v6120_v32 }
 0x1ff   : > { %v5418_v43 = vpop.eup %4054  ;;  %4080 = vrcp.f32 %v1741_v11  ;;  %v1714_v39 = vadd.f32 1.0, %v4053_v19  ;;  %v1156_v11 = vpop.f32.mrf.mxu0  ;;  %v1670_v32 = vadd.f32 1.0, %v5301_v48 }
 0x200   : > { %v5420_v50 = vpop.eup %4056  ;;  %4082 = vrcp.f32 %v1733_v14  ;;  %v1696_v14 = vadd.f32 1.0, %v5375_v55  ;;  %v1157_v17 = vadd.f32 %v1156_v11, %v6116_v2  ;;  %v3382_v16 = vmul.f32 -1.442695, %v1162_v26 }
 0x201   : > { %v5422_v60 = vpop.eup %4058  ;;  %4084 = vrcp.f32 %v1732_v18  ;;  %v1688_v18 = vadd.f32 1.0, %v5368_v49  ;;  %v1154_v55 = vadd.f32 %v1153_v40, %v6113_v46  ;;  %v1146_v46 = vadd.f32 %v5396_v20, %v6101_v58 }
 0x202   : > { %v5424_v62 = vpop.eup %4060  ;;  %4086 = vrcp.f32 %v1724_v1  ;;  %v3373_v30 = vmul.f32 -1.442695, %v1157_v17  ;;  %v1643_v58 = vadd.f32 1.0, %v5283_v59  ;;  %v1133_v59 = vadd.f32 %v5371_v34, %v6085_v52 }
 0x203   : > { %v5427_v6 = vpop.eup %4062  ;;  %4088 = vrcp.f32 %v1723_v8  ;;  %v3391_v8 = vmul.f32 -1.442695, %v1165_v27  ;;  %v3364_v40 = vmul.f32 -1.442695, %v1154_v55  ;;  %v3346_v26 = vmul.f32 -1.442695, %v1146_v46 }
 0x204   : > { %v4065_v22 = vpop.eup %4064  ;;  %4090 = vrcp.f32 %v1715_v13  ;;  %v1616_v34 = vadd.f32 1.0, %v5188_v35  ;;  %v1122_v35 = vadd.f32 %v5355_v4, %v6062_v63  ;;  %v6123_v4 = vld [vmem:[#allocation50_spill] sm:$0xff]  ;;  %v6131_v55 = vld [vmem:[#allocation29_spill] sm:$0xff]  ;;  %v6136_v46 = vld [vmem:[#allocation32_spill] sm:$0xff] }
 0x205   : > { %v4067_v7 = vpop.eup %4066  ;;  %4092 = vrcp.f32 %v1714_v39  ;;  %v1661_v39 = vadd.f32 1.0, %v5295_v41  ;;  %v1141_v41 = vadd.f32 %v5416_v51, %v6099_v0  ;;  %v1634_v0 = vadd.f32 1.0, %v5209_v45  ;;  %v6125_v27 = vld [vmem:[#allocation34_spill] sm:$0xff] }
 0x206   : > { %v4069_v25 = vpop.eup %4068  ;;  %4094 = vrcp.f32 %v1706_v61 }
 0x207   : > { %v4071_v19 = vpop.eup %4070  ;;  %4096 = vrcp.f32 %v1705_v24  ;;  %v1652_v24 = vadd.f32 1.0, %v5287_v21  ;;  %v1138_v21 = vadd.f32 %v5408_v57, %v6093_v42  ;;  %v1625_v57 = vadd.f32 1.0, %v5200_v53 }
 0x208   : > { %v4073_v1 = vpop.eup %4072  ;;  %4098 = vrcp.f32 %v1697_v36  ;;  %v1125_v53 = vadd.f32 %v5383_v38, %v6070_v54 }
 0x209   : > { %v4075_v44 = vpop.eup %4074  ;;  %4100 = vrcp.f32 %v1696_v14 }
 0x20a   : > { %v4077_v13 = vpop.eup %4076  ;;  %4102 = vrcp.f32 %v1688_v18  ;;  %v3292_v18 = vmul.f32 -1.442695, %v1122_v35  ;;  %v6149_v35 = vld [vmem:[#allocation39_spill] sm:$0xff] }
 0x20b   : > { %v4079_v49 = vpop.eup %4078  ;;  %4104 = vrcp.f32 %v1687_v37  ;;  %2175 = vmatprep.subr.mxu1 %v4077_v13 }
 0x20c   : > { %v4081_v2 = vpop.eup %4080  ;;  %4106 = vpow2.f32 %v3382_v16  ;;  %2246 = vmatprep.subr.mxu0 %v4079_v49  ;;  %2176 = vmatpush1.msra.mxu1 %v4075_v44  ;;  %v6130_v16 = vld [vmem:[#allocation49_spill] sm:$0xff]  ;;  %v6133_v49 = vld [vmem:[#allocation48_spill] sm:$0xff] }
 0x20d   : > { %v4083_v61 = vpop.eup %4082  ;;  %4108 = vpow2.f32 %v3391_v8  ;;  %2247 = vmatpush1.msra.mxu0 %v4081_v2  ;;  %2177 = vmatprep.subr.mxu1 %v4073_v1  ;;  %v6129_v1 = vld [vmem:[#allocation26_spill] sm:$0xff]  ;;  %v6134_v2 = vld [vmem:[#allocation25_spill] sm:$0xff] }
 0x20e   : > { %v4085_v48 = vpop.eup %4084  ;;  %4110 = vrcp.f32 %v1670_v32  ;;  %2248 = vmatprep.subr.mxu0 %v4083_v61  ;;  %2178 = vmatpush1.msra.mxu1 %v4071_v19  ;;  %v6128_v19 = vld [vmem:[#allocation30_spill] sm:$0xff]  ;;  %v1109_v44 = vadd.f32 %v6130_v16, %v6129_v1  ;;  %v6132_v32 = vld [vmem:[#allocation20_spill] sm:$0xff] }
 0x20f   : > { %v4087_v12 = vpop.eup %4086  ;;  %4112 = vpow2.f32 %v3373_v30  ;;  %2249 = vmatpush1.msra.mxu0 %v4085_v48  ;;  %2179 = vmatprep.subr.mxu1 %v4069_v25 }
 0x210   : > { %v4089_v36 = vpop.eup %4088  ;;  %4114 = vrcp.f32 %v1661_v39  ;;  %2250 = vmatprep.subr.mxu0 %v4087_v12  ;;  %2180 = vmatpush1.msra.mxu1 %v4067_v7  ;;  %v3337_v7 = vmul.f32 -1.442695, %v1141_v41  ;;  %v6135_v39 = vld [vmem:[#allocation46_spill] sm:$0xff]  ;;  %v6138_v12 = vld [vmem:[#allocation47_spill] sm:$0xff]  ;;  %v3265_v41 = vmul.f32 -1.442695, %v1109_v44 }
 0x211   : > { %v4091_v20 = vpop.eup %4090  ;;  %4116 = vpow2.f32 %v3364_v40  ;;  %2251 = vmatpush1.msra.mxu0 %v4089_v36  ;;  %2181 = vmatprep.subr.mxu1 %v4065_v22  ;;  %v3328_v22 = vmul.f32 -1.442695, %v1138_v21  ;;  %v1106_v61 = vadd.f32 %v6135_v39, %v6134_v2  ;;  %v6139_v36 = vld [vmem:[#allocation33_spill] sm:$0xff]  ;;  %v6141_v21 = vld [vmem:[#allocation36_spill] sm:$0xff] }
 0x212   : > { %v4093_v11 = vpop.eup %4092  ;;  %4118 = vrcp.f32 %v1652_v24  ;;  %2252 = vmatprep.subr.mxu0 %v4091_v20  ;;  %2182 = vmatpush1.msra.mxu1 %v5427_v6  ;;  %v1130_v6 = vadd.f32 %v5343_v15, %v6076_v23  ;;  %v1607_v15 = vadd.f32 1.0, %v5180_v9  ;;  %v6137_v24 = vld [vmem:[#allocation31_spill] sm:$0xff] }
 0x213   : > { %v4095_v51 = vpop.eup %4094  ;;  %4120 = vpow2.f32 %v3355_v56  ;;  %2253 = vmatpush1.msra.mxu0 %v4093_v11  ;;  %2183 = vmatprep.subr.mxu1 %v5424_v62  ;;  %v3319_v62 = vmul.f32 -1.442695, %v1133_v59 }
 0x214   : > { %v4097_v42 = vpop.eup %4096  ;;  %4122 = vrcp.f32 %v1643_v58  ;;  %2254 = vmatprep.subr.mxu0 %v4095_v51  ;;  %2184 = vmatpush1.msra.mxu1 %v5422_v60  ;;  %v3310_v38 = vmul.f32 -1.442695, %v1130_v6  ;;  %v6142_v51 = vld [vmem:[#allocation38_spill] sm:$0xff]  ;;  %v6145_v6 = vld [vmem:[#allocation37_spill] sm:$0xff] }
 0x215   : > { %v4099_v45 = vpop.eup %4098  ;;  %4124 = vpow2.f32 %v3346_v26  ;;  %2255 = vmatpush1.msra.mxu0 %v4097_v42  ;;  %2185 = vmatprep.subr.mxu1 %v5420_v50  ;;  %v3301_v50 = vmul.f32 -1.442695, %v1125_v53  ;;  %v6140_v26 = vld [vmem:[#allocation23_spill] sm:$0xff]  ;;  %v6147_v53 = vld [vmem:[#allocation40_spill] sm:$0xff] }
 0x216   : > { %v4101_v52 = vpop.eup %4100  ;;  %4126 = vrcp.f32 %v1634_v0  ;;  %2256 = vmatprep.subr.mxu0 %v4099_v45  ;;  %2186 = vmatpush1.msra.mxu1 %v5418_v43  ;;  %v3256_v0 = vmul.f32 -1.442695, %v1106_v61  ;;  %v6143_v42 = vld [vmem:[#allocation35_spill] sm:$0xff] }
 0x217   : > { %v4103_v60 = vpop.eup %4102  ;;  %4128 = vpow2.f32 %v3337_v7  ;;  %2257 = vmatpush1.msra.mxu0 %v4101_v52  ;;  %2187 = vmatprep.subr.mxu1 %v5412_v10  ;;  %v1117_v10 = vadd.f32 %v5325_v5, %v4709_v3  ;;  %v6126_v3 = vld [vmem:[#allocation27_spill] sm:$0xff] }
 0x218   : > { %v4105_v23 = vpop.eup %4104  ;;  %4130 = vrcp.f32 %v1625_v57  ;;  %2258 = vmatprep.subr.mxu0 %v4103_v60  ;;  %2188 = vmatpush1.msra.mxu1 %v5410_v31  ;;  %v6122_v31 = vld [vmem:[#allocation21_spill] sm:$0xff] }
 0x219   : > { %v4107_v54 = vpop.eup %4106  ;;  %4132 = vpow2.f32 %v3328_v22  ;;  %2259 = vmatpush1.msra.mxu0 %v4105_v23  ;;  %2189 = vmatprep.subr.mxu1 %v5404_v28  ;;  %v6124_v28 = vld [vmem:[#allocation24_spill] sm:$0xff]  ;;  %v3283_v17 = vmul.f32 -1.442695, %v1117_v10  ;;  %v6144_v57 = vld [vmem:[#allocation45_spill] sm:$0xff] }
 0x21a   : > { %v4109_v43 = vpop.eup %4108  ;;  %4134 = vrcp.f32 %v1616_v34  ;;  %2260 = vmatprep.subr.mxu0 %v5406_v47  ;;  %2190 = vmatpush1.msra.mxu1 %v5398_v33  ;;  %v1114_v25 = vadd.f32 %v6125_v27, %v6124_v28  ;;  %v1734_v47 = vadd.f32 1.0, %v4107_v54  ;;  %v6127_v33 = vld [vmem:[#allocation28_spill] sm:$0xff]  ;;  %v6146_v34 = vld [vmem:[#allocation22_spill] sm:$0xff]  ;;  %v6150_v54 = vld [vmem:[#allocation41_spill] sm:$0xff] }
 0x21b   : > { %v4111_v63 = vpop.eup %4110  ;;  %4136 = vpow2.f32 %v3319_v62  ;;  %v1743_v9 = vadd.f32 1.0, %v4109_v43  ;;  %2261 = vmatpush1.msra.mxu0 %v6122_v31  ;;  %2191 = vmatprep.subr.mxu1 %v6123_v4  ;;  %v6148_v62 = vld [vmem:[#allocation42_spill] sm:$0xff]  ;;  %v6151_v43 = vld [vmem:[#allocation43_spill] sm:$0xff]  ;;  %v6153_v4 = vmov 0.0  }
 0x21c   : > { %v4113_v14 = vpop.eup %4112  ;;  %4138 = vrcp.f32 %v1607_v15  ;;  %2262 = vmatprep.subr.mxu0 %v4111_v63  ;;  %2192 = vmatpush1.msra.mxu1 %v6126_v3  ;;  %v3274_v30 = vmul.f32 -1.442695, %v1114_v25  ;;  %v6152_v63 = vld [vmem:[#allocation44_spill] sm:$0xff] }
 0x21d   : > { %v4115_v5 = vpop.eup %4114  ;;  %4140 = vpow2.f32 %v3310_v38  ;;  %2263 = vmatpush1.msra.mxu0 %v6127_v33  ;;  %2193 = vmatprep.subr.mxu1 %v6128_v19  ;;  %v1725_v13 = vadd.f32 1.0, %v4113_v14 }
 0x21e   : > { %v4117_v37 = vpop.eup %4116  ;;  %4142 = vpow2.f32 %v3301_v50  ;;  %2264 = vmatprep.subr.mxu0 %v4115_v5  ;;  %2194 = vmatpush1.msra.mxu1 %v6131_v55 }
 0x21f   : > { %v4119_v8 = vpop.eup %4118  ;;  %4144 = vrcp.f32 %v1743_v9  ;;  %2265 = vmatpush1.msra.mxu0 %v6132_v32  ;;  %2195 = vmatprep.subr.mxu1 %v6133_v49  ;;  %v1716_v48 = vadd.f32 1.0, %v4117_v37  ;;  %v5508_v9 = vld [vmem:[%s5969_s3] sm:$0xff] }
 0x220   : > { %v4121_v29 = vpop.eup %4120  ;;  %4146 = vpow2.f32 %v3292_v18  ;;  %2266 = vmatprep.subr.mxu0 %v4119_v8  ;;  %2196 = vmatpush1.msra.mxu1 %v6136_v46 }
 0x221   : > { %v4123_v40 = vpop.eup %4122  ;;  %4148 = vrcp.f32 %v1734_v47  ;;  %2267 = vmatpush1.msra.mxu0 %v6137_v24  ;;  %2197 = vmatprep.subr.mxu1 %v6138_v12  ;;  %v1707_v20 = vadd.f32 1.0, %v4121_v29  ;;  %v5531_v12 = vstv %s2387_s12  ;;  %s4337_s12 = smov [#allocation6]  }
 0x222   : > { %v4125_v56 = vpop.eup %4124  ;;  %4150 = vpow2.f32 %v3283_v17  ;;  %2268 = vmatprep.subr.mxu0 %v4123_v40  ;;  %2198 = vmatpush1.msra.mxu1 %v6139_v36  ;;  %s4237_s20 = sshll.u32 %s4337_s12, 4  ;;  %s4238_s20 = int_to_ptr.vmem [resolvable:$false] %s4237_s20 }
 0x223   : > { %v4127_v58 = vpop.eup %4126  ;;  %4152 = vrcp.f32 %v1725_v13  ;;  %2269 = vmatpush1.msra.mxu0 %v6140_v26  ;;  %2199 = vmatprep.subr.mxu1 %v6141_v21  ;;  %v1698_v7 = vadd.f32 1.0, %v4125_v56  ;;  %v5541_v26 = vld [vmem:[%s5536_s23] sm:$0xff]  ;;  %s4239_s21 = scalar_lea.vmem %s4238_s20, 288  ;;  %p4240_p7 = scmp.lt.s32.totalorder %s3058_s25, %s4238_s20 }
 0x224   : > { %v4129_v11 = vpop.eup %4128  ;;  %4154 = vpow2.f32 %v3274_v30  ;;  %2270 = vmatprep.subr.mxu0 %v4127_v58  ;;  %2200 = vmatpush1.msra.mxu1 %v6142_v51  ;;  %v2456_v58 = vlaneseq  ;;  %v4336_v51 = vmov 1966171168   ;;  %p4241_p8 = scmp.lt.s32.totalorder %s4239_s21, %s4233_s18 }
 0x225   : > { %v4131_v59 = vpop.eup %4130  ;;  %4156 = vrcp.f32 %v1716_v48  ;;  %2271 = vmatpush1.msra.mxu0 %v6143_v42  ;;  %2201 = vmatprep.subr.mxu1 %v6144_v57  ;;  %v1689_v52 = vadd.f32 1.0, %v4129_v11  ;;  %v3512_v42 = vtrunc.f32 %v5541_v26 }
 0x226   : > { %v4133_v45 = vpop.eup %4132  ;;  %4158 = vpow2.f32 %v3265_v41  ;;  %2272 = vmatprep.subr.mxu0 %v4131_v59  ;;  %2202 = vmatpush1.msra.mxu1 %v6145_v6  ;;  %v2454_v59 = vunpack.c.l.s4 %v4336_v51  ;;  %v5550_v6 = vstv %s2738_s24  ;;  %p4242_p9 = por %p4241_p8, %p4240_p7 }
 0x227   : > { %v4135_v22 = vpop.eup %4134  ;;  %4160 = vrcp.f32 %v1707_v20  ;;  %2273 = vmatpush1.msra.mxu0 %v6146_v34  ;;  %2203 = vmatprep.subr.mxu1 %v6147_v53  ;;  %v1680_v15 = vadd.f32 1.0, %v4133_v45  ;;  %v5555_v53 = vcvt.f32.s32 %v3512_v42 }
 0x228   : > { %v4137_v60 = vpop.eup %4136  ;;  %4162 = vpow2.f32 %v3256_v0  ;;  %2274 = vmatprep.subr.mxu0 %v4135_v22  ;;  %2204 = vmatpush1.msra.mxu1 %v6148_v62  ;;  %v2455_v34 = vunpack.c.0.s8 %v2454_v59  ;;  %p4243_p0 = pnand %p4242_p9, %p4236_p5 }
 0x229   : > { %v4139_v23 = vpop.eup %4138  ;;  %4164 = vrcp.f32 %v1698_v7  ;;  %2275 = vmatpush1.msra.mxu0 %v6149_v35  ;;  %2205 = vmatprep.subr.mxu1 %v6150_v54  ;;  %v1671_v50 = vadd.f32 1.0, %v4137_v60  ;;  %v5547_v7 = vshrl.u32 %v2456_v58, 7 }
 0x22a   : > { %v4141_v38 = vpop.eup %4140  ;;  %2276 = vmatprep.subr.mxu0 %v4139_v23  ;;  %2206 = vmatpush1.msra.mxu1 %v6151_v43  ;;  %4166 = vrcp.f32 %v1689_v52  ;;  %v5553_v52 = vand.u32 127, %v2456_v58  ;;  %v6154_v43 = vmov 0  }
 0x22b   : > { %v4143_v10 = vpop.eup %4142  ;;  %2277 = vmatpush1.msra.mxu0 %v6152_v63  ;;  %2240 = vmatmul.mubr.f32.vlgmr.msra.gmra.mxu1 %v5508_v9  ;;  %v1662_v28 = vadd.f32 1.0, %v4141_v38  ;;  %4168 = vrcp.f32 %v1680_v15  ;;  %v5558_v60 = vsub.s32 0, %v5547_v7  ;;  %v5564_v15 = vsub.s32 %v2455_v34, %v5547_v7 }
 0x22c   : > { %v4145_v31 = vpop.eup %4144  ;;  %2311 = vmatmul.mubr.f32.vlgmr.msra.gmra.mxu0 %v5508_v9  ;;  %3474 = vmatprep.subr.mxu1 %v6153_v4  ;;  %4170 = vrcp.f32 %v1671_v50  ;;  %v1653_v18 = vadd.f32 1.0, %v4143_v10  ;;  %v2750_v62 = vadd.s32 %v5550_v6, %v5553_v52  ;;  %v2742_v23 = vadd.s32 256, %v5553_v52 }
 0x22d   : > { %v4147_v14 = vpop.eup %4146  ;;  %3475 = vmatpush3.msra.mxu1 %v4145_v31  ;;  %3506 = vmatprep.mubr.msk.f32.mxu1 %vm4335_vm1, %v6153_v4  ;;  %4172 = vrcp.f32 %v1662_v28  ;;  %v2543_v35 = vrot.slane %v5555_v53, %v5558_v60  ;;  %v5569_v54 = vsub.s32 2, %v5547_v7  ;;  %v2746_v51 = vadd.s32 768, %v5553_v52 }
 0x22e   : > { %v4149_v27 = vpop.eup %4148  ;;  %3476 = vmatprep.subr.mxu1 %v6153_v4  ;;  %v1644_v47 = vadd.f32 1.0, %v4147_v14  ;;  %4174 = vrcp.f32 %v1653_v18  ;;  %vm2759_vm6 = vcmp.lt.s32.totalorder %v2750_v62, 4100  ;;  %v2741_v14 = vadd.s32 128, %v5553_v52 }
 0x22f   : > { %v4151_v25 = vpop.eup %4150  ;;  %3477 = vmatpush3.msra.mxu1 %v4149_v27  ;;  %v2752_v18 = vadd.s32 %v5550_v6, %v2742_v23  ;;  %v2747_v59 = vadd.s32 896, %v5553_v52  ;;  %v2745_v42 = vadd.s32 640, %v5553_v52 }
 0x230   : > { %v4153_v3 = vpop.eup %4152  ;;  %3478 = vmatprep.subr.mxu1 %v6153_v4  ;;  %v1635_v37 = vadd.f32 1.0, %v4151_v25  ;;  %4176 = vrcp.f32 %v1644_v47 }
 0x231   : > { %v4155_v5 = vpop.eup %4154  ;;  %3479 = vmatpush3.msra.mxu1 %v4153_v3  ;;  %v2743_v3 = vadd.s32 384, %v5553_v52  ;;  %vm2761_vm10 = vcmp.lt.s32.totalorder %v2752_v18, 4100  ;;  %v2756_v18 = vadd.s32 %v5550_v6, %v2746_v51 }
 0x232   : > { %v4157_v33 = vpop.eup %4156  ;;  %3480 = vmatprep.subr.mxu1 %v6153_v4  ;;  %v1626_v16 = vadd.f32 1.0, %v4155_v5  ;;  %4178 = vrcp.f32 %v1635_v37 }
 0x233   : > { %v4159_v19 = vpop.eup %4158  ;;  %3481 = vmatpush3.msra.mxu1 %v4157_v33  ;;  %vm2765_vm1 = vcmp.lt.s32.totalorder %v2756_v18, 4100 }
 0x234   : > { %v4161_v17 = vpop.eup %4160  ;;  %3482 = vmatprep.subr.mxu1 %v6153_v4  ;;  %v1617_v55 = vadd.f32 1.0, %v4159_v19  ;;  %4180 = vrcp.f32 %v1626_v16 }
 0x235   : > { %v4163_v1 = vpop.eup %4162  ;;  %3483 = vmatpush3.msra.mxu1 %v4161_v17 }
 0x236   : > { %v4165_v44 = vpop.eup %4164  ;;  %3484 = vmatprep.subr.mxu1 %v6153_v4  ;;  %v1608_v13 = vadd.f32 1.0, %v4163_v1  ;;  %4182 = vrcp.f32 %v1617_v55  ;;  %v2751_v55 = vadd.s32 %v5550_v6, %v2741_v14 }
 0x237   : > { %3485 = vmatpush3.msra.mxu1 %v4165_v44  ;;  %v4167_v8 = vpop.eup %4166  ;;  %v2551_v44 = vrot.slane %v5555_v53, %v5569_v54 }
 0x238   : > { %3486 = vmatprep.subr.mxu1 %v6153_v4  ;;  %v4169_v32 = vpop.eup %4168  ;;  %4184 = vrcp.f32 %v1608_v13  ;;  %vm2760_vm12 = vcmp.lt.s32.totalorder %v2751_v55, 4100 }
 0x239   : > { %3487 = vmatpush3.msra.mxu1 %v4167_v8  ;;  %v4171_v49 = vpop.eup %4170  ;;  %v5598_v8 = vsub.s32 1, %v5547_v7 }
 0x23a   : > { %3488 = vmatprep.subr.mxu1 %v6153_v4  ;;  %v4173_v29 = vpop.eup %4172 }
 0x23b   : > { %3489 = vmatpush3.msra.mxu1 %v4169_v32  ;;  %v4175_v30 = vpop.eup %4174 }
 0x23c   : > { %3490 = vmatprep.subr.mxu1 %v6153_v4 }
 0x23d   : > { %3491 = vmatpush3.msra.mxu1 %v4171_v49  ;;  %v4177_v2 = vpop.eup %4176 }
 0x23e   : > { %3492 = vmatprep.subr.mxu1 %v6153_v4 }
 0x23f   : > { %3493 = vmatpush3.msra.mxu1 %v4173_v29  ;;  %v4179_v39 = vpop.eup %4178 }
 0x240   : > { %3494 = vmatprep.subr.mxu1 %v6153_v4 }
 0x241   : > { %3495 = vmatpush3.msra.mxu1 %v4175_v30  ;;  %v4181_v61 = vpop.eup %4180 }
 0x242   : > { %3496 = vmatprep.subr.mxu1 %v6153_v4 }
 0x243   : > { %3497 = vmatpush3.msra.mxu1 %v4177_v2  ;;  %v4183_v46 = vpop.eup %4182 }
 0x244   : > { %3498 = vmatprep.subr.mxu1 %v6153_v4 }
 0x245   : > { %3499 = vmatpush3.msra.mxu1 %v4179_v39  ;;  %v4185_v40 = vpop.eup %4184 }
 0x246   : > { %3500 = vmatprep.subr.mxu1 %v6153_v4 }
 0x247   : > { %3501 = vmatpush3.msra.mxu1 %v4181_v61 }
 0x248   : > { %3502 = vmatprep.subr.mxu1 %v6153_v4 }
 0x249   : > { %3503 = vmatpush3.msra.mxu1 %v4183_v46  ;;  %v2753_v46 = vadd.s32 %v5550_v6, %v2743_v3  ;;  %v2757_v3 = vadd.s32 %v5550_v6, %v2747_v59 }
 0x24a   : > { %3504 = vmatprep.subr.mxu1 %v6153_v4 }
 0x24b   : > { %3505 = vmatpush3.msra.mxu1 %v4185_v40  ;;  %vm2762_vm13 = vcmp.lt.s32.totalorder %v2753_v46, 4100 }
 0x24c   : > { %3507 = vmatmul.mubr.f32.vlgmr.msra.gmra.mxu1 %v5508_v9 }
 0x26c   : > { %v2099_v48 = vpop.f32.mrf.mxu1 }
 0x26d   : > { %v2170_v24 = vpop.f32.mrf.mxu0  ;;  %v2389_v41 = vadd.f32 %v5531_v12, %v2099_v48 }
 0x26e   : > { %v2101_v56 = vpop.f32.mrf.mxu1  ;;  %v2391_v20 = vadd.f32 %v5531_v12, %v2170_v24  ;;  %v5616_v24 = vsel %vm2759_vm6, 1.0, %v6153_v4 }
 0x26f   : > { %v2172_v36 = vpop.f32.mrf.mxu0  ;;  %v2390_v21 = vadd.f32 %v5531_v12, %v2101_v56  ;;  %v2398_v0 = vmul.f32 0.5, %v2389_v41  ;;  %vm2520_vm2 = vcmp.gt.f32.partialorder %v2389_v41, 0.0 }
 0x270   : > { %v2392_v11 = vadd.f32 %v5531_v12, %v2172_v36  ;;  %v2400_v57 = vmul.f32 0.5, %v2391_v20  ;;  %vm2522_vm4 = vcmp.gt.f32.partialorder %v2391_v20, 0.0  ;;  %v5572_v10 = vsel %vm2520_vm2, 1, %v6154_v43 }
 0x271   : > { %v2399_v45 = vmul.f32 0.5, %v2390_v21  ;;  %4186 = vtanh.f32 %v2398_v0  ;;  %vm2521_vm3 = vcmp.gt.f32.partialorder %v2390_v21, 0.0  ;;  %v5579_v31 = vsel %vm2522_vm4, 1, %v6154_v43 }
 0x272   : > { %v2401_v22 = vmul.f32 0.5, %v2392_v11  ;;  %4188 = vtanh.f32 %v2400_v57  ;;  %vm2523_vm5 = vcmp.gt.f32.partialorder %v2392_v11, 0.0  ;;  %v5575_v50 = vsel %vm2521_vm3, 1, %v6154_v43 }
 0x273   : > { %4190 = vtanh.f32 %v2399_v45  ;;  %v5583_v28 = vsel %vm2523_vm5, 1, %v6154_v43  ;;  %v2957_v19 = vcombine.low %v5572_v10, %v5575_v50  ;;  %v2547_v36 = vrot.slane %v5555_v53, %v5598_v8 }
 0x274   : > { %4192 = vtanh.f32 %v2401_v22  ;;  %v2958_v1 = vcombine.low %v5579_v31, %v5583_v28  ;;  %v2744_v20 = vadd.s32 512, %v5553_v52  ;;  %v5629_v0 = vsel %vm2761_vm10, 1.0, %v6153_v4 }
 0x275   : > { %v2967_v61 = vrot.slane %v2957_v19, %v5564_v15  ;;  %v5635_v57 = vsel %vm2760_vm12, 1.0, %v6153_v4  ;;  %vm5655_vm14 = vcmp.eq.s32.totalorder %v5572_v10, %v2543_v35  ;;  %vm5664_vm15 = vcmp.eq.s32.totalorder %v5575_v50, %v2547_v36 }
 0x276   : > { %v2974_v40 = vrot.slane %v2958_v1, %v5564_v15  ;;  %v2754_v14 = vadd.s32 %v5550_v6, %v2744_v20  ;;  %vm2766_vm2 = vcmp.lt.s32.totalorder %v2757_v3, 4100  ;;  %v3403_v46 = vsel %vm5655_vm14, 1.0, %v6153_v4 }
 0x277   : > { %vm5675_vm4 = vcmp.eq.s32.totalorder %v5579_v31, %v2551_v44  ;;  %v3404_v36 = vsel %vm5664_vm15, 1.0, %v6153_v4  ;;  %v5692_v44 = vsel %vm2765_vm1, 1.0, %v6153_v4  ;;  %vm2652_vm5 = vcmask 1040384  }
 0x278   : > { %v2989_v45 = vcombine.low %v2967_v61, %v2974_v40  ;;  %vm2763_vm0 = vcmp.lt.s32.totalorder %v2754_v14, 4100  ;;  %v2929_v3 = vmul.f32 %v5616_v24, %v3403_v46  ;;  %v2677_v46 = vrot.slane %v5541_v26, %v5558_v60 }
 0x27a   : > { %v2997_v19 = vrot.slane %v2989_v45, %v5564_v15 }
 0x27e   : > { %v4187_v49 = vpop.eup %4186 }
 0x27f   : > { %v4189_v39 = vpop.eup %4188  ;;  %v2416_v34 = vmul.f32 2.0, %v4187_v49 }
 0x280   : > { %v4191_v48 = vpop.eup %4190  ;;  %v2418_v62 = vmul.f32 2.0, %v4189_v39 }
 0x281   : > { %v4193_v41 = vpop.eup %4192  ;;  %v2417_v23 = vmul.f32 2.0, %v4191_v48  ;;  %v3392_v1 = vadd.f32 -1.0, %v2416_v34 }
 0x283   : > { %v3393_v55 = vadd.f32 -1.0, %v2417_v23 }
 0x2eb   : > { %v2241_v38 = vpop.f32.mrf.mxu1 }
 0x2ec   : > { %v2393_v63 = vadd.f32 %v5531_v12, %v2241_v38  ;;  %v2312_v9 = vpop.f32.mrf.mxu0  ;;  %v2419_v38 = vmul.f32 2.0, %v4193_v41  ;;  %v2449_v41 = vcombine.low %v3392_v1, %v3393_v55 }
 0x2ed   : > { %v2395_v27 = vadd.f32 %v5531_v12, %v2312_v9  ;;  %v2243_v25 = vpop.f32.mrf.mxu1  ;;  %v5642_v9 = vsub.s32 3, %v5547_v7 }
 0x2ee   : > { %v2402_v5 = vmul.f32 0.5, %v2393_v63  ;;  %v2394_v47 = vadd.f32 %v5531_v12, %v2243_v25  ;;  %v2314_v33 = vpop.f32.mrf.mxu0  ;;  %vm2524_vm7 = vcmp.gt.f32.partialorder %v2393_v63, 0.0  ;;  %v2795_v63 = vcombine.low %v5616_v24, %v5635_v57 }
 0x2ef   : > { %v2404_v37 = vmul.f32 0.5, %v2395_v27  ;;  %v2396_v17 = vadd.f32 %v5531_v12, %v2314_v33  ;;  %vm2526_vm8 = vcmp.gt.f32.partialorder %v2395_v27, 0.0  ;;  %v5601_v13 = vsel %vm2524_vm7, 1, %v6154_v43 }
 0x2f0   : > { %4194 = vtanh.f32 %v2402_v5  ;;  %v2403_v16 = vmul.f32 0.5, %v2394_v47  ;;  %vm2525_vm9 = vcmp.gt.f32.partialorder %v2394_v47, 0.0  ;;  %v5607_v29 = vsel %vm2526_vm8, 1, %v6154_v43 }
 0x2f1   : > { %4196 = vtanh.f32 %v2404_v37  ;;  %v5604_v32 = vsel %vm2525_vm9, 1, %v6154_v43  ;;  %v2405_v2 = vmul.f32 0.5, %v2396_v17  ;;  %vm2527_vm11 = vcmp.gt.f32.partialorder %v2396_v17, 0.0 }
 0x2f2   : > { %4198 = vtanh.f32 %v2403_v16  ;;  %v2959_v30 = vcombine.low %v5601_v13, %v5604_v32  ;;  %v5619_v56 = vsel %vm2527_vm11, 1, %v6154_v43  ;;  %v5646_v25 = vsel %vm2762_vm13, 1.0, %v6153_v4 }
 0x2f3   : > { %4200 = vtanh.f32 %v2405_v2  ;;  %v2960_v11 = vcombine.low %v5607_v29, %v5619_v56  ;;  %v2755_v5 = vadd.s32 %v5550_v6, %v2745_v42  ;;  %v2796_v33 = vcombine.low %v5629_v0, %v5646_v25 }
 0x2f4   : > { %v2981_v21 = vrot.slane %v2959_v30, %v5564_v15  ;;  %v3394_v16 = vadd.f32 -1.0, %v2418_v62  ;;  %v3395_v49 = vadd.f32 -1.0, %v2419_v38  ;;  %v2555_v62 = vrot.slane %v5555_v53, %v5642_v9 }
 0x2f5   : > { %v2988_v22 = vrot.slane %v2960_v11, %v5564_v15  ;;  %vm2764_vm3 = vcmp.lt.s32.totalorder %v2755_v5, 4100  ;;  %v5695_v11 = vsel %vm2766_vm2, 1.0, %v6153_v4  ;;  %v2459_v38 = vrot.slane %v2449_v41, %v5564_v15 }
 0x2f6   : > { %v2450_v20 = vcombine.low %v3394_v16, %v3395_v49  ;;  %v5698_v59 = vsel %vm2764_vm3, 1.0, %v6153_v4  ;;  %v2798_v45 = vcombine.low %v5692_v44, %v5695_v11  ;;  %v2805_v14 = vrot.slane %v2795_v63, %v5564_v15 }
 0x2f7   : > { %v2990_v27 = vcombine.low %v2981_v21, %v2988_v22  ;;  %v5689_v21 = vsel %vm2763_vm0, 1.0, %v6153_v4  ;;  %v3405_v5 = vsel %vm5675_vm4, 1.0, %v6153_v4  ;;  %v2930_v47 = vmul.f32 %v5635_v57, %v3404_v36 }
 0x2f8   : > { %v2797_v22 = vcombine.low %v5689_v21, %v5698_v59  ;;  %vm2579_vm6 = vcmp.eq.s32.totalorder %v5583_v28, %v2555_v62  ;;  %v2436_v16 = vmul.f32 2.0, %v5541_v26  ;;  %v2938_v49 = vsel %vm2652_vm5, %v2929_v3, 0.0 }
 0x2f9   : > { %v3004_v37 = vrot.slane %v2990_v27, %v5564_v15  ;;  %v2466_v27 = vrot.slane %v2450_v20, %v5564_v15  ;;  %v2931_v57 = vmul.f32 %v5629_v0, %v3405_v5  ;;  %v3406_v35 = vsel %vm2579_vm6, 1.0, %v6153_v4 }
 0x2fa   : > { %v2819_v1 = vrot.slane %v2797_v22, %v5564_v15  ;;  %v2748_v28 = vadd.s32 1024, %v5553_v52  ;;  %vm3023_vm8 = vcmp.lt.s32.totalorder %v2456_v58, 128 }
 0x2fb   : > { %v3005_v2 = vcombine.low %v2997_v19, %v3004_v37  ;;  %v2812_v19 = vrot.slane %v2796_v33, %v5564_v15  ;;  %v2826_v37 = vrot.slane %v2798_v45, %v5564_v15  ;;  %v2481_v24 = vcombine.low %v2459_v38, %v2466_v27 }
 0x2fc   : > { %v2939_v33 = vsel %vm2652_vm5, %v2930_v47, 0.0  ;;  %v2941_v41 = vsel %vm2652_vm5, %v2931_v57, 0.0  ;;  %v2758_v62 = vadd.s32 %v5550_v6, %v2748_v28  ;;  %v2719_v38 = vsel %vm2652_vm5, %v2677_v46, 0.0 }
 0x2fd   : > { %v4195_v17 = vpop.eup %4194  ;;  %3020 = vst [vmem:[%s5681_s19] sm:$0xff] %v3005_v2  ;;  %v2489_v50 = vrot.slane %v2481_v24, %v5564_v15  ;;  %v2940_v36 = vadd.f32 %v2939_v33, %v2938_v49  ;;  %v5754_v6 = vsub.s32 4, %v5547_v7  ;;  %v5768_v24 = vsub.s32 7, %v5547_v7 }
 0x2fe   : > { %v4197_v30 = vpop.eup %4196  ;;  %v2420_v10 = vmul.f32 2.0, %v4195_v17  ;;  %vm2767_vm9 = vcmp.lt.s32.totalorder %v2758_v62, 4100  ;;  %v2689_v49 = vrot.slane %v5541_v26, %v5642_v9 }
 0x2ff   : > { %v4199_v39 = vpop.eup %4198  ;;  %v2422_v61 = vmul.f32 2.0, %v4197_v30  ;;  %v2827_v30 = vcombine.low %v2805_v14, %v2812_v19  ;;  %v2559_v57 = vrot.slane %v5555_v53, %v5754_v6 }
 0x300   : > { %v3396_v40 = vadd.f32 -1.0, %v2420_v10  ;;  %v2421_v48 = vmul.f32 2.0, %v4199_v39  ;;  %v4201_v31 = vpop.eup %4200  ;;  %v2828_v10 = vcombine.low %v2819_v1, %v2826_v37  ;;  %v3401_v39 = vadd.f32 -1.0, %v2436_v16 }
 0x301   : > { %v3398_v42 = vadd.f32 -1.0, %v2422_v61  ;;  %v2423_v34 = vmul.f32 2.0, %v4201_v31  ;;  %v2835_v20 = vrot.slane %v2827_v30, %v5564_v15  ;;  %v2932_v31 = vmul.f32 %v5646_v25, %v3406_v35 }
 0x302   : > { %v3397_v51 = vadd.f32 -1.0, %v2421_v48  ;;  %v2681_v48 = vrot.slane %v5541_v26, %v5598_v8  ;;  %v5758_v37 = vsub.s32 6, %v5547_v7  ;;  %v5780_v35 = vsel %vm2767_vm9, 1.0, %v6153_v4 }
 0x303   : > { %v3399_v18 = vadd.f32 -1.0, %v2423_v34  ;;  %v5738_v34 = vld [vmem:[%s5536_s23 + $0x8] sm:$0x1]  ;;  %v2943_v3 = vsel %vm2652_vm5, %v2932_v31, 0.0  ;;  %vm5821_vm10 = vcmp.eq.s32.totalorder %v5601_v13, %v2559_v57 }
 0x304   : > { %v2451_v23 = vcombine.low %v3396_v40, %v3397_v51  ;;  %v2720_v27 = vsel %vm2652_vm5, %v2681_v48, 0.0  ;;  %v2437_v33 = vmul.f32 2.0, %v5738_v34  ;;  %v2693_v48 = vrot.slane %v5541_v26, %v5754_v6 }
 0x305   : > { %v2452_v63 = vcombine.low %v3398_v42, %v3399_v18  ;;  %v2842_v42 = vrot.slane %v2828_v10, %v5564_v15  ;;  %v2942_v18 = vadd.f32 %v2941_v41, %v2940_v36  ;;  %v2721_v1 = vadd.f32 %v2720_v27, %v2719_v38 }
 0x306   : > { %v2473_v17 = vrot.slane %v2451_v23, %v5564_v15  ;;  %v2685_v23 = vrot.slane %v5541_v26, %v5569_v54  ;;  %v2567_v10 = vrot.slane %v5555_v53, %v5758_v37  ;;  %v2724_v41 = vsel %vm2652_vm5, %v2689_v49, 0.0 }
 0x307   : > { %v2480_v55 = vrot.slane %v2452_v63, %v5564_v15  ;;  %v2843_v5 = vcombine.low %v2835_v20, %v2842_v42  ;;  %v5765_v58 = vadd.f32 %v2943_v3, %v2942_v18  ;;  %v3402_v36 = vadd.f32 -1.0, %v2437_v33 }
 0x308   : > { %v2722_v16 = vsel %vm2652_vm5, %v2685_v23, 0.0  ;;  %v2701_v62 = vrot.slane %v5541_v26, %v5758_v37  ;;  %v2705_v49 = vrot.slane %v5541_v26, %v5768_v24  ;;  %vm2582_vm12 = vcmp.eq.s32.totalorder %v5607_v29, %v2567_v10 }
 0x309   : > { %v2482_v2 = vcombine.low %v2473_v17, %v2480_v55  ;;  %v5761_v17 = vsub.s32 5, %v5547_v7  ;;  %v3409_v29 = vsel %vm2582_vm12, 1.0, %v6153_v4 }
 0x30b   : > { %v2496_v40 = vrot.slane %v2482_v2, %v5564_v15  ;;  %v2563_v7 = vrot.slane %v5555_v53, %v5761_v17  ;;  %v2850_v2 = vrot.slane %v5780_v35, %v5564_v15 }
 0x30c   : > { %v2383_v61 = vpop.f32.mrf.mxu1 }
 0x30d   : > { %v2397_v0 = vadd.f32 %v5531_v12, %v2383_v61  ;;  %v2497_v45 = vcombine.low %v2489_v50, %v2496_v40  ;;  %v2571_v40 = vrot.slane %v5555_v53, %v5768_v24  ;;  %v5809_v42 = vrot.slane %v2850_v2, %v5564_v15 }
 0x30e   : > { %v3508_v51 = vpop.f32.mrf.mxu1  ;;  %vm2581_vm11 = vcmp.eq.s32.totalorder %v5604_v32, %v2563_v7  ;;  %v2730_v32 = vsel %vm2652_vm5, %v2701_v62, 0.0  ;;  %v2935_v53 = vmul.f32 %v5692_v44, %v3409_v29 }
 0x30f   : > { %v2406_v22 = vmul.f32 0.5, %v2397_v0  ;;  %vm2528_vm7 = vcmp.gt.f32.partialorder %v2397_v0, 0.0  ;;  %v2514_v14 = vmul.f32 %v3401_v39, %v2497_v45  ;;  %v2723_v39 = vadd.f32 %v2722_v16, %v2721_v1 }
 0x310   : > { %v5741_v12 = vsel %vm2528_vm7, 1, %v6154_v43  ;;  %v3514_v43 = vtrunc.f32 %v5738_v34  ;;  %vm5873_vm13 = vcmp.eq.s32.totalorder %v5619_v56, %v2571_v40 }
 0x311   : > { %4202 = vtanh.f32 %v2406_v22  ;;  %v3012_v25 = vrot.slane %v5741_v12, %v5564_v15  ;;  %v2516_v47 = vsub.f32 1.0, %v2514_v14  ;;  %v2697_v22 = vrot.slane %v5541_v26, %v5761_v17 }
 0x312   : > { %v5770_v55 = vcvt.f32.s32 %v3514_v43 }
 0x313   : > { %v3019_v19 = vrot.slane %v3012_v25, %v5564_v15  ;;  %v2518_v63 = vmax.f32 %v2516_v47, 0.0  ;;  %v2725_v25 = vadd.f32 %v2724_v41, %v2723_v39  ;;  %v2728_v2 = vsel %vm2652_vm5, %v2697_v22, 0.0 }
 0x314   : > { %v2575_v0 = vrot.slane %v5770_v55, %v5558_v60  ;;  %v3407_v39 = vsel %vm5821_vm10, 1.0, %v6153_v4 }
 0x315   : > { %3025 = vst.msk [vmem:[%s5681_s19 + $0x8] sm:$0x1] %vm3023_vm8, %v3019_v19  ;;  %v5776_v30 = vmul.f32 %v2843_v5, %v2518_v63  ;;  %v5789_v61 = vmul.f32 %v2518_v63, %v5541_v26  ;;  %v2726_v5 = vsel %vm2652_vm5, %v2693_v48, 0.0 }
 0x316   : > { %v2727_v33 = vadd.f32 %v2726_v5, %v2725_v25  ;;  %v2709_v25 = vrot.slane %v5738_v34, %v5558_v60  ;;  %vm2584_vm14 = vcmp.eq.s32.totalorder %v5741_v12, %v2575_v0 }
 0x317   : > { %v2867_v28 = vrot.slane %v5776_v30, %v5558_v60  ;;  %v2871_v46 = vrot.slane %v5776_v30, %v5598_v8  ;;  %v2875_v50 = vrot.slane %v5776_v30, %v5569_v54  ;;  %v2879_v20 = vrot.slane %v5776_v30, %v5642_v9 }
 0x318   : > { %v2610_v38 = vrot.slane %v5789_v61, %v5558_v60  ;;  %v2614_v14 = vrot.slane %v5789_v61, %v5598_v8  ;;  %v2618_v43 = vrot.slane %v5789_v61, %v5569_v54  ;;  %v2883_v19 = vrot.slane %v5776_v30, %v5754_v6 }
 0x319   : > { %v2909_v31 = vsel %vm2652_vm5, %v2867_v28, 0.0  ;;  %v2910_v51 = vsel %vm2652_vm5, %v2871_v46, 0.0  ;;  %v2912_v23 = vsel %vm2652_vm5, %v2875_v50, 0.0  ;;  %v2914_v1 = vsel %vm2652_vm5, %v2879_v20, 0.0 }
 0x31a   : > { %v2911_v45 = vadd.f32 %v2910_v51, %v2909_v31  ;;  %v2653_v8 = vsel %vm2652_vm5, %v2610_v38, 0.0  ;;  %v2622_v13 = vrot.slane %v5789_v61, %v5642_v9  ;;  %v2654_v16 = vsel %vm2652_vm5, %v2614_v14, 0.0 }
 0x31b   : > { %v2655_v57 = vadd.f32 %v2654_v16, %v2653_v8  ;;  %v2626_v28 = vrot.slane %v5789_v61, %v5754_v6  ;;  %v2656_v9 = vsel %vm2652_vm5, %v2618_v43, 0.0  ;;  %v2887_v26 = vrot.slane %v5776_v30, %v5761_v17 }
 0x31c   : > { %v2913_v3 = vadd.f32 %v2912_v23, %v2911_v45  ;;  %v2916_v50 = vsel %vm2652_vm5, %v2883_v19, 0.0  ;;  %v2630_v20 = vrot.slane %v5789_v61, %v5761_v17  ;;  %v2658_v31 = vsel %vm2652_vm5, %v2622_v13, 0.0 }
 0x31d   : > { %v2657_v48 = vadd.f32 %v2656_v9, %v2655_v57  ;;  %v2933_v6 = vmul.f32 %v5689_v21, %v3407_v39  ;;  %v3408_v45 = vsel %vm2581_vm11, 1.0, %v6153_v4  ;;  %v2891_v22 = vrot.slane %v5776_v30, %v5758_v37 }
 0x31e   : > { %v4203_v27 = vpop.eup %4202  ;;  %v2915_v63 = vadd.f32 %v2914_v1, %v2913_v3  ;;  %v2660_v23 = vsel %vm2652_vm5, %v2626_v28, 0.0  ;;  %v2729_v38 = vadd.f32 %v2728_v2, %v2727_v33  ;;  %v2918_v14 = vsel %vm2652_vm5, %v2887_v26, 0.0 }
 0x31f   : > { %v2424_v47 = vmul.f32 2.0, %v4203_v27  ;;  %v2659_v51 = vadd.f32 %v2658_v31, %v2657_v48  ;;  %v2634_v62 = vrot.slane %v5789_v61, %v5758_v37  ;;  %v2945_v27 = vsel %vm2652_vm5, %v2933_v6, 0.0 }
 0x320   : > { %v2917_v41 = vadd.f32 %v2916_v50, %v2915_v63  ;;  %v2934_v18 = vmul.f32 %v5698_v59, %v3408_v45  ;;  %v2895_v43 = vrot.slane %v5776_v30, %v5768_v24  ;;  %v2731_v5 = vadd.f32 %v2730_v32, %v2729_v38 }
 0x321   : > { %v3400_v54 = vadd.f32 -1.0, %v2424_v47  ;;  %v2661_v21 = vadd.f32 %v2660_v23, %v2659_v51  ;;  %v2732_v47 = vsel %vm2652_vm5, %v2705_v49, 0.0  ;;  %v2920_v1 = vsel %vm2652_vm5, %v2891_v22, 0.0 }
 0x322   : > { %v2919_v10 = vadd.f32 %v2918_v14, %v2917_v41  ;;  %v2638_v59 = vrot.slane %v5789_v61, %v5768_v24  ;;  %v2664_v8 = vsel %vm2652_vm5, %v2634_v62, 0.0  ;;  %v2946_v63 = vadd.f32 %v2945_v27, %v5765_v58 }
 0x323   : > { %v2504_v46 = vrot.slane %v3400_v54, %v5564_v15  ;;  %v2947_v16 = vsel %vm2652_vm5, %v2934_v18, 0.0  ;;  %v3410_v24 = vsel %vm5873_vm13, 1.0, %v6153_v4  ;;  %v2733_v44 = vadd.f32 %v2732_v47, %v2731_v5 }
 0x324   : > { %v2921_v56 = vadd.f32 %v2920_v1, %v2919_v10  ;;  %v2734_v61 = vsel %vm2652_vm5, %v2709_v25, 0.0  ;;  %v2922_v49 = vsel %vm2652_vm5, %v2895_v43, 0.0  ;;  %v2666_v12 = vsel %vm2652_vm5, %v2638_v59, 0.0 }
 0x325   : > { %v2511_v7 = vrot.slane %v2504_v46, %v5564_v15  ;;  %v2662_v15 = vsel %vm2652_vm5, %v2630_v20, 0.0  ;;  %v2948_v54 = vadd.f32 %v2947_v16, %v2946_v63  ;;  %v2936_v2 = vmul.f32 %v5695_v11, %v3410_v24 }
 0x326   : > { %v2923_v0 = vadd.f32 %v2922_v49, %v2921_v56  ;;  %v2949_v39 = vsel %vm2652_vm5, %v2935_v53, 0.0 }
 0x327   : > { %v2515_v17 = vmul.f32 %v3402_v36, %v2511_v7  ;;  %v2663_v36 = vadd.f32 %v2662_v15, %v2661_v21  ;;  %v2950_v46 = vadd.f32 %v2949_v39, %v2948_v54  ;;  %v2951_v26 = vsel %vm2652_vm5, %v2936_v2, 0.0 }
 0x329   : > { %v2517_v3 = vsub.f32 1.0, %v2515_v17  ;;  %v2665_v40 = vadd.f32 %v2664_v8, %v2663_v36  ;;  %v2952_v48 = vadd.f32 %v2951_v26, %v2950_v46 }
 0x32b   : > { %v2519_v19 = vmax.f32 %v2517_v3, 0.0 }
 0x32d   : > { %v2861_v30 = vmul.f32 %v5809_v42, %v2519_v19  ;;  %v2604_v13 = vmul.f32 %v2519_v19, %v5738_v34  ;;  %v2667_v42 = vadd.f32 %v2666_v12, %v2665_v40  ;;  %v3411_v34 = vsel %vm2584_vm14, 1.0, %v6153_v4 }
 0x32e   : > { %v2735_v4 = vadd.f32 %v2734_v61, %v2733_v44 }
 0x32f   : > { %v2899_v58 = vrot.slane %v2861_v30, %v5558_v60  ;;  %v2642_v55 = vrot.slane %v2604_v13, %v5558_v60  ;;  %v2937_v60 = vmul.f32 %v5780_v35, %v3411_v34 }
 0x331   : > { %v2924_v57 = vsel %vm2652_vm5, %v2899_v58, 0.0  ;;  %v2668_v33 = vsel %vm2652_vm5, %v2642_v55, 0.0  ;;  %v2953_v50 = vsel %vm2652_vm5, %v2937_v60, 0.0 }
 0x332   : > { %v2925_v28 = vadd.f32 %v2924_v57, %v2923_v0  ;;  %v2669_v9 = vadd.f32 %v2668_v33, %v2667_v42  ;;  %v2954_v11 = vadd.f32 %v2953_v50, %v2952_v48 }
 0x334   : > { %2926 = vadd.xlane.f32.xlu1 %v2925_v28  ;;  %2670 = vadd.xlane.f32.xlu0 %v2669_v9 }
 0x338   : > { %2736 = vadd.xlane.f32.xlu0 %v2735_v4 }
 0x33c   : > { %2955 = vadd.xlane.f32.xlu0 %v2954_v11 }
 0x33d   : > { %4246 = shalt.err (!%p4243_p0)
}
 0x33e   : > { %s4247_s23 = scalar_lea.hbm %s3055_s9, 144  ;;  %s4251_s19 = scalar_lea.hbm %s5972_s6, 576 }
 0x33f   : > { %p4248_p2 = scmp.ne.s32.totalorder %s3055_s9, %s4247_s23  ;;  %p4252_p3 = scmp.lt.s32.totalorder %s3055_s9, %s5972_s6 }
 0x340   : > { %p4253_p6 = scmp.lt.s32.totalorder %s4251_s19, %s4247_s23 }
 0x341   : > { %p4249_p13 = pnand %p4248_p2, %p6165_p12 }
 0x342   : > { %p4254_p10 = por %p4253_p6, %p4252_p3 }
 0x343   : > { %p4250_p1 = pneg %p4249_p13 }
 0x345   : > { %p4255_p11 = pnand %p4254_p10, %p4250_p1 }
 0x347   : > { %4258 = shalt.err (!%p4255_p11)
}
 0x348   : > { %3518 = dma.vmem_to_hbm [thread:$0]  (%p6165_p12), %s3058_s25, 144, %s3055_s9, %s3039_s16   ;;  %vm3026_vm15 = vcmp.eq.s32.totalorder %v5553_v52, 0  ;;  %vm3028_vm0 = vcmp.eq.s32.totalorder %v5553_v52, 1  ;;  %vm3031_vm1 = vcmp.eq.s32.totalorder %v5553_v52, 2  ;;  %vm3034_vm2 = vcmp.eq.s32.totalorder %v5553_v52, 3 }
 0x349   : > { %s3422_s30 = sshll.u32 %s4403_s4, 4  ;;  %s321_s25 = scalar_lea.vmem [#allocation7], %s4474_s10 }
 0x34a   : > { %s3070_s9 = sshll.u32 %s321_s25, 4  ;;  %s3068_s12 = scalar_lea.hbm %s5973_s7, %s3422_s30  ;;  %s3071_s9 = int_to_ptr.vmem [resolvable:$true] %s3070_s9 }
 0x34b   : > { %s3044_s20 = scalar_lea.sflag [#allocation8], %s4474_s10  ;;  %s4259_s21 = scalar_lea.vmem %s3071_s9, 16 }
 0x34c   : > { %p4260_p4 = scmp.ne.s32.totalorder %s3071_s9, %s4259_s21  ;;  %s4338_s23 = smov [#allocation7]  }
 0x34d   : > { %s4263_s4 = sshll.u32 %s4338_s23, 4  ;;  %s4264_s4 = int_to_ptr.vmem [resolvable:$false] %s4263_s4 }
 0x34e   : > { %p4261_p5 = pnand %p4260_p4, %p6165_p12  ;;  %s4265_s24 = scalar_lea.vmem %s4264_s4, 32 }
 0x34f   : > { %p4266_p8 = scmp.lt.s32.totalorder %s3071_s9, %s4264_s4  ;;  %p4267_p9 = scmp.lt.s32.totalorder %s4265_s24, %s4259_s21 }
 0x350   : > { %p4262_p7 = pneg %p4261_p5 }
 0x351   : > { %p4268_p0 = por %p4267_p9, %p4266_p8 }
 0x353   : > { %p4269_p2 = pnand %p4268_p0, %p4262_p7 }
 0x3bd   : > { %v2927_v35 = vpop.xlane.xlu1 %2926  ;;  %v2671_v41 = vpop.xlane.xlu0 %2670 }
 0x3be   : > { %v2928_v20 = vsub.f32 %v2927_v35, %v2671_v41  ;;  %v3027_v31 = vsel %vm3026_vm15, %v2671_v41, 0.0 }
 0x3c0   : > { %v3029_v32 = vsel %vm3028_vm0, %v2928_v20, 0.0 }
 0x3c1   : > { %v3030_v6 = vadd.f32 %v3029_v32, %v3027_v31  ;;  %v2737_v7 = vpop.xlane.xlu0 %2736 }
 0x3c2   : > { %v3032_v51 = vsel %vm3031_vm1, %v2737_v7, 0.0 }
 0x3c3   : > { %v3033_v45 = vadd.f32 %v3032_v51, %v3030_v6 }
 0x3c5   : > { %v2956_v22 = vpop.xlane.xlu0 %2955 }
 0x3c6   : > { %v3035_v23 = vsel %vm3034_vm2, %v2956_v22, 0.0 }
 0x3c7   : > { %v3036_v38 = vadd.f32 %v3035_v23, %v3033_v45 }
 0x3c9   : > { %3037 = vst [vmem:[%s321_s25] sm:$0x1] %v3036_v38 }
 0x3ca   : > { %4272 = shalt.err (!%p4269_p2)
}
 0x3cb   : > { %s4273_s17 = scalar_lea.hbm %s3068_s12, 16  ;;  %s4277_s22 = scalar_lea.hbm %s5973_s7, 64 }
 0x3cc   : > { %p4274_p13 = scmp.ne.s32.totalorder %s3068_s12, %s4273_s17  ;;  %p4278_p6 = scmp.lt.s32.totalorder %s3068_s12, %s5973_s7 }
 0x3cd   : > { %p4279_p10 = scmp.lt.s32.totalorder %s4277_s22, %s4273_s17 }
 0x3ce   : > { %p4275_p1 = pnand %p4274_p13, %p6165_p12 }
 0x3cf   : > { %p4280_p11 = por %p4279_p10, %p4278_p6 }
 0x3d0   : > { %p4276_p3 = pneg %p4275_p1 }
 0x3d2   : > { %p4281_p4 = pnand %p4280_p11, %p4276_p3 }
 0x3d4   : > { %4284 = shalt.err (!%p4281_p4)
}
 0x3d5   : > { %3519 = dma.vmem_to_hbm [thread:$0]  (%p6165_p12), %s3071_s9, 16, %s3068_s12, %s3044_s20  }
 0x3d6 PF: > { %p3534_p5 = scmp.ge.s32.totalorder %s4327_s29, 2  ;;  %s3082_s25 = sand.u32 1, %s4315_s26  }
 0x3d7   : > { %p6166_p7 = scmp.ne.s32.totalorder %s6009_s14, 0  ;;  %s3083_s16 = scalar_lea.sflag [#allocation5], %s3082_s25 }
 0x3d9   : > { %p3527_p8 = pnand %p3534_p5, %p6166_p7 }
 0x3db   : > { %p3528_p9 = pneg %p3527_p8 }
 0x3dd   : > { %4306 = dma.done.wait (%p3528_p9), %s3083_s16, 144  }
 0x3de   : > { %4308 = vsyncadd (%p3528_p9), %s3083_s16, 4294967152  ;;  %s3092_s18 = scalar_lea.sflag [#allocation8], %s3082_s25 }
 0x3df   : > { %4310 = dma.done.wait (%p3528_p9), %s3092_s18, 16  }
 0x3e0   : > { %4312 = vsyncadd (%p3528_p9), %s3092_s18, 4294967280  ;;  %p25_p12 = scmp.ge.s32.totalorder %s4407_s8, 6   ;;  %s6167_s26 = smov %s4319_s27 }
 0x3e1   : > { %s6168_s27 = smov %s4323_s28  ;;  %s6169_s28 = smov %s4419_s11 }
 0x3e2   : > { %s6170_s29 = smov %s4407_s8  ;;  %27 = sbr.rel (!%p25_p12) target bundleno = 9 (0x9), region = 109 }
 0x3e7   :  { %3096 = vsyncpa [#allocation4], 1 }
 0x3e8   :  { %3098 = vsyncpa [#allocation4 + $0x1], 1 }
 0x3e9   :  { %3099 = vsyncpa [#allocation5], 1 }
 0x3ea   :  { %3101 = vsyncpa [#allocation5 + $0x1], 1 }
 0x3eb   :  { %3102 = vsyncpa [#allocation8], 1 }
 0x3ec   :  { %3104 = vsyncpa [#allocation8 + $0x1], 1 }

</bundles_post_ra>
